<compile_context>
chip_gen: v6e
topology: v6e:2x2x1
jax: 0.10.0
libtpu: 0.0.40
codegen_flags: <defaults>
</compile_context>

<pallas_src>
import functools

import jax
import jax.numpy as jnp
from jax.experimental import pallas as pl
from jax.experimental.pallas import tpu as pltpu

EPS = 1e-5


# ---------------------------------------------------------------------------
# Fused MainBlock kernel (single program, whole batch folded into M = B*L).
# Layout inside the kernel: (time, channels) = (sublanes, lanes).
# ---------------------------------------------------------------------------
def _main_block_kernel(x_ref, wres_ref, bres_ref, *rest,
                       B, L, K, pad, OFF, Lpa, Cin, Cout, n_sub):
    # rest = (w_flat_0, b_0, ..., w_flat_{S-1}, b_{S-1},
    #         out_ref, pad_ref, lhs_ref, res_ref)
    out_ref = rest[2 * n_sub]
    pad_ref = rest[2 * n_sub + 1]     # (B*Lpa, Cmax) f32  zero-padded acts
    lhs_ref = rest[2 * n_sub + 2]     # (B*L, K*Cmax) bf16 im2col LHS
    res_ref = rest[2 * n_sub + 3]     # (B*L, Cout)   f32  folded residual

    # Zero the padded-activation scratch once; pad rows stay zero for every
    # sub-block, which implements the 'same' padding with no jnp.pad.
    pad_ref[...] = jnp.zeros(pad_ref.shape, pad_ref.dtype)

    # (L, L) identity in bf16 -> the NCL->NLC transpose runs on the MXU
    # (eye contracted against x's time dim, the standard q@k^T pattern).
    rows = jax.lax.broadcasted_iota(jnp.int32, (L, L), 0)
    cols = jax.lax.broadcasted_iota(jnp.int32, (L, L), 1)
    eye = jnp.where(rows == cols, 1.0, 0.0).astype(jnp.bfloat16)

    for b in range(B):
        x_cl = x_ref[b].astype(jnp.bfloat16)                      # (Cin, L)
        # x^T: contract eye's dim 1 with x's dim 1 -> (L, Cin), f32 accum.
        x_lc = jax.lax.dot_general(eye, x_cl,
                                   (((1,), (1,)), ((), ())),
                                   preferred_element_type=jnp.float32)
        # deposit at the 8-aligned offset of this batch segment
        pad_ref[b * Lpa + OFF: b * Lpa + OFF + L, 0:Cin] = x_lc
        # folded residual (1x1 conv + BN) from the aligned in-register operand
        res_ref[b * L:(b + 1) * L, :] = (
            jnp.dot(x_lc.astype(jnp.bfloat16), wres_ref[...],
                    preferred_element_type=jnp.float32) + bres_ref[...])

    c_in = Cin
    y = None
    for s in range(n_sub):
        w_ref, b_ref = rest[2 * s], rest[2 * s + 1]

        # ---- build the (B*L, K*c_in) im2col LHS: one shifted copy per
        #      (tap, batch); stores land on aligned rows / 128-lane columns.
        for k in range(K):
            sk = OFF - pad + k
            for b in range(B):
                tap = pad_ref[b * Lpa + sk: b * Lpa + sk + L, 0:c_in]
                lhs_ref[b * L:(b + 1) * L, k * c_in:(k + 1) * c_in] = (
                    tap.astype(jnp.bfloat16))

        # ---- ONE long-contraction MXU matmul for the whole sub-block ----
        y = jnp.dot(lhs_ref[:, 0:K * c_in], w_ref[...],
                    preferred_element_type=jnp.float32) + b_ref[...]
        if s == n_sub - 1:
            y = y + res_ref[...]
        y = jnp.maximum(y, 0.0)

        # write the activation back to the padded scratch for the next block
        if s + 1 < n_sub:
            for b in range(B):
                pad_ref[b * Lpa + OFF: b * Lpa + OFF + L, 0:Cout] = (
                    y[b * L:(b + 1) * L, :])
        c_in = Cout

    for b in range(B):
        out_ref[b] = y[b * L:(b + 1) * L, :].astype(out_ref.dtype)


def main_block_forward(x_ncl, prep):
    """x_ncl: (B, Cin, L) like the nn.Module. Returns (B, Cout, L)."""
    wres, bres = prep['res']                  # (Cin, Cout) bf16, (1, Cout) f32
    subs = prep['subs']                       # list of ((K*C_s, Cout), (1, Cout))
    n_sub = len(subs)
    B, Cin, L = x_ncl.shape
    Cout = wres.shape[1]
    K = subs[0][0].shape[0] // Cin
    pad = (K - 1) // 2
    OFF = ((pad + 7) // 8) * 8                 # aligned start of the activation
    Lpa = ((OFF + L + pad + 7) // 8) * 8       # per-batch padded segment length
    Cmax = max(Cin, Cout)

    assert K % 2 == 1, "only odd kernel sizes ('same' pad) supported"
    assert L % 16 == 0 and Cin % 128 == 0 and Cout % 128 == 0, \
        "demo kernel assumes lane/sublane-aligned shapes"

    inputs = [x_ncl, wres, bres]
    in_specs = [
        pl.BlockSpec((B, Cin, L), lambda i: (0, 0, 0)),
        pl.BlockSpec((Cin, Cout), lambda i: (0, 0)),
        pl.BlockSpec((1, Cout), lambda i: (0, 0)),
    ]
    for w_flat, b_comb in subs:
        inputs += [w_flat, b_comb]
        in_specs += [pl.BlockSpec(w_flat.shape, lambda i: (0, 0)),
                     pl.BlockSpec((1, Cout), lambda i: (0, 0))]

    kern = functools.partial(_main_block_kernel, B=B, L=L, K=K, pad=pad,
                             OFF=OFF, Lpa=Lpa, Cin=Cin, Cout=Cout, n_sub=n_sub)
    out_nlc = pl.pallas_call(
        kern,
        out_shape=jax.ShapeDtypeStruct((B, L, Cout), jnp.float32),
        grid=(1,),                              # single program: M = B*L
        in_specs=in_specs,
        out_specs=pl.BlockSpec((B, L, Cout), lambda i: (0, 0, 0)),
        scratch_shapes=[pltpu.VMEM((B * Lpa, Cmax), jnp.float32),
                        pltpu.VMEM((B * L, K * Cmax), jnp.bfloat16),
                        pltpu.VMEM((B * L, Cout), jnp.float32)],
        compiler_params=pltpu.CompilerParams(
            dimension_semantics=("arbitrary",)),
    )(*inputs)
    # Module contract is NCL; when chaining MainBlocks keep NLC and drop this.
    return jnp.transpose(out_nlc, (0, 2, 1))


main_block_forward_jit = jax.jit(main_block_forward)


# ---------------------------------------------------------------------------
# Deterministic synthetic parameters (PyTorch-default-style init + BN stats)
# ---------------------------------------------------------------------------
def make_params(key, in_ch, out_ch, k, repeat_blocks):
    keys = iter(jax.random.split(key, 64))

    def conv_params(cin_per_group, cout, ksz):
        bound = 1.0 / ((cin_per_group * ksz) ** 0.5)
        w = jax.random.uniform(next(keys), (cout, cin_per_group, ksz),
                               minval=-bound, maxval=bound, dtype=jnp.float32)
        b = jax.random.uniform(next(keys), (cout,),
                               minval=-bound, maxval=bound, dtype=jnp.float32)
        return w, b

    def bn_params(c):
        gamma = 1.0 + 0.1 * jax.random.normal(next(keys), (c,), jnp.float32)
        beta = 0.1 * jax.random.normal(next(keys), (c,), jnp.float32)
        mean = 0.1 * jax.random.normal(next(keys), (c,), jnp.float32)
        var = 1.0 + 0.1 * jnp.abs(jax.random.normal(next(keys), (c,),
                                                    jnp.float32))
        return gamma, beta, mean, var

    params = {'res_pw': conv_params(in_ch, out_ch, 1),
              'res_bn': bn_params(out_ch),
              'subs': []}
    cin = in_ch
    for _ in range(repeat_blocks):
        params['subs'].append({
            'dw': conv_params(1, cin, k),          # depthwise weight (C, 1, K)
            'pw': conv_params(cin, out_ch, 1),     # pointwise (Cout, C, 1)
            'bn': bn_params(out_ch),
        })
        cin = out_ch
    return params


def _fold_bn(bn):
    gamma, beta, mean, var = bn
    scale = gamma / jnp.sqrt(var + EPS)
    shift = beta - mean * scale
    return scale, shift


def prepare_params(params):
    """One-time weight prep (outside the hot path): fold BN, combine
    depthwise+pointwise per tap, flatten to (K*C, Cout), cast to bf16."""
    wres, bres = params['res_pw']                       # (Cout, Cin, 1), (Cout,)
    scale_r, shift_r = _fold_bn(params['res_bn'])
    wres_f = (wres[:, :, 0].T * scale_r[None, :]).astype(jnp.bfloat16)
    bres_f = (bres * scale_r + shift_r).reshape(1, -1).astype(jnp.float32)

    subs = []
    for sub in params['subs']:
        dw_w, dw_b = sub['dw']                          # (C, 1, K), (C,)
        pw_w, pw_b = sub['pw']                          # (Cout, C, 1), (Cout,)
        scale, shift = _fold_bn(sub['bn'])
        pwT = pw_w[:, :, 0].T                           # (C, Cout)
        dw = dw_w[:, 0, :].T                            # (K, C)
        w_tap = dw[:, :, None] * pwT[None, :, :]        # (K, C, Cout)
        w_tap = w_tap * scale[None, None, :]
        k, c, cout = w_tap.shape
        w_flat = w_tap.reshape(k * c, cout).astype(jnp.bfloat16)   # (K*C, Cout)
        b_comb = ((dw_b @ pwT + pw_b) * scale + shift).reshape(1, -1)
        subs.append((w_flat, b_comb.astype(jnp.float32)))
    return {'res': (wres_f, bres_f), 'subs': subs}


# ---------------------------------------------------------------------------
# Pure-JAX reference (NCL, lax.conv, f32 HIGHEST precision) for validation
# ---------------------------------------------------------------------------
def _bn_ref(x, gamma, beta, mean, var):
    inv = gamma / jnp.sqrt(var + EPS)
    return (x - mean[None, :, None]) * inv[None, :, None] + beta[None, :, None]


def _conv1d_ref(x, w, b, pad=0, groups=1):
    y = jax.lax.conv_general_dilated(
        x, w, window_strides=(1,), padding=[(pad, pad)],
        dimension_numbers=('NCH', 'OIH', 'NCH'),
        feature_group_count=groups, precision=jax.lax.Precision.HIGHEST)
    return y + b[None, :, None]


def main_block_ref(x, params):
    wres, bres = params['res_pw']
    res = _bn_ref(_conv1d_ref(x, wres, bres), *params['res_bn'])
    n_sub = len(params['subs'])
    for i, sub in enumerate(params['subs']):
        dw_w, dw_b = sub['dw']
        pw_w, pw_b = sub['pw']
        K = dw_w.shape[2]
        y = _conv1d_ref(x, dw_w, dw_b, pad=(K - 1) // 2, groups=dw_w.shape[0])
        y = _conv1d_ref(y, pw_w, pw_b)
        y = _bn_ref(y, *sub['bn'])
        if i == n_sub - 1:
            y = y + res
        x = jnp.maximum(y, 0.0)
    return x


if __name__ == "__main__":
    key = jax.random.PRNGKey(0)
    k_params, k_x = jax.random.split(key)

    # MainBlock(in_channels=128, out_channels=128, kernel_size=13,
    #           repeat_blocks=2) on a (B=2, C=128, L=64) input.
    B, Cin, Cout, K, L, REPEAT = 2, 128, 128, 13, 64, 2
    params = make_params(k_params, Cin, Cout, K, REPEAT)
    x = jax.random.normal(k_x, (B, Cin, L), dtype=jnp.float32)

    prep = prepare_params(params)                 # hoisted weight prep (once)
    out = jax.block_until_ready(main_block_forward_jit(x, prep))

    ref = main_block_ref(x, params)
    assert out.shape == ref.shape == (B, Cout, L), (out.shape, ref.shape)
    assert bool(jnp.all(jnp.isfinite(out))), "non-finite output"
    err = float(jnp.max(jnp.abs(out - ref)))
    denom = float(jnp.max(jnp.abs(ref))) + 1e-6
    # bf16 MXU operands are deliberate; expected error ~1e-3 relative to max|ref|
    assert err <= 2e-2 * denom, f"mismatch: max|diff|={err}, max|ref|={denom}"
    print("KERNEL_OK")
</pallas_src>

<mosaic_0001>
module attributes {stable_mosaic.version = 11 : i64} {
  func.func @_main_block_kernel(%arg0: i32, %arg1: memref<2x128x64xf32, #tpu.memory_space<vmem>>, %arg2: memref<128x128xbf16, #tpu.memory_space<vmem>>, %arg3: memref<1x128xf32, #tpu.memory_space<vmem>>, %arg4: memref<1664x128xbf16, #tpu.memory_space<vmem>>, %arg5: memref<1x128xf32, #tpu.memory_space<vmem>>, %arg6: memref<1664x128xbf16, #tpu.memory_space<vmem>>, %arg7: memref<1x128xf32, #tpu.memory_space<vmem>>, %arg8: memref<2x64x128xf32, #tpu.memory_space<vmem>>, %arg9: memref<160x128xf32, #tpu.memory_space<vmem>>, %arg10: memref<128x1664xbf16, #tpu.memory_space<vmem>>, %arg11: memref<128x128xf32, #tpu.memory_space<vmem>>) attributes {dimension_semantics = [#tpu.dimension_semantics<arbitrary>], iteration_bounds = array<i64: 1>, scalar_prefetch = 0 : i64, scratch_operands = 3 : i64, tpu.core_type = #tpu.core_type<tc>, window_params = [{pipeline_mode = #tpu.pipeline_mode<synchronous>, transform_indices = @transform_0, window_bounds = array<i64: 2, 128, 64>}, {pipeline_mode = #tpu.pipeline_mode<synchronous>, transform_indices = @transform_1, window_bounds = array<i64: 128, 128>}, {pipeline_mode = #tpu.pipeline_mode<synchronous>, transform_indices = @transform_2, window_bounds = array<i64: 1, 128>}, {pipeline_mode = #tpu.pipeline_mode<synchronous>, transform_indices = @transform_3, window_bounds = array<i64: 1664, 128>}, {pipeline_mode = #tpu.pipeline_mode<synchronous>, transform_indices = @transform_4, window_bounds = array<i64: 1, 128>}, {pipeline_mode = #tpu.pipeline_mode<synchronous>, transform_indices = @transform_5, window_bounds = array<i64: 1664, 128>}, {pipeline_mode = #tpu.pipeline_mode<synchronous>, transform_indices = @transform_6, window_bounds = array<i64: 1, 128>}, {pipeline_mode = #tpu.pipeline_mode<synchronous>, transform_indices = @transform_7, window_bounds = array<i64: 2, 64, 128>}]} {
    %cst = arith.constant 0.000000e+00 : f32
    %0 = vector.broadcast %cst : f32 to vector<160x128xf32>
    %c0 = arith.constant 0 : index
    %c0_0 = arith.constant 0 : index
    %1 = vector.load %arg9[%c0, %c0_0] : memref<160x128xf32, #tpu.memory_space<vmem>>, vector<160x128xf32>
    tpu.vector_store %arg9[%c0, %c0_0], %0 {strides = array<i32>} : memref<160x128xf32, #tpu.memory_space<vmem>>, vector<160x128xf32>,
    %2 = tpu.iota {dimensions = array<i32: 0>} : vector<64x64xi32>
    %3 = tpu.iota {dimensions = array<i32: 1>} : vector<64x64xi32>
    %4 = arith.cmpi eq, %2, %3 : vector<64x64xi32>
    %cst_1 = arith.constant 1.000000e+00 : f32
    %cst_2 = arith.constant 0.000000e+00 : f32
    %5 = vector.broadcast %cst_1 : f32 to vector<64x64xf32>
    %6 = vector.broadcast %cst_2 : f32 to vector<64x64xf32>
    %7 = arith.select %4, %5, %6 : vector<64x64xi1>, vector<64x64xf32>
    %8 = arith.truncf %7 : vector<64x64xf32> to vector<64x64xbf16>
    %c0_3 = arith.constant 0 : index
    %c0_4 = arith.constant 0 : index
    %c0_5 = arith.constant 0 : index
    %9 = vector.load %arg1[%c0_3, %c0_4, %c0_5] : memref<2x128x64xf32, #tpu.memory_space<vmem>>, vector<1x128x64xf32>
    %10 = vector.shape_cast %9 : vector<1x128x64xf32> to vector<128x64xf32>
    %11 = arith.truncf %10 : vector<128x64xf32> to vector<128x64xbf16>
    %cst_6 = arith.constant dense<0.000000e+00> : vector<64x128xf32>
    %12 = tpu.matmul %8, %11, %cst_6 {dimension_numbers = #tpu.dot_dimension_numbers<[1], [1], [0], [0], [0, 0, 1, 0], [], []>} : vector<64x64xbf16>, vector<128x64xbf16>, vector<64x128xf32> -> vector<64x128xf32>
    %c8 = arith.constant 8 : index
    %c0_7 = arith.constant 0 : index
    %13 = vector.load %arg9[%c8, %c0_7] : memref<160x128xf32, #tpu.memory_space<vmem>>, vector<64x128xf32>
    tpu.vector_store %arg9[%c8, %c0_7], %12 {strides = array<i32>} : memref<160x128xf32, #tpu.memory_space<vmem>>, vector<64x128xf32>,
    %14 = arith.truncf %12 : vector<64x128xf32> to vector<64x128xbf16>
    %c0_8 = arith.constant 0 : index
    %c0_9 = arith.constant 0 : index
    %15 = vector.load %arg2[%c0_8, %c0_9] : memref<128x128xbf16, #tpu.memory_space<vmem>>, vector<128x128xbf16>
    %cst_10 = arith.constant dense<0.000000e+00> : vector<64x128xf32>
    %16 = tpu.matmul %14, %15, %cst_10 {dimension_numbers = #tpu.dot_dimension_numbers<[1], [0], [0], [1], [0, 0, 1, 1], [], []>} : vector<64x128xbf16>, vector<128x128xbf16>, vector<64x128xf32> -> vector<64x128xf32>
    %c0_11 = arith.constant 0 : index
    %c0_12 = arith.constant 0 : index
    %17 = vector.load %arg3[%c0_11, %c0_12] : memref<1x128xf32, #tpu.memory_space<vmem>>, vector<1x128xf32>
    %18 = vector.broadcast %17 : vector<1x128xf32> to vector<64x128xf32>
    %19 = arith.addf %16, %18 : vector<64x128xf32>
    %c0_13 = arith.constant 0 : index
    %c0_14 = arith.constant 0 : index
    %20 = vector.load %arg11[%c0_13, %c0_14] : memref<128x128xf32, #tpu.memory_space<vmem>>, vector<64x128xf32>
    tpu.vector_store %arg11[%c0_13, %c0_14], %19 {strides = array<i32>} : memref<128x128xf32, #tpu.memory_space<vmem>>, vector<64x128xf32>,
    %c1 = arith.constant 1 : index
    %c0_15 = arith.constant 0 : index
    %c0_16 = arith.constant 0 : index
    %21 = vector.load %arg1[%c1, %c0_15, %c0_16] : memref<2x128x64xf32, #tpu.memory_space<vmem>>, vector<1x128x64xf32>
    %22 = vector.shape_cast %21 : vector<1x128x64xf32> to vector<128x64xf32>
    %23 = arith.truncf %22 : vector<128x64xf32> to vector<128x64xbf16>
    %cst_17 = arith.constant dense<0.000000e+00> : vector<64x128xf32>
    %24 = tpu.matmul %8, %23, %cst_17 {dimension_numbers = #tpu.dot_dimension_numbers<[1], [1], [0], [0], [0, 0, 1, 0], [], []>} : vector<64x64xbf16>, vector<128x64xbf16>, vector<64x128xf32> -> vector<64x128xf32>
    %c88 = arith.constant 88 : index
    %c0_18 = arith.constant 0 : index
    %25 = vector.load %arg9[%c88, %c0_18] : memref<160x128xf32, #tpu.memory_space<vmem>>, vector<64x128xf32>
    tpu.vector_store %arg9[%c88, %c0_18], %24 {strides = array<i32>} : memref<160x128xf32, #tpu.memory_space<vmem>>, vector<64x128xf32>,
    %26 = arith.truncf %24 : vector<64x128xf32> to vector<64x128xbf16>
    %c0_19 = arith.constant 0 : index
    %c0_20 = arith.constant 0 : index
    %27 = vector.load %arg2[%c0_19, %c0_20] : memref<128x128xbf16, #tpu.memory_space<vmem>>, vector<128x128xbf16>
    %cst_21 = arith.constant dense<0.000000e+00> : vector<64x128xf32>
    %28 = tpu.matmul %26, %27, %cst_21 {dimension_numbers = #tpu.dot_dimension_numbers<[1], [0], [0], [1], [0, 0, 1, 1], [], []>} : vector<64x128xbf16>, vector<128x128xbf16>, vector<64x128xf32> -> vector<64x128xf32>
    %c0_22 = arith.constant 0 : index
    %c0_23 = arith.constant 0 : index
    %29 = vector.load %arg3[%c0_22, %c0_23] : memref<1x128xf32, #tpu.memory_space<vmem>>, vector<1x128xf32>
    %30 = vector.broadcast %29 : vector<1x128xf32> to vector<64x128xf32>
    %31 = arith.addf %28, %30 : vector<64x128xf32>
    %c64 = arith.constant 64 : index
    %c0_24 = arith.constant 0 : index
    %32 = vector.load %arg11[%c64, %c0_24] : memref<128x128xf32, #tpu.memory_space<vmem>>, vector<64x128xf32>
    tpu.vector_store %arg11[%c64, %c0_24], %31 {strides = array<i32>} : memref<128x128xf32, #tpu.memory_space<vmem>>, vector<64x128xf32>,
    %c2 = arith.constant 2 : index
    %c0_25 = arith.constant 0 : index
    %33 = vector.load %arg9[%c2, %c0_25] : memref<160x128xf32, #tpu.memory_space<vmem>>, vector<64x128xf32>
    %34 = arith.truncf %33 : vector<64x128xf32> to vector<64x128xbf16>
    %c0_26 = arith.constant 0 : index
    %c0_27 = arith.constant 0 : index
    %35 = vector.load %arg10[%c0_26, %c0_27] : memref<128x1664xbf16, #tpu.memory_space<vmem>>, vector<64x128xbf16>
    tpu.vector_store %arg10[%c0_26, %c0_27], %34 {strides = array<i32>} : memref<128x1664xbf16, #tpu.memory_space<vmem>>, vector<64x128xbf16>,
    %c82 = arith.constant 82 : index
    %c0_28 = arith.constant 0 : index
    %36 = vector.load %arg9[%c82, %c0_28] : memref<160x128xf32, #tpu.memory_space<vmem>>, vector<64x128xf32>
    %37 = arith.truncf %36 : vector<64x128xf32> to vector<64x128xbf16>
    %c64_29 = arith.constant 64 : index
    %c0_30 = arith.constant 0 : index
    %38 = vector.load %arg10[%c64_29, %c0_30] : memref<128x1664xbf16, #tpu.memory_space<vmem>>, vector<64x128xbf16>
    tpu.vector_store %arg10[%c64_29, %c0_30], %37 {strides = array<i32>} : memref<128x1664xbf16, #tpu.memory_space<vmem>>, vector<64x128xbf16>,
    %c3 = arith.constant 3 : index
    %c0_31 = arith.constant 0 : index
    %39 = vector.load %arg9[%c3, %c0_31] : memref<160x128xf32, #tpu.memory_space<vmem>>, vector<64x128xf32>
    %40 = arith.truncf %39 : vector<64x128xf32> to vector<64x128xbf16>
    %c0_32 = arith.constant 0 : index
    %c128 = arith.constant 128 : index
    %41 = vector.load %arg10[%c0_32, %c128] : memref<128x1664xbf16, #tpu.memory_space<vmem>>, vector<64x128xbf16>
    tpu.vector_store %arg10[%c0_32, %c128], %40 {strides = array<i32>} : memref<128x1664xbf16, #tpu.memory_space<vmem>>, vector<64x128xbf16>,
    %c83 = arith.constant 83 : index
    %c0_33 = arith.constant 0 : index
    %42 = vector.load %arg9[%c83, %c0_33] : memref<160x128xf32, #tpu.memory_space<vmem>>, vector<64x128xf32>
    %43 = arith.truncf %42 : vector<64x128xf32> to vector<64x128xbf16>
    %c64_34 = arith.constant 64 : index
    %c128_35 = arith.constant 128 : index
    %44 = vector.load %arg10[%c64_34, %c128_35] : memref<128x1664xbf16, #tpu.memory_space<vmem>>, vector<64x128xbf16>
    tpu.vector_store %arg10[%c64_34, %c128_35], %43 {strides = array<i32>} : memref<128x1664xbf16, #tpu.memory_space<vmem>>, vector<64x128xbf16>,
    %c4 = arith.constant 4 : index
    %c0_36 = arith.constant 0 : index
    %45 = vector.load %arg9[%c4, %c0_36] : memref<160x128xf32, #tpu.memory_space<vmem>>, vector<64x128xf32>
    %46 = arith.truncf %45 : vector<64x128xf32> to vector<64x128xbf16>
    %c0_37 = arith.constant 0 : index
    %c256 = arith.constant 256 : index
    %47 = vector.load %arg10[%c0_37, %c256] : memref<128x1664xbf16, #tpu.memory_space<vmem>>, vector<64x128xbf16>
    tpu.vector_store %arg10[%c0_37, %c256], %46 {strides = array<i32>} : memref<128x1664xbf16, #tpu.memory_space<vmem>>, vector<64x128xbf16>,
    %c84 = arith.constant 84 : index
    %c0_38 = arith.constant 0 : index
    %48 = vector.load %arg9[%c84, %c0_38] : memref<160x128xf32, #tpu.memory_space<vmem>>, vector<64x128xf32>
    %49 = arith.truncf %48 : vector<64x128xf32> to vector<64x128xbf16>
    %c64_39 = arith.constant 64 : index
    %c256_40 = arith.constant 256 : index
    %50 = vector.load %arg10[%c64_39, %c256_40] : memref<128x1664xbf16, #tpu.memory_space<vmem>>, vector<64x128xbf16>
    tpu.vector_store %arg10[%c64_39, %c256_40], %49 {strides = array<i32>} : memref<128x1664xbf16, #tpu.memory_space<vmem>>, vector<64x128xbf16>,
    %c5 = arith.constant 5 : index
    %c0_41 = arith.constant 0 : index
    %51 = vector.load %arg9[%c5, %c0_41] : memref<160x128xf32, #tpu.memory_space<vmem>>, vector<64x128xf32>
    %52 = arith.truncf %51 : vector<64x128xf32> to vector<64x128xbf16>
    %c0_42 = arith.constant 0 : index
    %c384 = arith.constant 384 : index
    %53 = vector.load %arg10[%c0_42, %c384] : memref<128x1664xbf16, #tpu.memory_space<vmem>>, vector<64x128xbf16>
    tpu.vector_store %arg10[%c0_42, %c384], %52 {strides = array<i32>} : memref<128x1664xbf16, #tpu.memory_space<vmem>>, vector<64x128xbf16>,
    %c85 = arith.constant 85 : index
    %c0_43 = arith.constant 0 : index
    %54 = vector.load %arg9[%c85, %c0_43] : memref<160x128xf32, #tpu.memory_space<vmem>>, vector<64x128xf32>
    %55 = arith.truncf %54 : vector<64x128xf32> to vector<64x128xbf16>
    %c64_44 = arith.constant 64 : index
    %c384_45 = arith.constant 384 : index
    %56 = vector.load %arg10[%c64_44, %c384_45] : memref<128x1664xbf16, #tpu.memory_space<vmem>>, vector<64x128xbf16>
    tpu.vector_store %arg10[%c64_44, %c384_45], %55 {strides = array<i32>} : memref<128x1664xbf16, #tpu.memory_space<vmem>>, vector<64x128xbf16>,
    %c6 = arith.constant 6 : index
    %c0_46 = arith.constant 0 : index
    %57 = vector.load %arg9[%c6, %c0_46] : memref<160x128xf32, #tpu.memory_space<vmem>>, vector<64x128xf32>
    %58 = arith.truncf %57 : vector<64x128xf32> to vector<64x128xbf16>
    %c0_47 = arith.constant 0 : index
    %c512 = arith.constant 512 : index
    %59 = vector.load %arg10[%c0_47, %c512] : memref<128x1664xbf16, #tpu.memory_space<vmem>>, vector<64x128xbf16>
    tpu.vector_store %arg10[%c0_47, %c512], %58 {strides = array<i32>} : memref<128x1664xbf16, #tpu.memory_space<vmem>>, vector<64x128xbf16>,
    %c86 = arith.constant 86 : index
    %c0_48 = arith.constant 0 : index
    %60 = vector.load %arg9[%c86, %c0_48] : memref<160x128xf32, #tpu.memory_space<vmem>>, vector<64x128xf32>
    %61 = arith.truncf %60 : vector<64x128xf32> to vector<64x128xbf16>
    %c64_49 = arith.constant 64 : index
    %c512_50 = arith.constant 512 : index
    %62 = vector.load %arg10[%c64_49, %c512_50] : memref<128x1664xbf16, #tpu.memory_space<vmem>>, vector<64x128xbf16>
    tpu.vector_store %arg10[%c64_49, %c512_50], %61 {strides = array<i32>} : memref<128x1664xbf16, #tpu.memory_space<vmem>>, vector<64x128xbf16>,
    %c7 = arith.constant 7 : index
    %c0_51 = arith.constant 0 : index
    %63 = vector.load %arg9[%c7, %c0_51] : memref<160x128xf32, #tpu.memory_space<vmem>>, vector<64x128xf32>
    %64 = arith.truncf %63 : vector<64x128xf32> to vector<64x128xbf16>
    %c0_52 = arith.constant 0 : index
    %c640 = arith.constant 640 : index
    %65 = vector.load %arg10[%c0_52, %c640] : memref<128x1664xbf16, #tpu.memory_space<vmem>>, vector<64x128xbf16>
    tpu.vector_store %arg10[%c0_52, %c640], %64 {strides = array<i32>} : memref<128x1664xbf16, #tpu.memory_space<vmem>>, vector<64x128xbf16>,
    %c87 = arith.constant 87 : index
    %c0_53 = arith.constant 0 : index
    %66 = vector.load %arg9[%c87, %c0_53] : memref<160x128xf32, #tpu.memory_space<vmem>>, vector<64x128xf32>
    %67 = arith.truncf %66 : vector<64x128xf32> to vector<64x128xbf16>
    %c64_54 = arith.constant 64 : index
    %c640_55 = arith.constant 640 : index
    %68 = vector.load %arg10[%c64_54, %c640_55] : memref<128x1664xbf16, #tpu.memory_space<vmem>>, vector<64x128xbf16>
    tpu.vector_store %arg10[%c64_54, %c640_55], %67 {strides = array<i32>} : memref<128x1664xbf16, #tpu.memory_space<vmem>>, vector<64x128xbf16>,
    %c8_56 = arith.constant 8 : index
    %c0_57 = arith.constant 0 : index
    %69 = vector.load %arg9[%c8_56, %c0_57] : memref<160x128xf32, #tpu.memory_space<vmem>>, vector<64x128xf32>
    %70 = arith.truncf %69 : vector<64x128xf32> to vector<64x128xbf16>
    %c0_58 = arith.constant 0 : index
    %c768 = arith.constant 768 : index
    %71 = vector.load %arg10[%c0_58, %c768] : memref<128x1664xbf16, #tpu.memory_space<vmem>>, vector<64x128xbf16>
    tpu.vector_store %arg10[%c0_58, %c768], %70 {strides = array<i32>} : memref<128x1664xbf16, #tpu.memory_space<vmem>>, vector<64x128xbf16>,
    %c88_59 = arith.constant 88 : index
    %c0_60 = arith.constant 0 : index
    %72 = vector.load %arg9[%c88_59, %c0_60] : memref<160x128xf32, #tpu.memory_space<vmem>>, vector<64x128xf32>
    %73 = arith.truncf %72 : vector<64x128xf32> to vector<64x128xbf16>
    %c64_61 = arith.constant 64 : index
    %c768_62 = arith.constant 768 : index
    %74 = vector.load %arg10[%c64_61, %c768_62] : memref<128x1664xbf16, #tpu.memory_space<vmem>>, vector<64x128xbf16>
    tpu.vector_store %arg10[%c64_61, %c768_62], %73 {strides = array<i32>} : memref<128x1664xbf16, #tpu.memory_space<vmem>>, vector<64x128xbf16>,
    %c9 = arith.constant 9 : index
    %c0_63 = arith.constant 0 : index
    %75 = vector.load %arg9[%c9, %c0_63] : memref<160x128xf32, #tpu.memory_space<vmem>>, vector<64x128xf32>
    %76 = arith.truncf %75 : vector<64x128xf32> to vector<64x128xbf16>
    %c0_64 = arith.constant 0 : index
    %c896 = arith.constant 896 : index
    %77 = vector.load %arg10[%c0_64, %c896] : memref<128x1664xbf16, #tpu.memory_space<vmem>>, vector<64x128xbf16>
    tpu.vector_store %arg10[%c0_64, %c896], %76 {strides = array<i32>} : memref<128x1664xbf16, #tpu.memory_space<vmem>>, vector<64x128xbf16>,
    %c89 = arith.constant 89 : index
    %c0_65 = arith.constant 0 : index
    %78 = vector.load %arg9[%c89, %c0_65] : memref<160x128xf32, #tpu.memory_space<vmem>>, vector<64x128xf32>
    %79 = arith.truncf %78 : vector<64x128xf32> to vector<64x128xbf16>
    %c64_66 = arith.constant 64 : index
    %c896_67 = arith.constant 896 : index
    %80 = vector.load %arg10[%c64_66, %c896_67] : memref<128x1664xbf16, #tpu.memory_space<vmem>>, vector<64x128xbf16>
    tpu.vector_store %arg10[%c64_66, %c896_67], %79 {strides = array<i32>} : memref<128x1664xbf16, #tpu.memory_space<vmem>>, vector<64x128xbf16>,
    %c10 = arith.constant 10 : index
    %c0_68 = arith.constant 0 : index
    %81 = vector.load %arg9[%c10, %c0_68] : memref<160x128xf32, #tpu.memory_space<vmem>>, vector<64x128xf32>
    %82 = arith.truncf %81 : vector<64x128xf32> to vector<64x128xbf16>
    %c0_69 = arith.constant 0 : index
    %c1024 = arith.constant 1024 : index
    %83 = vector.load %arg10[%c0_69, %c1024] : memref<128x1664xbf16, #tpu.memory_space<vmem>>, vector<64x128xbf16>
    tpu.vector_store %arg10[%c0_69, %c1024], %82 {strides = array<i32>} : memref<128x1664xbf16, #tpu.memory_space<vmem>>, vector<64x128xbf16>,
    %c90 = arith.constant 90 : index
    %c0_70 = arith.constant 0 : index
    %84 = vector.load %arg9[%c90, %c0_70] : memref<160x128xf32, #tpu.memory_space<vmem>>, vector<64x128xf32>
    %85 = arith.truncf %84 : vector<64x128xf32> to vector<64x128xbf16>
    %c64_71 = arith.constant 64 : index
    %c1024_72 = arith.constant 1024 : index
    %86 = vector.load %arg10[%c64_71, %c1024_72] : memref<128x1664xbf16, #tpu.memory_space<vmem>>, vector<64x128xbf16>
    tpu.vector_store %arg10[%c64_71, %c1024_72], %85 {strides = array<i32>} : memref<128x1664xbf16, #tpu.memory_space<vmem>>, vector<64x128xbf16>,
    %c11 = arith.constant 11 : index
    %c0_73 = arith.constant 0 : index
    %87 = vector.load %arg9[%c11, %c0_73] : memref<160x128xf32, #tpu.memory_space<vmem>>, vector<64x128xf32>
    %88 = arith.truncf %87 : vector<64x128xf32> to vector<64x128xbf16>
    %c0_74 = arith.constant 0 : index
    %c1152 = arith.constant 1152 : index
    %89 = vector.load %arg10[%c0_74, %c1152] : memref<128x1664xbf16, #tpu.memory_space<vmem>>, vector<64x128xbf16>
    tpu.vector_store %arg10[%c0_74, %c1152], %88 {strides = array<i32>} : memref<128x1664xbf16, #tpu.memory_space<vmem>>, vector<64x128xbf16>,
    %c91 = arith.constant 91 : index
    %c0_75 = arith.constant 0 : index
    %90 = vector.load %arg9[%c91, %c0_75] : memref<160x128xf32, #tpu.memory_space<vmem>>, vector<64x128xf32>
    %91 = arith.truncf %90 : vector<64x128xf32> to vector<64x128xbf16>
    %c64_76 = arith.constant 64 : index
    %c1152_77 = arith.constant 1152 : index
    %92 = vector.load %arg10[%c64_76, %c1152_77] : memref<128x1664xbf16, #tpu.memory_space<vmem>>, vector<64x128xbf16>
    tpu.vector_store %arg10[%c64_76, %c1152_77], %91 {strides = array<i32>} : memref<128x1664xbf16, #tpu.memory_space<vmem>>, vector<64x128xbf16>,
    %c12 = arith.constant 12 : index
    %c0_78 = arith.constant 0 : index
    %93 = vector.load %arg9[%c12, %c0_78] : memref<160x128xf32, #tpu.memory_space<vmem>>, vector<64x128xf32>
    %94 = arith.truncf %93 : vector<64x128xf32> to vector<64x128xbf16>
    %c0_79 = arith.constant 0 : index
    %c1280 = arith.constant 1280 : index
    %95 = vector.load %arg10[%c0_79, %c1280] : memref<128x1664xbf16, #tpu.memory_space<vmem>>, vector<64x128xbf16>
    tpu.vector_store %arg10[%c0_79, %c1280], %94 {strides = array<i32>} : memref<128x1664xbf16, #tpu.memory_space<vmem>>, vector<64x128xbf16>,
    %c92 = arith.constant 92 : index
    %c0_80 = arith.constant 0 : index
    %96 = vector.load %arg9[%c92, %c0_80] : memref<160x128xf32, #tpu.memory_space<vmem>>, vector<64x128xf32>
    %97 = arith.truncf %96 : vector<64x128xf32> to vector<64x128xbf16>
    %c64_81 = arith.constant 64 : index
    %c1280_82 = arith.constant 1280 : index
    %98 = vector.load %arg10[%c64_81, %c1280_82] : memref<128x1664xbf16, #tpu.memory_space<vmem>>, vector<64x128xbf16>
    tpu.vector_store %arg10[%c64_81, %c1280_82], %97 {strides = array<i32>} : memref<128x1664xbf16, #tpu.memory_space<vmem>>, vector<64x128xbf16>,
    %c13 = arith.constant 13 : index
    %c0_83 = arith.constant 0 : index
    %99 = vector.load %arg9[%c13, %c0_83] : memref<160x128xf32, #tpu.memory_space<vmem>>, vector<64x128xf32>
    %100 = arith.truncf %99 : vector<64x128xf32> to vector<64x128xbf16>
    %c0_84 = arith.constant 0 : index
    %c1408 = arith.constant 1408 : index
    %101 = vector.load %arg10[%c0_84, %c1408] : memref<128x1664xbf16, #tpu.memory_space<vmem>>, vector<64x128xbf16>
    tpu.vector_store %arg10[%c0_84, %c1408], %100 {strides = array<i32>} : memref<128x1664xbf16, #tpu.memory_space<vmem>>, vector<64x128xbf16>,
    %c93 = arith.constant 93 : index
    %c0_85 = arith.constant 0 : index
    %102 = vector.load %arg9[%c93, %c0_85] : memref<160x128xf32, #tpu.memory_space<vmem>>, vector<64x128xf32>
    %103 = arith.truncf %102 : vector<64x128xf32> to vector<64x128xbf16>
    %c64_86 = arith.constant 64 : index
    %c1408_87 = arith.constant 1408 : index
    %104 = vector.load %arg10[%c64_86, %c1408_87] : memref<128x1664xbf16, #tpu.memory_space<vmem>>, vector<64x128xbf16>
    tpu.vector_store %arg10[%c64_86, %c1408_87], %103 {strides = array<i32>} : memref<128x1664xbf16, #tpu.memory_space<vmem>>, vector<64x128xbf16>,
    %c14 = arith.constant 14 : index
    %c0_88 = arith.constant 0 : index
    %105 = vector.load %arg9[%c14, %c0_88] : memref<160x128xf32, #tpu.memory_space<vmem>>, vector<64x128xf32>
    %106 = arith.truncf %105 : vector<64x128xf32> to vector<64x128xbf16>
    %c0_89 = arith.constant 0 : index
    %c1536 = arith.constant 1536 : index
    %107 = vector.load %arg10[%c0_89, %c1536] : memref<128x1664xbf16, #tpu.memory_space<vmem>>, vector<64x128xbf16>
    tpu.vector_store %arg10[%c0_89, %c1536], %106 {strides = array<i32>} : memref<128x1664xbf16, #tpu.memory_space<vmem>>, vector<64x128xbf16>,
    %c94 = arith.constant 94 : index
    %c0_90 = arith.constant 0 : index
    %108 = vector.load %arg9[%c94, %c0_90] : memref<160x128xf32, #tpu.memory_space<vmem>>, vector<64x128xf32>
    %109 = arith.truncf %108 : vector<64x128xf32> to vector<64x128xbf16>
    %c64_91 = arith.constant 64 : index
    %c1536_92 = arith.constant 1536 : index
    %110 = vector.load %arg10[%c64_91, %c1536_92] : memref<128x1664xbf16, #tpu.memory_space<vmem>>, vector<64x128xbf16>
    tpu.vector_store %arg10[%c64_91, %c1536_92], %109 {strides = array<i32>} : memref<128x1664xbf16, #tpu.memory_space<vmem>>, vector<64x128xbf16>,
    %c0_93 = arith.constant 0 : index
    %c0_94 = arith.constant 0 : index
    %111 = vector.load %arg10[%c0_93, %c0_94] : memref<128x1664xbf16, #tpu.memory_space<vmem>>, vector<128x1664xbf16>
    %c0_95 = arith.constant 0 : index
    %c0_96 = arith.constant 0 : index
    %112 = vector.load %arg4[%c0_95, %c0_96] : memref<1664x128xbf16, #tpu.memory_space<vmem>>, vector<1664x128xbf16>
    %cst_97 = arith.constant dense<0.000000e+00> : vector<128x128xf32>
    %113 = tpu.matmul %111, %112, %cst_97 {dimension_numbers = #tpu.dot_dimension_numbers<[1], [0], [0], [1], [0, 0, 1, 1], [], []>} : vector<128x1664xbf16>, vector<1664x128xbf16>, vector<128x128xf32> -> vector<128x128xf32>
    %c0_98 = arith.constant 0 : index
    %c0_99 = arith.constant 0 : index
    %114 = vector.load %arg5[%c0_98, %c0_99] : memref<1x128xf32, #tpu.memory_space<vmem>>, vector<1x128xf32>
    %115 = vector.broadcast %114 : vector<1x128xf32> to vector<128x128xf32>
    %116 = arith.addf %113, %115 : vector<128x128xf32>
    %cst_100 = arith.constant 0.000000e+00 : f32
    %117 = vector.broadcast %cst_100 : f32 to vector<128x128xf32>
    %118 = arith.maximumf %116, %117 : vector<128x128xf32>
    %119 = vector.extract_strided_slice %118 {offsets = [0, 0], sizes = [64, 128], strides = [1, 1]} : vector<128x128xf32> to vector<64x128xf32>
    %c8_101 = arith.constant 8 : index
    %c0_102 = arith.constant 0 : index
    %120 = vector.load %arg9[%c8_101, %c0_102] : memref<160x128xf32, #tpu.memory_space<vmem>>, vector<64x128xf32>
    tpu.vector_store %arg9[%c8_101, %c0_102], %119 {strides = array<i32>} : memref<160x128xf32, #tpu.memory_space<vmem>>, vector<64x128xf32>,
    %121 = vector.extract_strided_slice %118 {offsets = [64, 0], sizes = [64, 128], strides = [1, 1]} : vector<128x128xf32> to vector<64x128xf32>
    %c88_103 = arith.constant 88 : index
    %c0_104 = arith.constant 0 : index
    %122 = vector.load %arg9[%c88_103, %c0_104] : memref<160x128xf32, #tpu.memory_space<vmem>>, vector<64x128xf32>
    tpu.vector_store %arg9[%c88_103, %c0_104], %121 {strides = array<i32>} : memref<160x128xf32, #tpu.memory_space<vmem>>, vector<64x128xf32>,
    %c2_105 = arith.constant 2 : index
    %c0_106 = arith.constant 0 : index
    %123 = vector.load %arg9[%c2_105, %c0_106] : memref<160x128xf32, #tpu.memory_space<vmem>>, vector<64x128xf32>
    %124 = arith.truncf %123 : vector<64x128xf32> to vector<64x128xbf16>
    %c0_107 = arith.constant 0 : index
    %c0_108 = arith.constant 0 : index
    %125 = vector.load %arg10[%c0_107, %c0_108] : memref<128x1664xbf16, #tpu.memory_space<vmem>>, vector<64x128xbf16>
    tpu.vector_store %arg10[%c0_107, %c0_108], %124 {strides = array<i32>} : memref<128x1664xbf16, #tpu.memory_space<vmem>>, vector<64x128xbf16>,
    %c82_109 = arith.constant 82 : index
    %c0_110 = arith.constant 0 : index
    %126 = vector.load %arg9[%c82_109, %c0_110] : memref<160x128xf32, #tpu.memory_space<vmem>>, vector<64x128xf32>
    %127 = arith.truncf %126 : vector<64x128xf32> to vector<64x128xbf16>
    %c64_111 = arith.constant 64 : index
    %c0_112 = arith.constant 0 : index
    %128 = vector.load %arg10[%c64_111, %c0_112] : memref<128x1664xbf16, #tpu.memory_space<vmem>>, vector<64x128xbf16>
    tpu.vector_store %arg10[%c64_111, %c0_112], %127 {strides = array<i32>} : memref<128x1664xbf16, #tpu.memory_space<vmem>>, vector<64x128xbf16>,
    %c3_113 = arith.constant 3 : index
    %c0_114 = arith.constant 0 : index
    %129 = vector.load %arg9[%c3_113, %c0_114] : memref<160x128xf32, #tpu.memory_space<vmem>>, vector<64x128xf32>
    %130 = arith.truncf %129 : vector<64x128xf32> to vector<64x128xbf16>
    %c0_115 = arith.constant 0 : index
    %c128_116 = arith.constant 128 : index
    %131 = vector.load %arg10[%c0_115, %c128_116] : memref<128x1664xbf16, #tpu.memory_space<vmem>>, vector<64x128xbf16>
    tpu.vector_store %arg10[%c0_115, %c128_116], %130 {strides = array<i32>} : memref<128x1664xbf16, #tpu.memory_space<vmem>>, vector<64x128xbf16>,
    %c83_117 = arith.constant 83 : index
    %c0_118 = arith.constant 0 : index
    %132 = vector.load %arg9[%c83_117, %c0_118] : memref<160x128xf32, #tpu.memory_space<vmem>>, vector<64x128xf32>
    %133 = arith.truncf %132 : vector<64x128xf32> to vector<64x128xbf16>
    %c64_119 = arith.constant 64 : index
    %c128_120 = arith.constant 128 : index
    %134 = vector.load %arg10[%c64_119, %c128_120] : memref<128x1664xbf16, #tpu.memory_space<vmem>>, vector<64x128xbf16>
    tpu.vector_store %arg10[%c64_119, %c128_120], %133 {strides = array<i32>} : memref<128x1664xbf16, #tpu.memory_space<vmem>>, vector<64x128xbf16>,
    %c4_121 = arith.constant 4 : index
    %c0_122 = arith.constant 0 : index
    %135 = vector.load %arg9[%c4_121, %c0_122] : memref<160x128xf32, #tpu.memory_space<vmem>>, vector<64x128xf32>
    %136 = arith.truncf %135 : vector<64x128xf32> to vector<64x128xbf16>
    %c0_123 = arith.constant 0 : index
    %c256_124 = arith.constant 256 : index
    %137 = vector.load %arg10[%c0_123, %c256_124] : memref<128x1664xbf16, #tpu.memory_space<vmem>>, vector<64x128xbf16>
    tpu.vector_store %arg10[%c0_123, %c256_124], %136 {strides = array<i32>} : memref<128x1664xbf16, #tpu.memory_space<vmem>>, vector<64x128xbf16>,
    %c84_125 = arith.constant 84 : index
    %c0_126 = arith.constant 0 : index
    %138 = vector.load %arg9[%c84_125, %c0_126] : memref<160x128xf32, #tpu.memory_space<vmem>>, vector<64x128xf32>
    %139 = arith.truncf %138 : vector<64x128xf32> to vector<64x128xbf16>
    %c64_127 = arith.constant 64 : index
    %c256_128 = arith.constant 256 : index
    %140 = vector.load %arg10[%c64_127, %c256_128] : memref<128x1664xbf16, #tpu.memory_space<vmem>>, vector<64x128xbf16>
    tpu.vector_store %arg10[%c64_127, %c256_128], %139 {strides = array<i32>} : memref<128x1664xbf16, #tpu.memory_space<vmem>>, vector<64x128xbf16>,
    %c5_129 = arith.constant 5 : index
    %c0_130 = arith.constant 0 : index
    %141 = vector.load %arg9[%c5_129, %c0_130] : memref<160x128xf32, #tpu.memory_space<vmem>>, vector<64x128xf32>
    %142 = arith.truncf %141 : vector<64x128xf32> to vector<64x128xbf16>
    %c0_131 = arith.constant 0 : index
    %c384_132 = arith.constant 384 : index
    %143 = vector.load %arg10[%c0_131, %c384_132] : memref<128x1664xbf16, #tpu.memory_space<vmem>>, vector<64x128xbf16>
    tpu.vector_store %arg10[%c0_131, %c384_132], %142 {strides = array<i32>} : memref<128x1664xbf16, #tpu.memory_space<vmem>>, vector<64x128xbf16>,
    %c85_133 = arith.constant 85 : index
    %c0_134 = arith.constant 0 : index
    %144 = vector.load %arg9[%c85_133, %c0_134] : memref<160x128xf32, #tpu.memory_space<vmem>>, vector<64x128xf32>
    %145 = arith.truncf %144 : vector<64x128xf32> to vector<64x128xbf16>
    %c64_135 = arith.constant 64 : index
    %c384_136 = arith.constant 384 : index
    %146 = vector.load %arg10[%c64_135, %c384_136] : memref<128x1664xbf16, #tpu.memory_space<vmem>>, vector<64x128xbf16>
    tpu.vector_store %arg10[%c64_135, %c384_136], %145 {strides = array<i32>} : memref<128x1664xbf16, #tpu.memory_space<vmem>>, vector<64x128xbf16>,
    %c6_137 = arith.constant 6 : index
    %c0_138 = arith.constant 0 : index
    %147 = vector.load %arg9[%c6_137, %c0_138] : memref<160x128xf32, #tpu.memory_space<vmem>>, vector<64x128xf32>
    %148 = arith.truncf %147 : vector<64x128xf32> to vector<64x128xbf16>
    %c0_139 = arith.constant 0 : index
    %c512_140 = arith.constant 512 : index
    %149 = vector.load %arg10[%c0_139, %c512_140] : memref<128x1664xbf16, #tpu.memory_space<vmem>>, vector<64x128xbf16>
    tpu.vector_store %arg10[%c0_139, %c512_140], %148 {strides = array<i32>} : memref<128x1664xbf16, #tpu.memory_space<vmem>>, vector<64x128xbf16>,
    %c86_141 = arith.constant 86 : index
    %c0_142 = arith.constant 0 : index
    %150 = vector.load %arg9[%c86_141, %c0_142] : memref<160x128xf32, #tpu.memory_space<vmem>>, vector<64x128xf32>
    %151 = arith.truncf %150 : vector<64x128xf32> to vector<64x128xbf16>
    %c64_143 = arith.constant 64 : index
    %c512_144 = arith.constant 512 : index
    %152 = vector.load %arg10[%c64_143, %c512_144] : memref<128x1664xbf16, #tpu.memory_space<vmem>>, vector<64x128xbf16>
    tpu.vector_store %arg10[%c64_143, %c512_144], %151 {strides = array<i32>} : memref<128x1664xbf16, #tpu.memory_space<vmem>>, vector<64x128xbf16>,
    %c7_145 = arith.constant 7 : index
    %c0_146 = arith.constant 0 : index
    %153 = vector.load %arg9[%c7_145, %c0_146] : memref<160x128xf32, #tpu.memory_space<vmem>>, vector<64x128xf32>
    %154 = arith.truncf %153 : vector<64x128xf32> to vector<64x128xbf16>
    %c0_147 = arith.constant 0 : index
    %c640_148 = arith.constant 640 : index
    %155 = vector.load %arg10[%c0_147, %c640_148] : memref<128x1664xbf16, #tpu.memory_space<vmem>>, vector<64x128xbf16>
    tpu.vector_store %arg10[%c0_147, %c640_148], %154 {strides = array<i32>} : memref<128x1664xbf16, #tpu.memory_space<vmem>>, vector<64x128xbf16>,
    %c87_149 = arith.constant 87 : index
    %c0_150 = arith.constant 0 : index
    %156 = vector.load %arg9[%c87_149, %c0_150] : memref<160x128xf32, #tpu.memory_space<vmem>>, vector<64x128xf32>
    %157 = arith.truncf %156 : vector<64x128xf32> to vector<64x128xbf16>
    %c64_151 = arith.constant 64 : index
    %c640_152 = arith.constant 640 : index
    %158 = vector.load %arg10[%c64_151, %c640_152] : memref<128x1664xbf16, #tpu.memory_space<vmem>>, vector<64x128xbf16>
    tpu.vector_store %arg10[%c64_151, %c640_152], %157 {strides = array<i32>} : memref<128x1664xbf16, #tpu.memory_space<vmem>>, vector<64x128xbf16>,
    %c8_153 = arith.constant 8 : index
    %c0_154 = arith.constant 0 : index
    %159 = vector.load %arg9[%c8_153, %c0_154] : memref<160x128xf32, #tpu.memory_space<vmem>>, vector<64x128xf32>
    %160 = arith.truncf %159 : vector<64x128xf32> to vector<64x128xbf16>
    %c0_155 = arith.constant 0 : index
    %c768_156 = arith.constant 768 : index
    %161 = vector.load %arg10[%c0_155, %c768_156] : memref<128x1664xbf16, #tpu.memory_space<vmem>>, vector<64x128xbf16>
    tpu.vector_store %arg10[%c0_155, %c768_156], %160 {strides = array<i32>} : memref<128x1664xbf16, #tpu.memory_space<vmem>>, vector<64x128xbf16>,
    %c88_157 = arith.constant 88 : index
    %c0_158 = arith.constant 0 : index
    %162 = vector.load %arg9[%c88_157, %c0_158] : memref<160x128xf32, #tpu.memory_space<vmem>>, vector<64x128xf32>
    %163 = arith.truncf %162 : vector<64x128xf32> to vector<64x128xbf16>
    %c64_159 = arith.constant 64 : index
    %c768_160 = arith.constant 768 : index
    %164 = vector.load %arg10[%c64_159, %c768_160] : memref<128x1664xbf16, #tpu.memory_space<vmem>>, vector<64x128xbf16>
    tpu.vector_store %arg10[%c64_159, %c768_160], %163 {strides = array<i32>} : memref<128x1664xbf16, #tpu.memory_space<vmem>>, vector<64x128xbf16>,
    %c9_161 = arith.constant 9 : index
    %c0_162 = arith.constant 0 : index
    %165 = vector.load %arg9[%c9_161, %c0_162] : memref<160x128xf32, #tpu.memory_space<vmem>>, vector<64x128xf32>
    %166 = arith.truncf %165 : vector<64x128xf32> to vector<64x128xbf16>
    %c0_163 = arith.constant 0 : index
    %c896_164 = arith.constant 896 : index
    %167 = vector.load %arg10[%c0_163, %c896_164] : memref<128x1664xbf16, #tpu.memory_space<vmem>>, vector<64x128xbf16>
    tpu.vector_store %arg10[%c0_163, %c896_164], %166 {strides = array<i32>} : memref<128x1664xbf16, #tpu.memory_space<vmem>>, vector<64x128xbf16>,
    %c89_165 = arith.constant 89 : index
    %c0_166 = arith.constant 0 : index
    %168 = vector.load %arg9[%c89_165, %c0_166] : memref<160x128xf32, #tpu.memory_space<vmem>>, vector<64x128xf32>
    %169 = arith.truncf %168 : vector<64x128xf32> to vector<64x128xbf16>
    %c64_167 = arith.constant 64 : index
    %c896_168 = arith.constant 896 : index
    %170 = vector.load %arg10[%c64_167, %c896_168] : memref<128x1664xbf16, #tpu.memory_space<vmem>>, vector<64x128xbf16>
    tpu.vector_store %arg10[%c64_167, %c896_168], %169 {strides = array<i32>} : memref<128x1664xbf16, #tpu.memory_space<vmem>>, vector<64x128xbf16>,
    %c10_169 = arith.constant 10 : index
    %c0_170 = arith.constant 0 : index
    %171 = vector.load %arg9[%c10_169, %c0_170] : memref<160x128xf32, #tpu.memory_space<vmem>>, vector<64x128xf32>
    %172 = arith.truncf %171 : vector<64x128xf32> to vector<64x128xbf16>
    %c0_171 = arith.constant 0 : index
    %c1024_172 = arith.constant 1024 : index
    %173 = vector.load %arg10[%c0_171, %c1024_172] : memref<128x1664xbf16, #tpu.memory_space<vmem>>, vector<64x128xbf16>
    tpu.vector_store %arg10[%c0_171, %c1024_172], %172 {strides = array<i32>} : memref<128x1664xbf16, #tpu.memory_space<vmem>>, vector<64x128xbf16>,
    %c90_173 = arith.constant 90 : index
    %c0_174 = arith.constant 0 : index
    %174 = vector.load %arg9[%c90_173, %c0_174] : memref<160x128xf32, #tpu.memory_space<vmem>>, vector<64x128xf32>
    %175 = arith.truncf %174 : vector<64x128xf32> to vector<64x128xbf16>
    %c64_175 = arith.constant 64 : index
    %c1024_176 = arith.constant 1024 : index
    %176 = vector.load %arg10[%c64_175, %c1024_176] : memref<128x1664xbf16, #tpu.memory_space<vmem>>, vector<64x128xbf16>
    tpu.vector_store %arg10[%c64_175, %c1024_176], %175 {strides = array<i32>} : memref<128x1664xbf16, #tpu.memory_space<vmem>>, vector<64x128xbf16>,
    %c11_177 = arith.constant 11 : index
    %c0_178 = arith.constant 0 : index
    %177 = vector.load %arg9[%c11_177, %c0_178] : memref<160x128xf32, #tpu.memory_space<vmem>>, vector<64x128xf32>
    %178 = arith.truncf %177 : vector<64x128xf32> to vector<64x128xbf16>
    %c0_179 = arith.constant 0 : index
    %c1152_180 = arith.constant 1152 : index
    %179 = vector.load %arg10[%c0_179, %c1152_180] : memref<128x1664xbf16, #tpu.memory_space<vmem>>, vector<64x128xbf16>
    tpu.vector_store %arg10[%c0_179, %c1152_180], %178 {strides = array<i32>} : memref<128x1664xbf16, #tpu.memory_space<vmem>>, vector<64x128xbf16>,
    %c91_181 = arith.constant 91 : index
    %c0_182 = arith.constant 0 : index
    %180 = vector.load %arg9[%c91_181, %c0_182] : memref<160x128xf32, #tpu.memory_space<vmem>>, vector<64x128xf32>
    %181 = arith.truncf %180 : vector<64x128xf32> to vector<64x128xbf16>
    %c64_183 = arith.constant 64 : index
    %c1152_184 = arith.constant 1152 : index
    %182 = vector.load %arg10[%c64_183, %c1152_184] : memref<128x1664xbf16, #tpu.memory_space<vmem>>, vector<64x128xbf16>
    tpu.vector_store %arg10[%c64_183, %c1152_184], %181 {strides = array<i32>} : memref<128x1664xbf16, #tpu.memory_space<vmem>>, vector<64x128xbf16>,
    %c12_185 = arith.constant 12 : index
    %c0_186 = arith.constant 0 : index
    %183 = vector.load %arg9[%c12_185, %c0_186] : memref<160x128xf32, #tpu.memory_space<vmem>>, vector<64x128xf32>
    %184 = arith.truncf %183 : vector<64x128xf32> to vector<64x128xbf16>
    %c0_187 = arith.constant 0 : index
    %c1280_188 = arith.constant 1280 : index
    %185 = vector.load %arg10[%c0_187, %c1280_188] : memref<128x1664xbf16, #tpu.memory_space<vmem>>, vector<64x128xbf16>
    tpu.vector_store %arg10[%c0_187, %c1280_188], %184 {strides = array<i32>} : memref<128x1664xbf16, #tpu.memory_space<vmem>>, vector<64x128xbf16>,
    %c92_189 = arith.constant 92 : index
    %c0_190 = arith.constant 0 : index
    %186 = vector.load %arg9[%c92_189, %c0_190] : memref<160x128xf32, #tpu.memory_space<vmem>>, vector<64x128xf32>
    %187 = arith.truncf %186 : vector<64x128xf32> to vector<64x128xbf16>
    %c64_191 = arith.constant 64 : index
    %c1280_192 = arith.constant 1280 : index
    %188 = vector.load %arg10[%c64_191, %c1280_192] : memref<128x1664xbf16, #tpu.memory_space<vmem>>, vector<64x128xbf16>
    tpu.vector_store %arg10[%c64_191, %c1280_192], %187 {strides = array<i32>} : memref<128x1664xbf16, #tpu.memory_space<vmem>>, vector<64x128xbf16>,
    %c13_193 = arith.constant 13 : index
    %c0_194 = arith.constant 0 : index
    %189 = vector.load %arg9[%c13_193, %c0_194] : memref<160x128xf32, #tpu.memory_space<vmem>>, vector<64x128xf32>
    %190 = arith.truncf %189 : vector<64x128xf32> to vector<64x128xbf16>
    %c0_195 = arith.constant 0 : index
    %c1408_196 = arith.constant 1408 : index
    %191 = vector.load %arg10[%c0_195, %c1408_196] : memref<128x1664xbf16, #tpu.memory_space<vmem>>, vector<64x128xbf16>
    tpu.vector_store %arg10[%c0_195, %c1408_196], %190 {strides = array<i32>} : memref<128x1664xbf16, #tpu.memory_space<vmem>>, vector<64x128xbf16>,
    %c93_197 = arith.constant 93 : index
    %c0_198 = arith.constant 0 : index
    %192 = vector.load %arg9[%c93_197, %c0_198] : memref<160x128xf32, #tpu.memory_space<vmem>>, vector<64x128xf32>
    %193 = arith.truncf %192 : vector<64x128xf32> to vector<64x128xbf16>
    %c64_199 = arith.constant 64 : index
    %c1408_200 = arith.constant 1408 : index
    %194 = vector.load %arg10[%c64_199, %c1408_200] : memref<128x1664xbf16, #tpu.memory_space<vmem>>, vector<64x128xbf16>
    tpu.vector_store %arg10[%c64_199, %c1408_200], %193 {strides = array<i32>} : memref<128x1664xbf16, #tpu.memory_space<vmem>>, vector<64x128xbf16>,
    %c14_201 = arith.constant 14 : index
    %c0_202 = arith.constant 0 : index
    %195 = vector.load %arg9[%c14_201, %c0_202] : memref<160x128xf32, #tpu.memory_space<vmem>>, vector<64x128xf32>
    %196 = arith.truncf %195 : vector<64x128xf32> to vector<64x128xbf16>
    %c0_203 = arith.constant 0 : index
    %c1536_204 = arith.constant 1536 : index
    %197 = vector.load %arg10[%c0_203, %c1536_204] : memref<128x1664xbf16, #tpu.memory_space<vmem>>, vector<64x128xbf16>
    tpu.vector_store %arg10[%c0_203, %c1536_204], %196 {strides = array<i32>} : memref<128x1664xbf16, #tpu.memory_space<vmem>>, vector<64x128xbf16>,
    %c94_205 = arith.constant 94 : index
    %c0_206 = arith.constant 0 : index
    %198 = vector.load %arg9[%c94_205, %c0_206] : memref<160x128xf32, #tpu.memory_space<vmem>>, vector<64x128xf32>
    %199 = arith.truncf %198 : vector<64x128xf32> to vector<64x128xbf16>
    %c64_207 = arith.constant 64 : index
    %c1536_208 = arith.constant 1536 : index
    %200 = vector.load %arg10[%c64_207, %c1536_208] : memref<128x1664xbf16, #tpu.memory_space<vmem>>, vector<64x128xbf16>
    tpu.vector_store %arg10[%c64_207, %c1536_208], %199 {strides = array<i32>} : memref<128x1664xbf16, #tpu.memory_space<vmem>>, vector<64x128xbf16>,
    %c0_209 = arith.constant 0 : index
    %c0_210 = arith.constant 0 : index
    %201 = vector.load %arg10[%c0_209, %c0_210] : memref<128x1664xbf16, #tpu.memory_space<vmem>>, vector<128x1664xbf16>
    %c0_211 = arith.constant 0 : index
    %c0_212 = arith.constant 0 : index
    %202 = vector.load %arg6[%c0_211, %c0_212] : memref<1664x128xbf16, #tpu.memory_space<vmem>>, vector<1664x128xbf16>
    %cst_213 = arith.constant dense<0.000000e+00> : vector<128x128xf32>
    %203 = tpu.matmul %201, %202, %cst_213 {dimension_numbers = #tpu.dot_dimension_numbers<[1], [0], [0], [1], [0, 0, 1, 1], [], []>} : vector<128x1664xbf16>, vector<1664x128xbf16>, vector<128x128xf32> -> vector<128x128xf32>
    %c0_214 = arith.constant 0 : index
    %c0_215 = arith.constant 0 : index
    %204 = vector.load %arg7[%c0_214, %c0_215] : memref<1x128xf32, #tpu.memory_space<vmem>>, vector<1x128xf32>
    %205 = vector.broadcast %204 : vector<1x128xf32> to vector<128x128xf32>
    %206 = arith.addf %203, %205 : vector<128x128xf32>
    %c0_216 = arith.constant 0 : index
    %c0_217 = arith.constant 0 : index
    %207 = vector.load %arg11[%c0_216, %c0_217] : memref<128x128xf32, #tpu.memory_space<vmem>>, vector<128x128xf32>
    %208 = arith.addf %206, %207 : vector<128x128xf32>
    %cst_218 = arith.constant 0.000000e+00 : f32
    %209 = vector.broadcast %cst_218 : f32 to vector<128x128xf32>
    %210 = arith.maximumf %208, %209 : vector<128x128xf32>
    %211 = vector.extract_strided_slice %210 {offsets = [0, 0], sizes = [64, 128], strides = [1, 1]} : vector<128x128xf32> to vector<64x128xf32>
    %c0_219 = arith.constant 0 : index
    %c0_220 = arith.constant 0 : index
    %c0_221 = arith.constant 0 : index
    %212 = vector.load %arg8[%c0_219, %c0_220, %c0_221] : memref<2x64x128xf32, #tpu.memory_space<vmem>>, vector<1x64x128xf32>
    %213 = vector.shape_cast %212 : vector<1x64x128xf32> to vector<64x128xf32>
    %214 = vector.shape_cast %211 : vector<64x128xf32> to vector<1x64x128xf32>
    tpu.vector_store %arg8[%c0_219, %c0_220, %c0_221], %214 {strides = array<i32>} : memref<2x64x128xf32, #tpu.memory_space<vmem>>, vector<1x64x128xf32>,
    %215 = vector.extract_strided_slice %210 {offsets = [64, 0], sizes = [64, 128], strides = [1, 1]} : vector<128x128xf32> to vector<64x128xf32>
    %c1_222 = arith.constant 1 : index
    %c0_223 = arith.constant 0 : index
    %c0_224 = arith.constant 0 : index
    %216 = vector.load %arg8[%c1_222, %c0_223, %c0_224] : memref<2x64x128xf32, #tpu.memory_space<vmem>>, vector<1x64x128xf32>
    %217 = vector.shape_cast %216 : vector<1x64x128xf32> to vector<64x128xf32>
    %218 = vector.shape_cast %215 : vector<64x128xf32> to vector<1x64x128xf32>
    tpu.vector_store %arg8[%c1_222, %c0_223, %c0_224], %218 {strides = array<i32>} : memref<2x64x128xf32, #tpu.memory_space<vmem>>, vector<1x64x128xf32>,
    return
  }
  func.func @transform_0(%arg0: i32) -> (i32, i32, i32) {
    %c0_i32 = arith.constant 0 : i32
    %c0_i32_0 = arith.constant 0 : i32
    %c0_i32_1 = arith.constant 0 : i32
    %c0_i32_2 = arith.constant 0 : i32
    return %c0_i32, %c0_i32_0, %c0_i32_1 : i32, i32, i32
  }
  func.func @transform_1(%arg0: i32) -> (i32, i32) {
    %c0_i32 = arith.constant 0 : i32
    %c0_i32_0 = arith.constant 0 : i32
    %c0_i32_1 = arith.constant 0 : i32
    return %c0_i32, %c0_i32_0 : i32, i32
  }
  func.func @transform_2(%arg0: i32) -> (i32, i32) {
    %c0_i32 = arith.constant 0 : i32
    %c0_i32_0 = arith.constant 0 : i32
    %c0_i32_1 = arith.constant 0 : i32
    return %c0_i32, %c0_i32_0 : i32, i32
  }
  func.func @transform_3(%arg0: i32) -> (i32, i32) {
    %c0_i32 = arith.constant 0 : i32
    %c0_i32_0 = arith.constant 0 : i32
    %c0_i32_1 = arith.constant 0 : i32
    return %c0_i32, %c0_i32_0 : i32, i32
  }
  func.func @transform_4(%arg0: i32) -> (i32, i32) {
    %c0_i32 = arith.constant 0 : i32
    %c0_i32_0 = arith.constant 0 : i32
    %c0_i32_1 = arith.constant 0 : i32
    return %c0_i32, %c0_i32_0 : i32, i32
  }
  func.func @transform_5(%arg0: i32) -> (i32, i32) {
    %c0_i32 = arith.constant 0 : i32
    %c0_i32_0 = arith.constant 0 : i32
    %c0_i32_1 = arith.constant 0 : i32
    return %c0_i32, %c0_i32_0 : i32, i32
  }
  func.func @transform_6(%arg0: i32) -> (i32, i32) {
    %c0_i32 = arith.constant 0 : i32
    %c0_i32_0 = arith.constant 0 : i32
    %c0_i32_1 = arith.constant 0 : i32
    return %c0_i32, %c0_i32_0 : i32, i32
  }
  func.func @transform_7(%arg0: i32) -> (i32, i32, i32) {
    %c0_i32 = arith.constant 0 : i32
    %c0_i32_0 = arith.constant 0 : i32
    %c0_i32_1 = arith.constant 0 : i32
    %c0_i32_2 = arith.constant 0 : i32
    return %c0_i32, %c0_i32_0, %c0_i32_1 : i32, i32, i32
  }
}

</mosaic_0001>

<bundles_post_ra>
// kernel: main_block_forward.1
= control target key start
LH: loop header
LB: loop body
LE: loop exit
PB: predicated region body
PF: predicated region fallthrough
CT: control target
= control target key end

     0   :  { %12 = vsyncpa [#allocation6], 0  ;;  %s11545_s0 = inlined_call_operand.vmem [shape: f32[2,128,64], index: 0, kind: input, shape index: {}]   ;;  %s11546_s1 = inlined_call_operand.vmem [shape: bf16[128,128], index: 1, kind: input, shape index: {}]   ;;  %s11547_s2 = inlined_call_operand.vmem [shape: f32[1,128], index: 2, kind: input, shape index: {}]   ;;  %s11548_s3 = inlined_call_operand.hbm [shape: bf16[1664,128], index: 3, kind: input, shape index: {}]   ;;  %s11549_s4 = inlined_call_operand.vmem [shape: f32[1,128], index: 4, kind: input, shape index: {}]   ;;  %s11550_s5 = inlined_call_operand.hbm [shape: bf16[1664,128], index: 5, kind: input, shape index: {}]   ;;  %s11551_s6 = inlined_call_operand.vmem [shape: f32[1,128], index: 6, kind: input, shape index: {}]   ;;  %s11552_s7 = inlined_call_operand.hbm [shape: f32[2,64,128], index: 7, kind: output, shape index: {}]  }
   0x1   :  { %13 = vsyncpa [#allocation9], 0 }
   0x2   :  { %14 = vsyncpa [#allocation7], 0  ;;  %s10504_s24 = smov [#allocation5]  }
   0x3   :  { %s26_s25 = sshll.u32 %s10504_s24, 4  ;;  %s27_s25 = int_to_ptr.vmem [resolvable:$true] %s26_s25 }
   0x4   :  { %s10446_s26 = scalar_lea.vmem %s27_s25, 13312  ;;  %p10451_p1 = scmp.lt.s32.totalorder %s27_s25, %s27_s25 }
   0x5   :  { %p10447_p0 = scmp.ne.s32.totalorder %s27_s25, %s10446_s26  ;;  %p10452_p2 = scmp.lt.s32.totalorder %s10446_s26, %s10446_s26 }
   0x7   :  { %p10453_p3 = por %p10452_p2, %p10451_p1 }
   0x9   :  { %p10454_p4 = pnand %p10453_p3, %p10447_p0 }
   0xb   :  { %10457 = shalt.err (!%p10454_p4)
}
   0xc   :  { %s10505_s27 = smov 64   ;;  %s10506_s28 = smov 4  }
   0xd   :  { %32 = dma.hbm_to_vmem [thread:$0]  %s11548_s3, 13312, %s27_s25, [#allocation6], %s10505_s27, %s10505_s27, %s10506_s28  }
   0xe   :  { %s10507_s8 = smov [#allocation8]  }
   0xf   :  { %s40_s9 = sshll.u32 %s10507_s8, 4  ;;  %s41_s9 = int_to_ptr.vmem [resolvable:$true] %s40_s9 }
  0x10   :  { %s10466_s10 = scalar_lea.vmem %s41_s9, 13312  ;;  %p10471_p6 = scmp.lt.s32.totalorder %s41_s9, %s41_s9 }
  0x11   :  { %p10467_p5 = scmp.ne.s32.totalorder %s41_s9, %s10466_s10  ;;  %p10472_p7 = scmp.lt.s32.totalorder %s10466_s10, %s10466_s10 }
  0x13   :  { %p10473_p8 = por %p10472_p7, %p10471_p6 }
  0x15   :  { %p10474_p9 = pnand %p10473_p8, %p10467_p5 }
  0x17   :  { %10477 = shalt.err (!%p10474_p9)
}
  0x18   :  { %46 = dma.hbm_to_vmem [thread:$0]  %s11550_s5, 13312, %s41_s9, [#allocation9], %s10505_s27, %s10505_s27, %s10506_s28  }
  0x19   :  { %10498 = dma.done.wait [#allocation6], 13312  }
  0x1a   :  { %10499 = vsyncadd [#allocation6], 4294953984 }
  0x1b   :  { %10500 = dma.done.wait [#allocation9], 13312  }
  0x1c   :  { %10501 = vsyncadd [#allocation9], 4294953984  ;;  %v76_v0 = vlaneseq  ;;  %v10508_v1 = vmov 0.0   ;;  %vm131_vm0 = vcmask 523264   ;;  %v121_v12 = vld [vmem:[%s11545_s0 + $0x70] sm:$0xff]  ;;  %v122_v13 = vld [vmem:[%s11545_s0 + $0x78] sm:$0xff] }
  0x1d   :  { %56 = vst [vmem:[#allocation2] sm:$0xff] %v10508_v1  ;;  %65 = vst [vmem:[#allocation2 + $0x48] sm:$0xff] %v10508_v1  ;;  %v119_v14 = vld [vmem:[%s11545_s0 + $0x60] sm:$0xff]  ;;  %v130_v18 = vpack.c.bf16 %v122_v13, %v121_v12  ;;  %v120_v19 = vld [vmem:[%s11545_s0 + $0x68] sm:$0xff] }
  0x1e   :  { %66 = vst [vmem:[#allocation2 + $0x50] sm:$0xff] %v10508_v1  ;;  %75 = vst [vmem:[#allocation2 + $0x98] sm:$0xff] %v10508_v1  ;;  %v77_v2 = vshrl.u32 %v76_v0, 7  ;;  %v86_v3 = vand.u32 127, %v76_v0  ;;  %v117_v20 = vld [vmem:[%s11545_s0 + $0x50] sm:$0xff]  ;;  %v118_v21 = vld [vmem:[%s11545_s0 + $0x58] sm:$0xff]  ;;  %v129_v24 = vpack.c.bf16 %v120_v19, %v119_v14 }
  0x1f   :  { %v128_v25 = vpack.c.bf16 %v118_v21, %v117_v20  ;;  %v115_v26 = vld [vmem:[%s11545_s0 + $0x40] sm:$0xff]  ;;  %v116_v27 = vld [vmem:[%s11545_s0 + $0x48] sm:$0xff]  ;;  %v113_v28 = vld [vmem:[%s11545_s0 + $0x30] sm:$0xff]  ;;  %9886 = vmatprep.subr.msk.bf16.mxu0 %vm131_vm0, %v130_v18  ;;  %v166_v31 = vsel %vm131_vm0, %v130_v18, 0 }
  0x20   :  { %v78_v4 = vadd.s32 8, %v77_v2  ;;  %vm87_vm1 = vcmp.eq.s32.totalorder %v77_v2, %v86_v3  ;;  %v79_v5 = vadd.s32 16, %v77_v2  ;;  %v80_v6 = vadd.s32 24, %v77_v2  ;;  %v114_v33 = vld [vmem:[%s11545_s0 + $0x38] sm:$0xff]  ;;  %v111_v34 = vld [vmem:[%s11545_s0 + $0x20] sm:$0xff]  ;;  %v112_v35 = vld [vmem:[%s11545_s0 + $0x28] sm:$0xff]  ;;  %9727 = vmatpush3.bf16.xpose.msra.mxu0 %v166_v31 }
  0x21   :  { %v95_v7 = vsel %vm87_vm1, 1.0, %v10508_v1  ;;  %v81_v8 = vadd.s32 32, %v77_v2  ;;  %v82_v9 = vadd.s32 40, %v77_v2  ;;  %v83_v10 = vadd.s32 48, %v77_v2  ;;  %v109_v38 = vld [vmem:[%s11545_s0 + $0x10] sm:$0xff]  ;;  %v110_v39 = vld [vmem:[%s11545_s0 + $0x18] sm:$0xff]  ;;  %9887 = vmatprep.subr.msk.bf16.mxu0 %vm131_vm0, %v129_v24 }
  0x22   :  { %vm88_vm2 = vcmp.eq.s32.totalorder %v78_v4, %v86_v3  ;;  %vm89_vm3 = vcmp.eq.s32.totalorder %v79_v5, %v86_v3  ;;  %vm90_vm4 = vcmp.eq.s32.totalorder %v80_v6, %v86_v3  ;;  %v84_v11 = vadd.s32 56, %v77_v2  ;;  %v107_v40 = vld [vmem:[%s11545_s0] sm:$0xff]  ;;  %v108_v41 = vld [vmem:[%s11545_s0 + $0x8] sm:$0xff]  ;;  %v9910_v43 = vld [vmem:[%s11546_s1 + $0x38] sm:$0xff]  }
  0x23   :  { %v96_v15 = vsel %vm88_vm2, 1.0, %v10508_v1  ;;  %v97_v16 = vsel %vm89_vm3, 1.0, %v10508_v1  ;;  %v98_v17 = vsel %vm90_vm4, 1.0, %v10508_v1  ;;  %vm91_vm5 = vcmp.eq.s32.totalorder %v81_v8, %v86_v3  ;;  %v9911_v48 = vld [vmem:[%s11546_s1 + $0x30] sm:$0xff]   ;;  %9750 = vmatprep.subr.bf16.mxu1 %v9910_v43  ;;  %v9912_v54 = vld [vmem:[%s11546_s1 + $0x28] sm:$0xff]   ;;  %v9913_v58 = vld [vmem:[%s11546_s1 + $0x20] sm:$0xff]  }
  0x24   :  { %v10584_v22 = vpack.c.bf16 %v96_v15, %v95_v7  ;;  %v10586_v23 = vpack.c.bf16 %v98_v17, %v97_v16  ;;  %vm92_vm6 = vcmp.eq.s32.totalorder %v82_v9, %v86_v3  ;;  %v99_v29 = vsel %vm91_vm5, 1.0, %v10508_v1  ;;  %9751 = vmatpush3.bf16.msra.mxu1 %v9910_v43  ;;  %v9914_v59 = vld [vmem:[%s11546_s1 + $0x18] sm:$0xff]   ;;  %v9915_v60 = vld [vmem:[%s11546_s1 + $0x10] sm:$0xff]   ;;  %v9916_v61 = vld [vmem:[%s11546_s1 + $0x8] sm:$0xff]  }
  0x25   :  { %v100_v30 = vsel %vm92_vm6, 1.0, %v10508_v1  ;;  %v127_v32 = vpack.c.bf16 %v116_v27, %v115_v26  ;;  %vm93_vm7 = vcmp.eq.s32.totalorder %v83_v10, %v86_v3  ;;  %v126_v37 = vpack.c.bf16 %v114_v33, %v113_v28  ;;  %9752 = vmatprep.subr.bf16.mxu1 %v9911_v48  ;;  %v9917_v62 = vld [vmem:[%s11546_s1] sm:$0xff]   ;;  %v7613_v63 = vld [vmem:[%s11545_s0 + $0xf0] sm:$0xff]  ;;  %v7614_v0 = vld [vmem:[%s11545_s0 + $0xf8] sm:$0xff] }
  0x26   :  { %9742 = vmatprep.mubr.msk.bf16.mxu0 %vm131_vm0, %v10584_v22  ;;  %v10612_v36 = vpack.c.bf16 %v100_v30, %v99_v29  ;;  %vm94_vm8 = vcmp.eq.s32.totalorder %v84_v11, %v86_v3  ;;  %v101_v42 = vsel %vm93_vm7, 1.0, %v10508_v1  ;;  %v163_v44 = vsel %vm131_vm0, %v129_v24, 0  ;;  %v7611_v6 = vld [vmem:[%s11545_s0 + $0xe0] sm:$0xff]  ;;  %v7612_v7 = vld [vmem:[%s11545_s0 + $0xe8] sm:$0xff]  ;;  %v7609_v18 = vld [vmem:[%s11545_s0 + $0xd0] sm:$0xff] }
  0x27   :  { %v125_v45 = vpack.c.bf16 %v112_v35, %v111_v34  ;;  %v124_v46 = vpack.c.bf16 %v110_v39, %v109_v38  ;;  %v102_v47 = vsel %vm94_vm8, 1.0, %v10508_v1  ;;  %v160_v49 = vsel %vm131_vm0, %v128_v25, 0  ;;  %v7610_v19 = vld [vmem:[%s11545_s0 + $0xd8] sm:$0xff] }
  0x28   :  { %v157_v50 = vsel %vm131_vm0, %v127_v32, 0  ;;  %v123_v51 = vpack.c.bf16 %v108_v41, %v107_v40  ;;  %v10638_v52 = vpack.c.bf16 %v102_v47, %v101_v42  ;;  %v154_v53 = vsel %vm131_vm0, %v126_v37, 0  ;;  %9729 = vmatpush3.bf16.xpose.msra.mxu0 %v163_v44  ;;  %9753 = vmatpush3.bf16.msra.mxu1 %v9911_v48 }
  0x29   :  { %v151_v55 = vsel %vm131_vm0, %v125_v45, 0  ;;  %v148_v56 = vsel %vm131_vm0, %v124_v46, 0  ;;  %9888 = vmatprep.subr.msk.bf16.mxu0 %vm131_vm0, %v128_v25  ;;  %9754 = vmatprep.subr.bf16.mxu1 %v9912_v54  ;;  %v413_v1 = vpack.c.bf16 %v7614_v0, %v7613_v63  ;;  %v412_v11 = vpack.c.bf16 %v7612_v7, %v7611_v6 }
  0x2a   :  { %v145_v57 = vsel %vm131_vm0, %v123_v51, 0  ;;  %v10710_v42 = vpack.c.bf16 %v7610_v19, %v7609_v18 }
  0x2b   :  { %v436_v16 = vsel %vm131_vm0, %v413_v1, 0  ;;  %v10702_v26 = vsel %vm131_vm0, %v412_v11, 0 }
  0x2c   :  { %9755 = vmatpush3.bf16.msra.mxu1 %v9912_v54 }
  0x2d   :  { %9756 = vmatprep.subr.bf16.mxu1 %v9913_v58 }
  0x30   :  { %9731 = vmatpush3.bf16.xpose.msra.mxu0 %v160_v49  ;;  %9757 = vmatpush3.bf16.msra.mxu1 %v9913_v58 }
  0x31   :  { %9889 = vmatprep.subr.msk.bf16.mxu0 %vm131_vm0, %v127_v32  ;;  %9758 = vmatprep.subr.bf16.mxu1 %v9914_v59 }
  0x34   :  { %9759 = vmatpush3.bf16.msra.mxu1 %v9914_v59 }
  0x35   :  { %9760 = vmatprep.subr.bf16.mxu1 %v9915_v60 }
  0x38   :  { %9733 = vmatpush3.bf16.xpose.msra.mxu0 %v157_v50  ;;  %9761 = vmatpush3.bf16.msra.mxu1 %v9915_v60 }
  0x39   :  { %9890 = vmatprep.subr.msk.bf16.mxu0 %vm131_vm0, %v126_v37  ;;  %9762 = vmatprep.subr.bf16.mxu1 %v9916_v61 }
  0x3c   :  { %9763 = vmatpush3.bf16.msra.mxu1 %v9916_v61 }
  0x3d   :  { %9764 = vmatprep.subr.bf16.mxu1 %v9917_v62 }
  0x40   :  { %9735 = vmatpush3.bf16.xpose.msra.mxu0 %v154_v53  ;;  %9765 = vmatpush3.bf16.msra.mxu1 %v9917_v62 }
  0x41   :  { %9891 = vmatprep.subr.msk.bf16.mxu0 %vm131_vm0, %v125_v45  ;;  %9894 = vmatprep.subr.msk.bf16.mxu1 %vm131_vm0, %v413_v1 }
  0x48   :  { %9737 = vmatpush3.bf16.xpose.msra.mxu0 %v151_v55 }
  0x49   :  { %9892 = vmatprep.subr.msk.bf16.mxu0 %vm131_vm0, %v124_v46 }
  0x50   :  { %9739 = vmatpush3.bf16.xpose.msra.mxu0 %v148_v56 }
  0x51   :  { %9893 = vmatprep.subr.msk.bf16.mxu0 %vm131_vm0, %v123_v51 }
  0x58   :  { %9741 = vmatpush3.bf16.xpose.msra.mxu0 %v145_v57 }
  0x5f   :  { %9743 = vmatmul.mubr.msk.bf16.vlgmr.msra.gmra.mxu0 %vm131_vm0, %v10586_v23 }
  0x60   :  { %9746 = vmatprep.mubr.msk.bf16.mxu0 %vm131_vm0, %v10612_v36 }
  0x67   :  { %9747 = vmatmul.mubr.msk.bf16.gmra.mxu0 %vm131_vm0, %v10638_v52 }
 0x11f   :  { %v9744_v2 = vpop.f32.mrf.mxu0 }
 0x120   :  { %235 = vst [vmem:[#allocation2 + $0x18] sm:$0xff] %v9744_v2  ;;  %v8560_v3 = vpack.c.bf16 %v9744_v2, %v9744_v2 }
 0x121   :  { %v202_v4 = vpop.f32.mrf.mxu0 }
 0x122   :  { %1277 = vst [vmem:[#allocation3 + $0x80] sm:$0xf] %v8560_v3  ;;  %233 = vst [vmem:[#allocation2 + $0x8] sm:$0xff] %v202_v4  ;;  %v8558_v5 = vpack.c.bf16 %v202_v4, %v202_v4 }
 0x123   :  { %v9745_v8 = vpop.f32.mrf.mxu0 }
 0x124   :  { %1275 = vst [vmem:[#allocation3 + $0x18] sm:$0xf] %v8558_v5  ;;  %236 = vst [vmem:[#allocation2 + $0x20] sm:$0xff] %v9745_v8  ;;  %v8561_v9 = vpack.c.bf16 %v9745_v8, %v9745_v8  ;;  %v242_v14 = vpack.c.bf16 %v9745_v8, %v9744_v2 }
 0x125   :  { %v205_v10 = vpop.f32.mrf.mxu0 }
 0x126   :  { %1278 = vst [vmem:[#allocation3 + $0xb4] sm:$0xf] %v8561_v9  ;;  %234 = vst [vmem:[#allocation2 + $0x10] sm:$0xff] %v205_v10  ;;  %v8559_v12 = vpack.c.bf16 %v205_v10, %v205_v10  ;;  %v241_v13 = vpack.c.bf16 %v205_v10, %v202_v4 }
 0x127   :  { %v10687_v15 = vpop.f32.mrf.mxu0 }
 0x128   :  { %1276 = vst [vmem:[#allocation3 + $0x4c] sm:$0xf] %v8559_v12  ;;  %239 = vst [vmem:[#allocation2 + $0x38] sm:$0xff] %v10687_v15  ;;  %v8564_v17 = vpack.c.bf16 %v10687_v15, %v10687_v15  ;;  %9766 = vmatprep.mubr.bf16.mxu1 %v241_v13 }
 0x129   :  { %v659_v20 = vld [vmem:[#allocation2 + $0x2] sm:$0xff]  ;;  %v10699_v25 = vpop.f32.mrf.mxu0  ;;  %9767 = vmatmul.mubr.bf16.vlgmr.msra.gmra.mxu1 %v242_v14 }
 0x12a   :  { %v755_v21 = vld [vmem:[#allocation2 + $0x3] sm:$0xff]  ;;  %v8462_v27 = vpack.c.bf16 %v659_v20, %v659_v20  ;;  %1281 = vst [vmem:[#allocation3 + $0x150] sm:$0xf] %v8564_v17  ;;  %237 = vst [vmem:[#allocation2 + $0x28] sm:$0xff] %v10699_v25  ;;  %v8562_v33 = vpack.c.bf16 %v10699_v25, %v10699_v25  ;;  %9775 = vmatpush3.bf16.xpose.msra.mxu1 %v436_v16 }
 0x12b   :  { %v851_v24 = vld [vmem:[#allocation2 + $0x4] sm:$0xff]  ;;  %v8478_v28 = vpack.c.bf16 %v755_v21, %v755_v21  ;;  %v662_v38 = vld [vmem:[#allocation2 + $0x1a] sm:$0xff]  ;;  %v10707_v41 = vpop.f32.mrf.mxu0  ;;  %9895 = vmatprep.subr.msk.bf16.mxu1 %vm131_vm0, %v412_v11 }
 0x12c   :  { %v8494_v29 = vpack.c.bf16 %v851_v24, %v851_v24  ;;  %v947_v30 = vld [vmem:[#allocation2 + $0x5] sm:$0xff]  ;;  %v758_v39 = vld [vmem:[#allocation2 + $0x1b] sm:$0xff]  ;;  %699 = vst [vmem:[#allocation3] sm:$0xf] %v8462_v27  ;;  %v8465_v43 = vpack.c.bf16 %v662_v38, %v662_v38  ;;  %1279 = vst [vmem:[#allocation3 + $0xe8] sm:$0xf] %v8562_v33  ;;  %v244_v49 = vpack.c.bf16 %v10707_v41, %v10687_v15 }
 0x12d   :  { %v1043_v31 = vld [vmem:[#allocation2 + $0x6] sm:$0xff]  ;;  %v8510_v34 = vpack.c.bf16 %v947_v30, %v947_v30  ;;  %v854_v40 = vld [vmem:[#allocation2 + $0x1c] sm:$0xff]  ;;  %795 = vst [vmem:[#allocation3 + $0x4] sm:$0xf] %v8478_v28  ;;  %v8481_v44 = vpack.c.bf16 %v758_v39, %v758_v39  ;;  %240 = vst [vmem:[#allocation2 + $0x40] sm:$0xff] %v10707_v41  ;;  %v8565_v57 = vpack.c.bf16 %v10707_v41, %v10707_v41  ;;  %v221_v58 = vpop.f32.mrf.mxu0 }
 0x12e   :  { %v1139_v32 = vld [vmem:[#allocation2 + $0x7] sm:$0xff]  ;;  %v8526_v35 = vpack.c.bf16 %v1043_v31, %v1043_v31  ;;  %891 = vst [vmem:[#allocation3 + $0x8] sm:$0xf] %v8494_v29  ;;  %v8497_v45 = vpack.c.bf16 %v854_v40, %v854_v40  ;;  %v950_v46 = vld [vmem:[#allocation2 + $0x1d] sm:$0xff]  ;;  %v661_v56 = vld [vmem:[#allocation2 + $0x12] sm:$0xff]  ;;  %v243_v1 = vpack.c.bf16 %v221_v58, %v10699_v25  ;;  %v8563_v8 = vpack.c.bf16 %v221_v58, %v221_v58 }
 0x12f   :  { %v8542_v37 = vpack.c.bf16 %v1139_v32, %v1139_v32  ;;  %v1046_v47 = vld [vmem:[#allocation2 + $0x1e] sm:$0xff]  ;;  %987 = vst [vmem:[#allocation3 + $0xc] sm:$0xf] %v8510_v34  ;;  %v8513_v50 = vpack.c.bf16 %v950_v46, %v950_v46  ;;  %v660_v55 = vld [vmem:[#allocation2 + $0xa] sm:$0xff]  ;;  %702 = vst [vmem:[#allocation3 + $0x9c] sm:$0xf] %v8465_v43  ;;  %v8464_v61 = vpack.c.bf16 %v661_v56, %v661_v56 }
 0x130   :  { %v1142_v48 = vld [vmem:[#allocation2 + $0x1f] sm:$0xff]  ;;  %1083 = vst [vmem:[#allocation3 + $0x10] sm:$0xf] %v8526_v35  ;;  %v8529_v51 = vpack.c.bf16 %v1046_v47, %v1046_v47  ;;  %798 = vst [vmem:[#allocation3 + $0xa0] sm:$0xf] %v8481_v44  ;;  %v8463_v60 = vpack.c.bf16 %v660_v55, %v660_v55  ;;  %v756_v62 = vld [vmem:[#allocation2 + $0xb] sm:$0xff]  ;;  %9770 = vmatprep.mubr.bf16.mxu1 %v243_v1 }
 0x131   :  { %1179 = vst [vmem:[#allocation3 + $0x14] sm:$0xf] %v8542_v37  ;;  %v8545_v53 = vpack.c.bf16 %v1142_v48, %v1142_v48  ;;  %v1333_v54 = vld [vmem:[#allocation2 + $0x19] sm:$0xff]  ;;  %894 = vst [vmem:[#allocation3 + $0xa4] sm:$0xf] %v8497_v45  ;;  %v852_v0 = vld [vmem:[#allocation2 + $0xc] sm:$0xff]  ;;  %v8479_v2 = vpack.c.bf16 %v756_v62, %v756_v62  ;;  %9771 = vmatmul.mubr.bf16.gmra.mxu1 %v244_v49 }
 0x132   :  { %v8576_v59 = vpack.c.bf16 %v1333_v54, %v1333_v54  ;;  %1469 = vst [vmem:[#allocation3 + $0x88] sm:$0xf] %v8465_v43  ;;  %1565 = vst [vmem:[#allocation3 + $0x8c] sm:$0xf] %v8481_v44  ;;  %v757_v63 = vld [vmem:[#allocation2 + $0x13] sm:$0xff]  ;;  %v8495_v5 = vpack.c.bf16 %v852_v0, %v852_v0  ;;  %v1331_v20 = vld [vmem:[#allocation2 + $0x9] sm:$0xff]  ;;  %9777 = vmatpush3.bf16.xpose.msra.mxu1 %v10702_v26  ;;  %9790 = vmatprep.mubr.msk.bf16.mxu1 %vm131_vm0, %v10584_v22 }
 0x133   :  { %1661 = vst [vmem:[#allocation3 + $0x90] sm:$0xf] %v8497_v45  ;;  %238 = vst [vmem:[#allocation2 + $0x30] sm:$0xff] %v221_v58  ;;  %v8480_v3 = vpack.c.bf16 %v757_v63, %v757_v63  ;;  %v853_v4 = vld [vmem:[#allocation2 + $0x14] sm:$0xff]  ;;  %v8574_v25 = vpack.c.bf16 %v1331_v20, %v1331_v20  ;;  %v663_v28 = vld [vmem:[#allocation2 + $0x22] sm:$0xff]  ;;  %9896 = vmatprep.subr.msk.bf16.mxu1 %vm131_vm0, %v10710_v42 }
 0x134   :  { %990 = vst [vmem:[#allocation3 + $0xa8] sm:$0xf] %v8513_v50  ;;  %1086 = vst [vmem:[#allocation3 + $0xac] sm:$0xf] %v8529_v51  ;;  %v948_v6 = vld [vmem:[#allocation2 + $0xd] sm:$0xff]  ;;  %v949_v7 = vld [vmem:[#allocation2 + $0x15] sm:$0xff]  ;;  %v8496_v9 = vpack.c.bf16 %v853_v4, %v853_v4  ;;  %v8466_v32 = vpack.c.bf16 %v663_v28, %v663_v28 }
 0x135   :  { %1182 = vst [vmem:[#allocation3 + $0xb0] sm:$0xf] %v8545_v53  ;;  %1757 = vst [vmem:[#allocation3 + $0x94] sm:$0xf] %v8513_v50  ;;  %v8511_v10 = vpack.c.bf16 %v948_v6, %v948_v6  ;;  %v8512_v11 = vpack.c.bf16 %v949_v7, %v949_v7  ;;  %v1044_v12 = vld [vmem:[#allocation2 + $0xe] sm:$0xff]  ;;  %v1045_v13 = vld [vmem:[#allocation2 + $0x16] sm:$0xff] }
 0x136   :  { %1853 = vst [vmem:[#allocation3 + $0x98] sm:$0xf] %v8529_v51  ;;  %1282 = vst [vmem:[#allocation3 + $0x184] sm:$0xf] %v8565_v57  ;;  %v1140_v14 = vld [vmem:[#allocation2 + $0xf] sm:$0xff]  ;;  %v8527_v16 = vpack.c.bf16 %v1044_v12, %v1044_v12  ;;  %v8528_v17 = vpack.c.bf16 %v1045_v13, %v1045_v13  ;;  %v1141_v18 = vld [vmem:[#allocation2 + $0x17] sm:$0xff] }
 0x137   :  { %1373 = vst [vmem:[#allocation3 + $0x84] sm:$0xf] %v8576_v59  ;;  %700 = vst [vmem:[#allocation3 + $0x34] sm:$0xf] %v8463_v60  ;;  %v8543_v19 = vpack.c.bf16 %v1140_v14, %v1140_v14  ;;  %v1332_v21 = vld [vmem:[#allocation2 + $0x11] sm:$0xff]  ;;  %v8544_v24 = vpack.c.bf16 %v1141_v18, %v1141_v18  ;;  %v759_v29 = vld [vmem:[#allocation2 + $0x23] sm:$0xff] }
 0x138   :  { %701 = vst [vmem:[#allocation3 + $0x68] sm:$0xf] %v8464_v61  ;;  %1467 = vst [vmem:[#allocation3 + $0x20] sm:$0xf] %v8463_v60  ;;  %v8575_v27 = vpack.c.bf16 %v1332_v21, %v1332_v21  ;;  %v855_v30 = vld [vmem:[#allocation2 + $0x24] sm:$0xff]  ;;  %v8482_v33 = vpack.c.bf16 %v759_v29, %v759_v29  ;;  %v666_v41 = vld [vmem:[#allocation2 + $0x3a] sm:$0xff] }
 0x139   :  { %1468 = vst [vmem:[#allocation3 + $0x54] sm:$0xf] %v8464_v61  ;;  %796 = vst [vmem:[#allocation3 + $0x38] sm:$0xf] %v8479_v2  ;;  %v7607_v31 = vld [vmem:[%s11545_s0 + $0xc0] sm:$0xff]  ;;  %v7608_v15 = vld [vmem:[%s11545_s0 + $0xc8] sm:$0xff]  ;;  %v8498_v34 = vpack.c.bf16 %v855_v30, %v855_v30  ;;  %v8469_v45 = vpack.c.bf16 %v666_v41, %v666_v41 }
 0x13a   :  { %797 = vst [vmem:[#allocation3 + $0x6c] sm:$0xf] %v8480_v3  ;;  %892 = vst [vmem:[#allocation3 + $0x3c] sm:$0xf] %v8495_v5  ;;  %v951_v26 = vld [vmem:[#allocation2 + $0x25] sm:$0xff]  ;;  %v762_v43 = vld [vmem:[#allocation2 + $0x3b] sm:$0xff]  ;;  %v10734_v0 = vpack.c.bf16 %v7608_v15, %v7607_v31 }
 0x13b   :  { %1563 = vst [vmem:[#allocation3 + $0x24] sm:$0xf] %v8479_v2  ;;  %1564 = vst [vmem:[#allocation3 + $0x58] sm:$0xf] %v8480_v3  ;;  %v1047_v35 = vld [vmem:[#allocation2 + $0x26] sm:$0xff]  ;;  %v8514_v38 = vpack.c.bf16 %v951_v26, %v951_v26  ;;  %v8485_v46 = vpack.c.bf16 %v762_v43, %v762_v43  ;;  %v858_v47 = vld [vmem:[#allocation2 + $0x3c] sm:$0xff] }
 0x13c   :  { %1659 = vst [vmem:[#allocation3 + $0x28] sm:$0xf] %v8495_v5  ;;  %1280 = vst [vmem:[#allocation3 + $0x11c] sm:$0xf] %v8563_v8  ;;  %v1143_v37 = vld [vmem:[#allocation2 + $0x27] sm:$0xff]  ;;  %v8530_v39 = vpack.c.bf16 %v1047_v35, %v1047_v35  ;;  %v954_v48 = vld [vmem:[#allocation2 + $0x3d] sm:$0xff]  ;;  %v8501_v50 = vpack.c.bf16 %v858_v47, %v858_v47 }
 0x13d   :  { %893 = vst [vmem:[#allocation3 + $0x70] sm:$0xf] %v8496_v9  ;;  %988 = vst [vmem:[#allocation3 + $0x40] sm:$0xf] %v8511_v10  ;;  %v8546_v22 = vpack.c.bf16 %v1143_v37, %v1143_v37  ;;  %v1334_v40 = vld [vmem:[#allocation2 + $0x21] sm:$0xff]  ;;  %v8517_v51 = vpack.c.bf16 %v954_v48, %v954_v48  ;;  %v1337_v55 = vld [vmem:[#allocation2 + $0x39] sm:$0xff] }
 0x13e   :  { %989 = vst [vmem:[#allocation3 + $0x74] sm:$0xf] %v8512_v11  ;;  %1660 = vst [vmem:[#allocation3 + $0x5c] sm:$0xf] %v8496_v9  ;;  %v8577_v44 = vpack.c.bf16 %v1334_v40, %v1334_v40  ;;  %v1050_v49 = vld [vmem:[#allocation2 + $0x3e] sm:$0xff]  ;;  %v430_v57 = vsel %vm131_vm0, %v10710_v42, 0  ;;  %v8580_v59 = vpack.c.bf16 %v1337_v55, %v1337_v55 }
 0x13f   :  { %1755 = vst [vmem:[#allocation3 + $0x2c] sm:$0xf] %v8511_v10  ;;  %1756 = vst [vmem:[#allocation3 + $0x60] sm:$0xf] %v8512_v11  ;;  %v8533_v53 = vpack.c.bf16 %v1050_v49, %v1050_v49  ;;  %v1146_v54 = vld [vmem:[#allocation2 + $0x3f] sm:$0xff]  ;;  %v664_v5 = vld [vmem:[#allocation2 + $0x2a] sm:$0xff]  ;;  %9779 = vmatpush3.bf16.xpose.msra.mxu1 %v430_v57 }
 0x140   :  { %1084 = vst [vmem:[#allocation3 + $0x44] sm:$0xf] %v8527_v16  ;;  %1085 = vst [vmem:[#allocation3 + $0x78] sm:$0xf] %v8528_v17  ;;  %v1338_v56 = vld [vmem:[#allocation2 + $0x41] sm:$0xff]  ;;  %v8549_v58 = vpack.c.bf16 %v1146_v54, %v1146_v54  ;;  %v665_v8 = vld [vmem:[#allocation2 + $0x32] sm:$0xff]  ;;  %v8467_v9 = vpack.c.bf16 %v664_v5, %v664_v5  ;;  %9897 = vmatprep.subr.msk.bf16.mxu1 %vm131_vm0, %v10734_v0 }
 0x141   :  { %1180 = vst [vmem:[#allocation3 + $0x48] sm:$0xf] %v8543_v19  ;;  %1851 = vst [vmem:[#allocation3 + $0x30] sm:$0xf] %v8527_v16  ;;  %v8581_v60 = vpack.c.bf16 %v1338_v56, %v1338_v56  ;;  %v1434_v61 = vld [vmem:[#allocation2 + $0x42] sm:$0xff]  ;;  %v760_v10 = vld [vmem:[#allocation2 + $0x2b] sm:$0xff]  ;;  %v8468_v12 = vpack.c.bf16 %v665_v8, %v665_v8 }
 0x142   :  { %1852 = vst [vmem:[#allocation3 + $0x64] sm:$0xf] %v8528_v17  ;;  %1181 = vst [vmem:[#allocation3 + $0x7c] sm:$0xf] %v8544_v24  ;;  %v1530_v62 = vld [vmem:[#allocation2 + $0x43] sm:$0xff]  ;;  %v8597_v1 = vpack.c.bf16 %v1434_v61, %v1434_v61  ;;  %v761_v11 = vld [vmem:[#allocation2 + $0x33] sm:$0xff]  ;;  %v8483_v13 = vpack.c.bf16 %v760_v10, %v760_v10 }
 0x143   :  { %1371 = vst [vmem:[#allocation3 + $0x1c] sm:$0xf] %v8574_v25  ;;  %1372 = vst [vmem:[#allocation3 + $0x50] sm:$0xf] %v8575_v27  ;;  %v1626_v63 = vld [vmem:[#allocation2 + $0x44] sm:$0xff]  ;;  %v8613_v2 = vpack.c.bf16 %v1530_v62, %v1530_v62  ;;  %v8484_v14 = vpack.c.bf16 %v761_v11, %v761_v11  ;;  %v856_v16 = vld [vmem:[#allocation2 + $0x2c] sm:$0xff] }
 0x144   :  { %703 = vst [vmem:[#allocation3 + $0xd0] sm:$0xf] %v8466_v32  ;;  %799 = vst [vmem:[#allocation3 + $0xd4] sm:$0xf] %v8482_v33  ;;  %v8629_v3 = vpack.c.bf16 %v1626_v63, %v1626_v63  ;;  %v1722_v42 = vld [vmem:[#allocation2 + $0x45] sm:$0xff]  ;;  %v857_v17 = vld [vmem:[#allocation2 + $0x34] sm:$0xff]  ;;  %v8499_v21 = vpack.c.bf16 %v856_v16, %v856_v16 }
 0x145   :  { %895 = vst [vmem:[#allocation3 + $0xd8] sm:$0xf] %v8498_v34  ;;  %1470 = vst [vmem:[#allocation3 + $0xbc] sm:$0xf] %v8466_v32  ;;  %v1818_v4 = vld [vmem:[#allocation2 + $0x46] sm:$0xff]  ;;  %v8645_v6 = vpack.c.bf16 %v1722_v42, %v1722_v42  ;;  %v7605_v19 = vld [vmem:[%s11545_s0 + $0xb0] sm:$0xff]  ;;  %v8500_v24 = vpack.c.bf16 %v857_v17, %v857_v17 }
 0x146   :  { %1566 = vst [vmem:[#allocation3 + $0xc0] sm:$0xf] %v8482_v33  ;;  %1662 = vst [vmem:[#allocation3 + $0xc4] sm:$0xf] %v8498_v34  ;;  %v8661_v7 = vpack.c.bf16 %v1818_v4, %v1818_v4  ;;  %v952_v18 = vld [vmem:[#allocation2 + $0x2d] sm:$0xff]  ;;  %v7606_v20 = vld [vmem:[%s11545_s0 + $0xb8] sm:$0xff] }
 0x147   :  { %991 = vst [vmem:[#allocation3 + $0xdc] sm:$0xf] %v8514_v38  ;;  %1087 = vst [vmem:[#allocation3 + $0xe0] sm:$0xf] %v8530_v39  ;;  %v953_v25 = vld [vmem:[#allocation2 + $0x35] sm:$0xff]  ;;  %v8515_v27 = vpack.c.bf16 %v952_v18, %v952_v18  ;;  %v1335_v34 = vld [vmem:[#allocation2 + $0x29] sm:$0xff]  ;;  %v409_v40 = vpack.c.bf16 %v7606_v20, %v7605_v19 }
 0x148   :  { %1183 = vst [vmem:[#allocation3 + $0xe4] sm:$0xf] %v8546_v22  ;;  %1758 = vst [vmem:[#allocation3 + $0xc8] sm:$0xf] %v8514_v38  ;;  %v1048_v28 = vld [vmem:[#allocation2 + $0x2e] sm:$0xff]  ;;  %v1049_v29 = vld [vmem:[#allocation2 + $0x36] sm:$0xff]  ;;  %v8516_v30 = vpack.c.bf16 %v953_v25, %v953_v25  ;;  %v8578_v38 = vpack.c.bf16 %v1335_v34, %v1335_v34 }
 0x149   :  { %1854 = vst [vmem:[#allocation3 + $0xcc] sm:$0xf] %v8530_v39  ;;  %1374 = vst [vmem:[#allocation3 + $0xb8] sm:$0xf] %v8577_v44  ;;  %v8531_v31 = vpack.c.bf16 %v1048_v28, %v1048_v28  ;;  %v8532_v15 = vpack.c.bf16 %v1049_v29, %v1049_v29  ;;  %v1144_v32 = vld [vmem:[#allocation2 + $0x2f] sm:$0xff]  ;;  %v1145_v33 = vld [vmem:[#allocation2 + $0x37] sm:$0xff] }
 0x14a   :  { %706 = vst [vmem:[#allocation3 + $0x16c] sm:$0xf] %v8469_v45  ;;  %802 = vst [vmem:[#allocation3 + $0x170] sm:$0xf] %v8485_v46  ;;  %v8547_v26 = vpack.c.bf16 %v1144_v32, %v1144_v32  ;;  %v8548_v35 = vpack.c.bf16 %v1145_v33, %v1145_v33  ;;  %v1336_v37 = vld [vmem:[#allocation2 + $0x31] sm:$0xff]  ;;  %v427_v22 = vsel %vm131_vm0, %v10734_v0, 0 }
 0x14b   :  { %1473 = vst [vmem:[#allocation3 + $0x158] sm:$0xf] %v8469_v45  ;;  %1569 = vst [vmem:[#allocation3 + $0x15c] sm:$0xf] %v8485_v46  ;;  %v8579_v39 = vpack.c.bf16 %v1336_v37, %v1336_v37  ;;  %9781 = vmatpush3.bf16.xpose.msra.mxu1 %v427_v22  ;;  %v7603_v41 = vld [vmem:[%s11545_s0 + $0xa0] sm:$0xff]  ;;  %v7604_v43 = vld [vmem:[%s11545_s0 + $0xa8] sm:$0xff] }
 0x14c   :  { %898 = vst [vmem:[#allocation3 + $0x174] sm:$0xf] %v8501_v50  ;;  %994 = vst [vmem:[#allocation3 + $0x178] sm:$0xf] %v8517_v51  ;;  %9898 = vmatprep.subr.msk.bf16.mxu1 %vm131_vm0, %v409_v40  ;;  %v424_v44 = vsel %vm131_vm0, %v409_v40, 0  ;;  %v408_v45 = vpack.c.bf16 %v7604_v43, %v7603_v41  ;;  %v7601_v46 = vld [vmem:[%s11545_s0 + $0x90] sm:$0xff] }
 0x14d   :  { %1090 = vst [vmem:[#allocation3 + $0x17c] sm:$0xf] %v8533_v53  ;;  %1665 = vst [vmem:[#allocation3 + $0x160] sm:$0xf] %v8501_v50  ;;  %v7602_v47 = vld [vmem:[%s11545_s0 + $0x98] sm:$0xff]  ;;  %v7599_v50 = vld [vmem:[%s11545_s0 + $0x80] sm:$0xff] }
 0x14e   :  { %1761 = vst [vmem:[#allocation3 + $0x164] sm:$0xf] %v8517_v51  ;;  %1857 = vst [vmem:[#allocation3 + $0x168] sm:$0xf] %v8533_v53  ;;  %v421_v48 = vsel %vm131_vm0, %v408_v45, 0  ;;  %v407_v49 = vpack.c.bf16 %v7602_v47, %v7601_v46  ;;  %v7600_v51 = vld [vmem:[%s11545_s0 + $0x88] sm:$0xff] }
 0x14f   :  { %1186 = vst [vmem:[#allocation3 + $0x180] sm:$0xf] %v8549_v58  ;;  %1377 = vst [vmem:[#allocation3 + $0x154] sm:$0xf] %v8580_v59  ;;  %v406_v54 = vpack.c.bf16 %v7600_v51, %v7599_v50  ;;  %v9918_v56 = vld [vmem:[#allocation5 + $0xf8] sm:$0xff]   ;;  %v9920_v58 = vld [vmem:[#allocation5 + $0xf0] sm:$0xff]  }
 0x150   :  { %1378 = vst [vmem:[#allocation3 + $0x188] sm:$0xf] %v8581_v60  ;;  %1474 = vst [vmem:[#allocation3 + $0x18c] sm:$0xf] %v8597_v1  ;;  %v418_v53 = vsel %vm131_vm0, %v407_v49, 0  ;;  %v9919_v57 = vld [vmem:[#allocation5 + $0xb8] sm:$0xff]  }
 0x151   :  { %1570 = vst [vmem:[#allocation3 + $0x190] sm:$0xf] %v8613_v2  ;;  %1666 = vst [vmem:[#allocation3 + $0x194] sm:$0xf] %v8629_v3  ;;  %v415_v55 = vsel %vm131_vm0, %v406_v54, 0  ;;  %v9921_v59 = vld [vmem:[#allocation5 + $0xb0] sm:$0xff]  }
 0x152   :  { %1762 = vst [vmem:[#allocation3 + $0x198] sm:$0xf] %v8645_v6  ;;  %1858 = vst [vmem:[#allocation3 + $0x19c] sm:$0xf] %v8661_v7  ;;  %v9922_v60 = vld [vmem:[#allocation5 + $0xe8] sm:$0xff]   ;;  %v9926_v62 = vld [vmem:[#allocation5 + $0xe0] sm:$0xff]  }
 0x153   :  { %704 = vst [vmem:[#allocation3 + $0x104] sm:$0xf] %v8467_v9  ;;  %1471 = vst [vmem:[#allocation3 + $0xf0] sm:$0xf] %v8467_v9  ;;  %9783 = vmatpush3.bf16.xpose.msra.mxu1 %v424_v44  ;;  %v9923_v61 = vld [vmem:[#allocation5 + $0xa8] sm:$0xff]   ;;  %v9946_v0 = vld [vmem:[%s11546_s1 + $0x38] sm:$0xff]  }
 0x154   :  { %705 = vst [vmem:[#allocation3 + $0x138] sm:$0xf] %v8468_v12  ;;  %800 = vst [vmem:[#allocation3 + $0x108] sm:$0xf] %v8483_v13  ;;  %9899 = vmatprep.subr.msk.bf16.mxu1 %vm131_vm0, %v408_v45  ;;  %v9924_v63 = vld [vmem:[#allocation3 + $0xc] ss:$52 sps:$4 sm:$0xff]   ;;  %9798 = vmatprep.subr.bf16.mxu0 %v9946_v0 }
 0x155   :  { %801 = vst [vmem:[#allocation3 + $0x13c] sm:$0xf] %v8484_v14  ;;  %1472 = vst [vmem:[#allocation3 + $0x124] sm:$0xf] %v8468_v12  ;;  %v9928_v1 = vld [vmem:[#allocation5 + $0xd8] sm:$0xff]   ;;  %9799 = vmatpush3.bf16.msra.mxu0 %v9946_v0  ;;  %v9930_v3 = vld [vmem:[#allocation5 + $0xd0] sm:$0xff]  }
 0x156   :  { %1567 = vst [vmem:[#allocation3 + $0xf4] sm:$0xf] %v8483_v13  ;;  %1568 = vst [vmem:[#allocation3 + $0x128] sm:$0xf] %v8484_v14  ;;  %v9929_v2 = vld [vmem:[#allocation5 + $0x98] sm:$0xff]   ;;  %v9949_v42 = vld [vmem:[%s11546_s1 + $0x20] sm:$0xff]  }
 0x157   :  { %896 = vst [vmem:[#allocation3 + $0x10c] sm:$0xf] %v8499_v21  ;;  %897 = vst [vmem:[#allocation3 + $0x140] sm:$0xf] %v8500_v24  ;;  %v9931_v4 = vld [vmem:[#allocation5 + $0x90] sm:$0xff]   ;;  %v9932_v5 = vld [vmem:[#allocation5 + $0xc8] sm:$0xff]  }
 0x158   :  { %992 = vst [vmem:[#allocation3 + $0x110] sm:$0xf] %v8515_v27  ;;  %1663 = vst [vmem:[#allocation3 + $0xf8] sm:$0xf] %v8499_v21  ;;  %v9950_v6 = vld [vmem:[%s11546_s1 + $0x18] sm:$0xff]   ;;  %v9933_v7 = vld [vmem:[#allocation5 + $0x88] sm:$0xff]  }
 0x159   :  { %1664 = vst [vmem:[#allocation3 + $0x12c] sm:$0xf] %v8500_v24  ;;  %1759 = vst [vmem:[#allocation3 + $0xfc] sm:$0xf] %v8515_v27  ;;  %v9934_v8 = vld [vmem:[#allocation5 + $0xc0] sm:$0xff]   ;;  %v9951_v9 = vld [vmem:[%s11546_s1 + $0x10] sm:$0xff]  }
 0x15a   :  { %993 = vst [vmem:[#allocation3 + $0x144] sm:$0xf] %v8516_v30  ;;  %1088 = vst [vmem:[#allocation3 + $0x114] sm:$0xf] %v8531_v31  ;;  %v9935_v10 = vld [vmem:[#allocation5 + $0x80] sm:$0xff]   ;;  %v9952_v19 = vld [vmem:[%s11546_s1 + $0x8] sm:$0xff]  }
 0x15b   :  { %1089 = vst [vmem:[#allocation3 + $0x148] sm:$0xf] %v8532_v15  ;;  %1760 = vst [vmem:[#allocation3 + $0x130] sm:$0xf] %v8516_v30  ;;  %9785 = vmatpush3.bf16.xpose.msra.mxu1 %v421_v48  ;;  %v9936_v11 = vld [vmem:[#allocation3 + $0x8] ss:$52 sps:$4 sm:$0xff]  }
 0x15c   :  { %1855 = vst [vmem:[#allocation3 + $0x100] sm:$0xf] %v8531_v31  ;;  %1856 = vst [vmem:[#allocation3 + $0x134] sm:$0xf] %v8532_v15  ;;  %9900 = vmatprep.subr.msk.bf16.mxu1 %vm131_vm0, %v407_v49  ;;  %v9937_v12 = vld [vmem:[#allocation3 + $0x74] ss:$52 sps:$4 sm:$0xff]  }
 0x15d   :  { %1184 = vst [vmem:[#allocation3 + $0x118] sm:$0xf] %v8547_v26  ;;  %1185 = vst [vmem:[#allocation3 + $0x14c] sm:$0xf] %v8548_v35  ;;  %v9939_v13 = vld [vmem:[#allocation3 + $0x70] ss:$52 sps:$4 sm:$0xff]  }
 0x15e   :  { %1375 = vst [vmem:[#allocation3 + $0xec] sm:$0xf] %v8578_v38  ;;  %1376 = vst [vmem:[#allocation3 + $0x120] sm:$0xf] %v8579_v39  ;;  %v9942_v16 = vld [vmem:[#allocation3 + $0xd8] ss:$52 sps:$4 sm:$0xff]  }
 0x15f   :  { %v9940_v14 = vld [vmem:[#allocation3 + $0xdc] ss:$52 sps:$4 sm:$0xff]   ;;  %v9945_v18 = vld [vmem:[#allocation3 + $0x140] ss:$52 sps:$4 sm:$0xff]   ;;  %v9980_v29 = vld [vmem:[#allocation5 + $0x1e8] sm:$0xff]  }
 0x160   :  { %v9953_v20 = vld [vmem:[%s11546_s1] sm:$0xff]   ;;  %v9954_v21 = vld [vmem:[#allocation5 + $0x78] sm:$0xff]   ;;  %v9975_v27 = vld [vmem:[#allocation5 + $0x1f0] sm:$0xff]  }
 0x161   :  { %v9943_v17 = vld [vmem:[#allocation3 + $0x144] ss:$52 sps:$4 sm:$0xff]   ;;  %v9977_v28 = vld [vmem:[#allocation5 + $0x1b0] sm:$0xff]   ;;  %v9984_v30 = vld [vmem:[#allocation5 + $0x1a8] sm:$0xff]  }
 0x162   :  { %v9969_v24 = vld [vmem:[#allocation5 + $0x1f8] sm:$0xff]   ;;  %v9986_v31 = vld [vmem:[#allocation5 + $0x1e0] sm:$0xff]   ;;  %v9998_v34 = vld [vmem:[#allocation5 + $0x1d0] sm:$0xff]  }
 0x163   :  { %9787 = vmatpush3.bf16.xpose.msra.mxu1 %v418_v53  ;;  %v9973_v25 = vld [vmem:[#allocation5 + $0x1b8] sm:$0xff]   ;;  %v9989_v15 = vld [vmem:[#allocation5 + $0x1a0] sm:$0xff]   ;;  %v10001_v26 = vld [vmem:[#allocation5 + $0x190] sm:$0xff]  }
 0x164   :  { %9901 = vmatprep.subr.msk.bf16.mxu1 %vm131_vm0, %v406_v54  ;;  %v9994_v32 = vld [vmem:[#allocation5 + $0x1d8] sm:$0xff]   ;;  %v10006_v35 = vld [vmem:[#allocation5 + $0x1c8] sm:$0xff]   ;;  %v10010_v38 = vld [vmem:[#allocation5 + $0x1c0] sm:$0xff]  }
 0x165   :  { %v9997_v33 = vld [vmem:[#allocation5 + $0x198] sm:$0xff]   ;;  %v10007_v37 = vld [vmem:[#allocation5 + $0x188] sm:$0xff]   ;;  %v10013_v39 = vld [vmem:[#allocation5 + $0x180] sm:$0xff]  }
 0x166   :  { %v10050_v22 = vld [vmem:[#allocation5 + $0x2f8] sm:$0xff]   ;;  %v10823_v0 = vld [vmem:[#allocation5 + $0x30] sm:$0xff]  }
 0x16b   :  { %9789 = vmatpush3.bf16.xpose.msra.mxu1 %v415_v55 }
 0x16c   :  { %8990 = vmatprep.subr.bf16.mxu1 %v9918_v56 }
 0x172   :  { %9791 = vmatmul.mubr.msk.bf16.vlgmr.msra.gmra.mxu1 %vm131_vm0, %v10586_v23  ;;  %v9927_v23 = vld [vmem:[#allocation5 + $0xa0] sm:$0xff]  }
 0x173   :  { %8991 = vmatpush3.bf16.msra.mxu1 %v9919_v57  ;;  %9794 = vmatprep.mubr.msk.bf16.mxu1 %vm131_vm0, %v10612_v36  ;;  %v9947_v36 = vld [vmem:[%s11546_s1 + $0x30] sm:$0xff]  }
 0x174   :  { %8992 = vmatprep.subr.bf16.mxu1 %v9920_v58  ;;  %9800 = vmatprep.subr.bf16.mxu0 %v9947_v36 }
 0x175   :  { %9801 = vmatpush3.bf16.msra.mxu0 %v9947_v36 }
 0x177   :  { %8993 = vmatpush3.bf16.msra.mxu1 %v9921_v59  ;;  %v9955_v59 = vld [vmem:[#allocation5 + $0x38] sm:$0xff]  }
 0x178   :  { %8994 = vmatprep.subr.bf16.mxu1 %v9922_v60 }
 0x17a   :  { %9795 = vmatmul.mubr.msk.bf16.gmra.mxu1 %vm131_vm0, %v10638_v52  ;;  %v9948_v52 = vld [vmem:[%s11546_s1 + $0x28] sm:$0xff]  }
 0x17b   :  { %8995 = vmatpush3.bf16.msra.mxu1 %v9923_v61  ;;  %3515 = vmatprep.mubr.bf16.mxu1 %v9924_v63 }
 0x17c   :  { %8996 = vmatprep.subr.bf16.mxu1 %v9926_v62  ;;  %9802 = vmatprep.subr.bf16.mxu0 %v9948_v52  ;;  %v9956_v62 = vld [vmem:[#allocation5 + $0x70] sm:$0xff]  }
 0x17d   :  { %9803 = vmatpush3.bf16.msra.mxu0 %v9948_v52 }
 0x17e   :  { %9804 = vmatprep.subr.bf16.mxu0 %v9949_v42 }
 0x17f   :  { %8997 = vmatpush3.bf16.msra.mxu1 %v9927_v23 }
 0x180   :  { %8998 = vmatprep.subr.bf16.mxu1 %v9928_v1 }
 0x181   :  { %9805 = vmatpush3.bf16.msra.mxu0 %v9949_v42 }
 0x182   :  { %9806 = vmatprep.subr.bf16.mxu0 %v9950_v6 }
 0x183   :  { %8999 = vmatpush3.bf16.msra.mxu1 %v9929_v2 }
 0x184   :  { %9000 = vmatprep.subr.bf16.mxu1 %v9930_v3  ;;  %v10827_v3 = vld [vmem:[#allocation5 + $0x68] sm:$0xff]  }
 0x185   :  { %9807 = vmatpush3.bf16.msra.mxu0 %v9950_v6 }
 0x186   :  { %9808 = vmatprep.subr.bf16.mxu0 %v9951_v9 }
 0x187   :  { %9001 = vmatpush3.bf16.msra.mxu1 %v9931_v4 }
 0x188   :  { %9002 = vmatprep.subr.bf16.mxu1 %v9932_v5 }
 0x189   :  { %9809 = vmatpush3.bf16.msra.mxu0 %v9951_v9 }
 0x18a   :  { %9810 = vmatprep.subr.bf16.mxu0 %v9952_v19 }
 0x18b   :  { %9003 = vmatpush3.bf16.msra.mxu1 %v9933_v7 }
 0x18c   :  { %9004 = vmatprep.subr.bf16.mxu1 %v9934_v8 }
 0x18d   :  { %9811 = vmatpush3.bf16.msra.mxu0 %v9952_v19 }
 0x18e   :  { %9812 = vmatprep.subr.bf16.mxu0 %v9953_v20 }
 0x18f   :  { %9005 = vmatpush3.bf16.msra.mxu1 %v9935_v10 }
 0x190   :  { %9118 = vmatprep.subr.bf16.mxu1 %v9969_v24 }
 0x191   :  { %9813 = vmatpush3.bf16.msra.mxu0 %v9953_v20 }
 0x192   :  { %3516 = vmatmul.mubr.bf16.vlgmr.msra.gmra.mxu1 %v9936_v11  ;;  %8926 = vmatprep.subr.bf16.mxu0 %v9954_v21 }
 0x193   :  { %3523 = vmatprep.mubr.bf16.mxu1 %v9937_v12  ;;  %9119 = vmatpush3.bf16.msra.mxu1 %v9973_v25 }
 0x194   :  { %9120 = vmatprep.subr.bf16.mxu1 %v9975_v27  ;;  %v10837_v27 = vld [vmem:[#allocation5 + $0x28] sm:$0xff]  }
 0x197   :  { %9121 = vmatpush3.bf16.msra.mxu1 %v9977_v28 }
 0x198   :  { %9122 = vmatprep.subr.bf16.mxu1 %v9980_v29 }
 0x19a   :  { %3524 = vmatmul.mubr.bf16.gmra.mxu1 %v9939_v13 }
 0x19b   :  { %3531 = vmatprep.mubr.bf16.mxu1 %v9940_v14  ;;  %9123 = vmatpush3.bf16.msra.mxu1 %v9984_v30 }
 0x19c   :  { %9124 = vmatprep.subr.bf16.mxu1 %v9986_v31 }
 0x19f   :  { %9125 = vmatpush3.bf16.msra.mxu1 %v9989_v15 }
 0x1a0   :  { %9126 = vmatprep.subr.bf16.mxu1 %v9994_v32 }
 0x1a2   :  { %3532 = vmatmul.mubr.bf16.gmra.mxu1 %v9942_v16 }
 0x1a3   :  { %3539 = vmatprep.mubr.bf16.mxu1 %v9943_v17  ;;  %9127 = vmatpush3.bf16.msra.mxu1 %v9997_v33 }
 0x1a4   :  { %9128 = vmatprep.subr.bf16.mxu1 %v9998_v34 }
 0x1a7   :  { %9129 = vmatpush3.bf16.msra.mxu1 %v10001_v26  ;;  %v10841_v26 = vld [vmem:[#allocation5 + $0x60] sm:$0xff]  }
 0x1a8   :  { %9130 = vmatprep.subr.bf16.mxu1 %v10006_v35 }
 0x1aa   :  { %3540 = vmatmul.mubr.bf16.gmra.mxu1 %v9945_v18 }
 0x1ab   :  { %9131 = vmatpush3.bf16.msra.mxu1 %v10007_v37 }
 0x1ac   :  { %9132 = vmatprep.subr.bf16.mxu1 %v10010_v38 }
 0x1af   :  { %9133 = vmatpush3.bf16.msra.mxu1 %v10013_v39 }
 0x1b0   :  { %9246 = vmatprep.subr.bf16.mxu1 %v10050_v22 }
 0x1e9   :  { %v10802_v40 = vpop.f32.mrf.mxu1 }
 0x1ea   :  { %11553 = vst [vmem:[#allocation14_spill] sm:$0xff] %v10802_v40 }
 0x1eb   :  { %v10804_v41 = vpop.f32.mrf.mxu1 }
 0x1ec   :  { %11554 = vst [vmem:[#allocation15_spill] sm:$0xff] %v10804_v41 }
 0x1ed   :  { %v10806_v43 = vpop.f32.mrf.mxu1 }
 0x1ee   :  { %11555 = vst [vmem:[#allocation16_spill] sm:$0xff] %v10806_v43 }
 0x1ef   :  { %v10808_v44 = vpop.f32.mrf.mxu1 }
 0x1f0   :  { %11556 = vst [vmem:[#allocation17_spill] sm:$0xff] %v10808_v44 }
 0x1f1   :  { %v10810_v45 = vpop.f32.mrf.mxu1 }
 0x1f2   :  { %11557 = vst [vmem:[#allocation18_spill] sm:$0xff] %v10810_v45 }
 0x1f3   :  { %v10812_v46 = vpop.f32.mrf.mxu1 }
 0x1f4   :  { %11558 = vst [vmem:[#allocation19_spill] sm:$0xff] %v10812_v46 }
 0x1f5   :  { %v10814_v47 = vpop.f32.mrf.mxu1 }
 0x1f6   :  { %11559 = vst [vmem:[#allocation20_spill] sm:$0xff] %v10814_v47 }
 0x1f7   :  { %v10816_v48 = vpop.f32.mrf.mxu1 }
 0x1f8   :  { %11560 = vst [vmem:[#allocation21_spill] sm:$0xff] %v10816_v48 }
 0x232   :  { %v9792_v49 = vpop.f32.mrf.mxu1 }
 0x233   :  { %505 = vst [vmem:[#allocation2 + $0x68] sm:$0xff] %v9792_v49  ;;  %v8568_v50 = vpack.c.bf16 %v9792_v49, %v9792_v49 }
 0x234   :  { %v472_v51 = vpop.f32.mrf.mxu1 }
 0x235   :  { %1325 = vst [vmem:[#allocation3 + $0x220] sm:$0xf] %v8568_v50  ;;  %503 = vst [vmem:[#allocation2 + $0x58] sm:$0xff] %v472_v51  ;;  %v8566_v53 = vpack.c.bf16 %v472_v51, %v472_v51 }
 0x236   :  { %v9793_v54 = vpop.f32.mrf.mxu1 }
 0x237   :  { %1323 = vst [vmem:[#allocation3 + $0x1b8] sm:$0xf] %v8566_v53  ;;  %506 = vst [vmem:[#allocation2 + $0x70] sm:$0xff] %v9793_v54  ;;  %v8569_v55 = vpack.c.bf16 %v9793_v54, %v9793_v54  ;;  %v512_v60 = vpack.c.bf16 %v9793_v54, %v9792_v49 }
 0x238   :  { %v475_v56 = vpop.f32.mrf.mxu1 }
 0x239   :  { %1326 = vst [vmem:[#allocation3 + $0x254] sm:$0xf] %v8569_v55  ;;  %504 = vst [vmem:[#allocation2 + $0x60] sm:$0xff] %v475_v56  ;;  %v511_v57 = vpack.c.bf16 %v475_v56, %v472_v51  ;;  %v8567_v58 = vpack.c.bf16 %v475_v56, %v475_v56  ;;  %v9960_v51 = vld [vmem:[#allocation3 + $0x4] ss:$52 sps:$4 sm:$0xff]  }
 0x23a   :  { %v10818_v61 = vpop.f32.mrf.mxu1 }
 0x23b   :  { %1324 = vst [vmem:[#allocation3 + $0x1ec] sm:$0xf] %v8567_v58  ;;  %509 = vst [vmem:[#allocation2 + $0x88] sm:$0xff] %v10818_v61  ;;  %v8572_v63 = vpack.c.bf16 %v10818_v61, %v10818_v61  ;;  %9814 = vmatprep.mubr.bf16.mxu0 %v511_v57 }
 0x23c   :  { %v707_v23 = vld [vmem:[#allocation2 + $0x52] sm:$0xff]  ;;  %v10825_v2 = vpop.f32.mrf.mxu1  ;;  %9815 = vmatmul.mubr.bf16.vlgmr.msra.gmra.mxu0 %v512_v60 }
 0x23d   :  { %v803_v1 = vld [vmem:[#allocation2 + $0x53] sm:$0xff]  ;;  %v8470_v52 = vpack.c.bf16 %v707_v23, %v707_v23  ;;  %1329 = vst [vmem:[#allocation3 + $0x2f0] sm:$0xf] %v8572_v63  ;;  %507 = vst [vmem:[#allocation2 + $0x78] sm:$0xff] %v10825_v2  ;;  %v8570_v8 = vpack.c.bf16 %v10825_v2, %v10825_v2  ;;  %8927 = vmatpush3.bf16.msra.mxu0 %v9955_v59 }
 0x23e   :  { %v899_v36 = vld [vmem:[#allocation2 + $0x54] sm:$0xff]  ;;  %v8486_v42 = vpack.c.bf16 %v803_v1, %v803_v1  ;;  %v710_v12 = vld [vmem:[#allocation2 + $0x6a] sm:$0xff]  ;;  %v10832_v16 = vpop.f32.mrf.mxu1  ;;  %8928 = vmatprep.subr.bf16.mxu0 %v9956_v62 }
 0x23f   :  { %v8502_v4 = vpack.c.bf16 %v899_v36, %v899_v36  ;;  %v995_v5 = vld [vmem:[#allocation2 + $0x55] sm:$0xff]  ;;  %v806_v13 = vld [vmem:[#allocation2 + $0x6b] sm:$0xff]  ;;  %747 = vst [vmem:[#allocation3 + $0x1a0] sm:$0xf] %v8470_v52  ;;  %v8473_v17 = vpack.c.bf16 %v710_v12, %v710_v12  ;;  %1327 = vst [vmem:[#allocation3 + $0x288] sm:$0xf] %v8570_v8  ;;  %v514_v25 = vpack.c.bf16 %v10832_v16, %v10818_v61 }
 0x240   :  { %v1091_v6 = vld [vmem:[#allocation2 + $0x56] sm:$0xff]  ;;  %v8518_v9 = vpack.c.bf16 %v995_v5, %v995_v5  ;;  %v902_v14 = vld [vmem:[#allocation2 + $0x6c] sm:$0xff]  ;;  %843 = vst [vmem:[#allocation3 + $0x1a4] sm:$0xf] %v8486_v42  ;;  %v8489_v18 = vpack.c.bf16 %v806_v13, %v806_v13  ;;  %510 = vst [vmem:[#allocation2 + $0x90] sm:$0xff] %v10832_v16  ;;  %v8573_v33 = vpack.c.bf16 %v10832_v16, %v10832_v16  ;;  %v491_v34 = vpop.f32.mrf.mxu1 }
 0x241   :  { %v1187_v7 = vld [vmem:[#allocation2 + $0x57] sm:$0xff]  ;;  %v8534_v10 = vpack.c.bf16 %v1091_v6, %v1091_v6  ;;  %939 = vst [vmem:[#allocation3 + $0x1a8] sm:$0xf] %v8502_v4  ;;  %v8505_v19 = vpack.c.bf16 %v902_v14, %v902_v14  ;;  %v998_v20 = vld [vmem:[#allocation2 + $0x6d] sm:$0xff]  ;;  %v709_v32 = vld [vmem:[#allocation2 + $0x62] sm:$0xff]  ;;  %v513_v50 = vpack.c.bf16 %v491_v34, %v10825_v2  ;;  %8929 = vmatpush3.bf16.msra.mxu0 %v10823_v0 }
 0x242   :  { %v8550_v11 = vpack.c.bf16 %v1187_v7, %v1187_v7  ;;  %v1094_v21 = vld [vmem:[#allocation2 + $0x6e] sm:$0xff]  ;;  %1035 = vst [vmem:[#allocation3 + $0x1ac] sm:$0xf] %v8518_v9  ;;  %v8521_v28 = vpack.c.bf16 %v998_v20, %v998_v20  ;;  %v708_v15 = vld [vmem:[#allocation2 + $0x5a] sm:$0xff]  ;;  %750 = vst [vmem:[#allocation3 + $0x23c] sm:$0xf] %v8473_v17  ;;  %v8472_v38 = vpack.c.bf16 %v709_v32, %v709_v32  ;;  %8930 = vmatprep.subr.bf16.mxu0 %v10827_v3 }
 0x243   :  { %v1190_v24 = vld [vmem:[#allocation2 + $0x6f] sm:$0xff]  ;;  %1131 = vst [vmem:[#allocation3 + $0x1b0] sm:$0xf] %v8534_v10  ;;  %v8537_v29 = vpack.c.bf16 %v1094_v21, %v1094_v21  ;;  %846 = vst [vmem:[#allocation3 + $0x240] sm:$0xf] %v8489_v18  ;;  %v8471_v37 = vpack.c.bf16 %v708_v15, %v708_v15  ;;  %v804_v39 = vld [vmem:[#allocation2 + $0x5b] sm:$0xff]  ;;  %v8571_v59 = vpack.c.bf16 %v491_v34, %v491_v34  ;;  %9818 = vmatprep.mubr.bf16.mxu0 %v513_v50 }
 0x244   :  { %1227 = vst [vmem:[#allocation3 + $0x1b4] sm:$0xf] %v8550_v11  ;;  %v8553_v30 = vpack.c.bf16 %v1190_v24, %v1190_v24  ;;  %v1381_v31 = vld [vmem:[#allocation2 + $0x69] sm:$0xff]  ;;  %942 = vst [vmem:[#allocation3 + $0x244] sm:$0xf] %v8505_v19  ;;  %v900_v49 = vld [vmem:[#allocation2 + $0x5c] sm:$0xff]  ;;  %v8487_v53 = vpack.c.bf16 %v804_v39, %v804_v39  ;;  %9819 = vmatmul.mubr.bf16.gmra.mxu0 %v514_v25 }
 0x245   :  { %v8584_v35 = vpack.c.bf16 %v1381_v31, %v1381_v31  ;;  %1517 = vst [vmem:[#allocation3 + $0x228] sm:$0xf] %v8473_v17  ;;  %1613 = vst [vmem:[#allocation3 + $0x22c] sm:$0xf] %v8489_v18  ;;  %v805_v22 = vld [vmem:[#allocation2 + $0x63] sm:$0xff]  ;;  %v8503_v56 = vpack.c.bf16 %v900_v49, %v900_v49  ;;  %v1379_v4 = vld [vmem:[#allocation2 + $0x59] sm:$0xff]  ;;  %8931 = vmatpush3.bf16.msra.mxu0 %v10837_v27  ;;  %3418 = vmatprep.mubr.bf16.mxu0 %v9960_v51 }
 0x246   :  { %1709 = vst [vmem:[#allocation3 + $0x230] sm:$0xf] %v8505_v19  ;;  %508 = vst [vmem:[#allocation2 + $0x80] sm:$0xff] %v491_v34  ;;  %v8488_v54 = vpack.c.bf16 %v805_v22, %v805_v22  ;;  %v901_v55 = vld [vmem:[#allocation2 + $0x64] sm:$0xff]  ;;  %v10851_v6 = vld [vmem:[#allocation5 + $0x58] sm:$0xff]   ;;  %v8582_v8 = vpack.c.bf16 %v1379_v4, %v1379_v4  ;;  %8932 = vmatprep.subr.bf16.mxu0 %v10841_v26 }
 0x247   :  { %1038 = vst [vmem:[#allocation3 + $0x248] sm:$0xf] %v8521_v28  ;;  %1134 = vst [vmem:[#allocation3 + $0x24c] sm:$0xf] %v8537_v29  ;;  %v996_v57 = vld [vmem:[#allocation2 + $0x5d] sm:$0xff]  ;;  %v997_v58 = vld [vmem:[#allocation2 + $0x65] sm:$0xff]  ;;  %v8504_v60 = vpack.c.bf16 %v901_v55, %v901_v55 }
 0x248   :  { %1230 = vst [vmem:[#allocation3 + $0x250] sm:$0xf] %v8553_v30  ;;  %1805 = vst [vmem:[#allocation3 + $0x234] sm:$0xf] %v8521_v28  ;;  %v8519_v62 = vpack.c.bf16 %v996_v57, %v996_v57  ;;  %v8520_v63 = vpack.c.bf16 %v997_v58, %v997_v58  ;;  %v1092_v0 = vld [vmem:[#allocation2 + $0x5e] sm:$0xff]  ;;  %v1093_v23 = vld [vmem:[#allocation2 + $0x66] sm:$0xff] }
 0x249   :  { %1901 = vst [vmem:[#allocation3 + $0x238] sm:$0xf] %v8537_v29  ;;  %1330 = vst [vmem:[#allocation3 + $0x324] sm:$0xf] %v8573_v33  ;;  %v1188_v1 = vld [vmem:[#allocation2 + $0x5f] sm:$0xff]  ;;  %v8535_v2 = vpack.c.bf16 %v1092_v0, %v1092_v0  ;;  %v8536_v52 = vpack.c.bf16 %v1093_v23, %v1093_v23  ;;  %v1189_v3 = vld [vmem:[#allocation2 + $0x67] sm:$0xff] }
 0x24a   :  { %1421 = vst [vmem:[#allocation3 + $0x224] sm:$0xf] %v8584_v35  ;;  %748 = vst [vmem:[#allocation3 + $0x1d4] sm:$0xf] %v8471_v37  ;;  %v10846_v36 = vld [vmem:[#allocation5 + $0x20] sm:$0xff]   ;;  %v8551_v42 = vpack.c.bf16 %v1188_v1, %v1188_v1  ;;  %v8552_v7 = vpack.c.bf16 %v1189_v3, %v1189_v3  ;;  %v711_v10 = vld [vmem:[#allocation2 + $0x72] sm:$0xff] }
 0x24b   :  { %749 = vst [vmem:[#allocation3 + $0x208] sm:$0xf] %v8472_v38  ;;  %1515 = vst [vmem:[#allocation3 + $0x1c0] sm:$0xf] %v8471_v37  ;;  %v1380_v5 = vld [vmem:[#allocation2 + $0x61] sm:$0xff]  ;;  %v807_v11 = vld [vmem:[#allocation2 + $0x73] sm:$0xff]  ;;  %v8474_v61 = vpack.c.bf16 %v711_v10, %v711_v10  ;;  %8933 = vmatpush3.bf16.msra.mxu0 %v10846_v36 }
 0x24c   :  { %1516 = vst [vmem:[#allocation3 + $0x1f4] sm:$0xf] %v8472_v38  ;;  %844 = vst [vmem:[#allocation3 + $0x1d8] sm:$0xf] %v8487_v53  ;;  %v8583_v9 = vpack.c.bf16 %v1380_v5, %v1380_v5  ;;  %v903_v12 = vld [vmem:[#allocation2 + $0x74] sm:$0xff]  ;;  %v8490_v13 = vpack.c.bf16 %v807_v11, %v807_v11  ;;  %v714_v25 = vld [vmem:[#allocation2 + $0x8a] sm:$0xff]  ;;  %8934 = vmatprep.subr.bf16.mxu0 %v10851_v6 }
 0x24d   :  { %845 = vst [vmem:[#allocation3 + $0x20c] sm:$0xf] %v8488_v54  ;;  %940 = vst [vmem:[#allocation3 + $0x1dc] sm:$0xf] %v8503_v56  ;;  %v8506_v14 = vpack.c.bf16 %v903_v12, %v903_v12  ;;  %v999_v16 = vld [vmem:[#allocation2 + $0x75] sm:$0xff]  ;;  %v810_v27 = vld [vmem:[#allocation2 + $0x8b] sm:$0xff]  ;;  %v8477_v30 = vpack.c.bf16 %v714_v25, %v714_v25 }
 0x24e   :  { %1611 = vst [vmem:[#allocation3 + $0x1c4] sm:$0xf] %v8487_v53  ;;  %1612 = vst [vmem:[#allocation3 + $0x1f8] sm:$0xf] %v8488_v54  ;;  %v1095_v17 = vld [vmem:[#allocation2 + $0x76] sm:$0xff]  ;;  %v8522_v19 = vpack.c.bf16 %v999_v16, %v999_v16  ;;  %v8493_v31 = vpack.c.bf16 %v810_v27, %v810_v27  ;;  %v906_v15 = vld [vmem:[#allocation2 + $0x8c] sm:$0xff] }
 0x24f   :  { %1707 = vst [vmem:[#allocation3 + $0x1c8] sm:$0xf] %v8503_v56  ;;  %1328 = vst [vmem:[#allocation3 + $0x2bc] sm:$0xf] %v8571_v59  ;;  %v1191_v18 = vld [vmem:[#allocation2 + $0x77] sm:$0xff]  ;;  %v8538_v20 = vpack.c.bf16 %v1095_v17, %v1095_v17  ;;  %v1002_v32 = vld [vmem:[#allocation2 + $0x8d] sm:$0xff]  ;;  %v8509_v26 = vpack.c.bf16 %v906_v15, %v906_v15 }
 0x250   :  { %941 = vst [vmem:[#allocation3 + $0x210] sm:$0xf] %v8504_v60  ;;  %1036 = vst [vmem:[#allocation3 + $0x1e0] sm:$0xf] %v8519_v62  ;;  %v8554_v21 = vpack.c.bf16 %v1191_v18, %v1191_v18  ;;  %v1382_v24 = vld [vmem:[#allocation2 + $0x71] sm:$0xff]  ;;  %v8525_v35 = vpack.c.bf16 %v1002_v32, %v1002_v32  ;;  %v1385_v39 = vld [vmem:[#allocation2 + $0x89] sm:$0xff] }
 0x251   :  { %1037 = vst [vmem:[#allocation3 + $0x214] sm:$0xf] %v8520_v63  ;;  %1708 = vst [vmem:[#allocation3 + $0x1fc] sm:$0xf] %v8504_v60  ;;  %v10855_v28 = vld [vmem:[#allocation5 + $0x18] sm:$0xff]   ;;  %v8585_v29 = vpack.c.bf16 %v1382_v24, %v1382_v24  ;;  %v1098_v33 = vld [vmem:[#allocation2 + $0x8e] sm:$0xff]  ;;  %v8588_v50 = vpack.c.bf16 %v1385_v39, %v1385_v39 }
 0x252   :  { %1803 = vst [vmem:[#allocation3 + $0x1cc] sm:$0xf] %v8519_v62  ;;  %1804 = vst [vmem:[#allocation3 + $0x200] sm:$0xf] %v8520_v63  ;;  %v10857_v34 = vld [vmem:[#allocation5 + $0x50] sm:$0xff]   ;;  %v8541_v37 = vpack.c.bf16 %v1098_v33, %v1098_v33  ;;  %v712_v62 = vld [vmem:[#allocation2 + $0x7a] sm:$0xff]  ;;  %8935 = vmatpush3.bf16.msra.mxu0 %v10855_v28  ;;  %v9006_v32 = vpop.f32.mrf.mxu1 }
 0x253   :  { %1132 = vst [vmem:[#allocation3 + $0x1e4] sm:$0xf] %v8535_v2  ;;  %1133 = vst [vmem:[#allocation3 + $0x218] sm:$0xf] %v8536_v52  ;;  %v1194_v38 = vld [vmem:[#allocation2 + $0x8f] sm:$0xff]  ;;  %v713_v1 = vld [vmem:[#allocation2 + $0x82] sm:$0xff]  ;;  %v8475_v36 = vpack.c.bf16 %v712_v62, %v712_v62  ;;  %8936 = vmatprep.subr.bf16.mxu0 %v10857_v34 }
 0x254   :  { %1228 = vst [vmem:[#allocation3 + $0x1e8] sm:$0xf] %v8551_v42  ;;  %1899 = vst [vmem:[#allocation3 + $0x1d0] sm:$0xf] %v8535_v2  ;;  %v1386_v22 = vld [vmem:[#allocation2 + $0x91] sm:$0xff]  ;;  %v8557_v49 = vpack.c.bf16 %v1194_v38, %v1194_v38  ;;  %v808_v2 = vld [vmem:[#allocation2 + $0x7b] sm:$0xff]  ;;  %v8476_v42 = vpack.c.bf16 %v713_v1, %v713_v1  ;;  %v9007_v34 = vpop.f32.mrf.mxu1 }
 0x255   :  { %1900 = vst [vmem:[#allocation3 + $0x204] sm:$0xf] %v8536_v52  ;;  %1229 = vst [vmem:[#allocation3 + $0x21c] sm:$0xf] %v8552_v7  ;;  %v8589_v51 = vpack.c.bf16 %v1386_v22, %v1386_v22  ;;  %v1482_v53 = vld [vmem:[#allocation2 + $0x92] sm:$0xff]  ;;  %v809_v52 = vld [vmem:[#allocation2 + $0x83] sm:$0xff]  ;;  %v8491_v4 = vpack.c.bf16 %v808_v2, %v808_v2 }
 0x256   :  { %1419 = vst [vmem:[#allocation3 + $0x1bc] sm:$0xf] %v8582_v8  ;;  %1420 = vst [vmem:[#allocation3 + $0x1f0] sm:$0xf] %v8583_v9  ;;  %v1578_v54 = vld [vmem:[#allocation2 + $0x93] sm:$0xff]  ;;  %v8605_v56 = vpack.c.bf16 %v1482_v53, %v1482_v53  ;;  %v9976_v3 = vld [vmem:[#allocation5 + $0x48] sm:$0xff]   ;;  %v8492_v5 = vpack.c.bf16 %v809_v52, %v809_v52 }
 0x257   :  { %751 = vst [vmem:[#allocation3 + $0x270] sm:$0xf] %v8474_v61  ;;  %847 = vst [vmem:[#allocation3 + $0x274] sm:$0xf] %v8490_v13  ;;  %v1674_v55 = vld [vmem:[#allocation2 + $0x94] sm:$0xff]  ;;  %v8621_v57 = vpack.c.bf16 %v1578_v54, %v1578_v54  ;;  %v904_v6 = vld [vmem:[#allocation2 + $0x7c] sm:$0xff] }
 0x258   :  { %943 = vst [vmem:[#allocation3 + $0x278] sm:$0xf] %v8506_v14  ;;  %1518 = vst [vmem:[#allocation3 + $0x25c] sm:$0xf] %v8474_v61  ;;  %v8637_v58 = vpack.c.bf16 %v1674_v55, %v1674_v55  ;;  %v1770_v59 = vld [vmem:[#allocation2 + $0x95] sm:$0xff]  ;;  %v905_v7 = vld [vmem:[#allocation2 + $0x84] sm:$0xff]  ;;  %v8507_v9 = vpack.c.bf16 %v904_v6, %v904_v6 }
 0x259   :  { %1614 = vst [vmem:[#allocation3 + $0x260] sm:$0xf] %v8490_v13  ;;  %1710 = vst [vmem:[#allocation3 + $0x264] sm:$0xf] %v8506_v14  ;;  %v1866_v60 = vld [vmem:[#allocation2 + $0x96] sm:$0xff]  ;;  %v8653_v0 = vpack.c.bf16 %v1770_v59, %v1770_v59  ;;  %v8508_v10 = vpack.c.bf16 %v905_v7, %v905_v7  ;;  %v1001_v11 = vld [vmem:[#allocation2 + $0x85] sm:$0xff] }
 0x25a   :  { %1039 = vst [vmem:[#allocation3 + $0x27c] sm:$0xf] %v8522_v19  ;;  %1135 = vst [vmem:[#allocation3 + $0x280] sm:$0xf] %v8538_v20  ;;  %v10861_v63 = vld [vmem:[#allocation5 + $0x10] sm:$0xff]   ;;  %v8669_v23 = vpack.c.bf16 %v1866_v60, %v1866_v60  ;;  %v1000_v8 = vld [vmem:[#allocation2 + $0x7d] sm:$0xff]  ;;  %v8524_v14 = vpack.c.bf16 %v1001_v11, %v1001_v11 }
 0x25b   :  { %1231 = vst [vmem:[#allocation3 + $0x284] sm:$0xf] %v8554_v21  ;;  %1806 = vst [vmem:[#allocation3 + $0x268] sm:$0xf] %v8522_v19  ;;  %v8523_v12 = vpack.c.bf16 %v1000_v8, %v1000_v8  ;;  %v1096_v61 = vld [vmem:[#allocation2 + $0x7e] sm:$0xff]  ;;  %v1097_v13 = vld [vmem:[#allocation2 + $0x86] sm:$0xff]  ;;  %8937 = vmatpush3.bf16.msra.mxu0 %v10861_v63 }
 0x25c   :  { %1902 = vst [vmem:[#allocation3 + $0x26c] sm:$0xf] %v8538_v20  ;;  %1422 = vst [vmem:[#allocation3 + $0x258] sm:$0xf] %v8585_v29  ;;  %v8539_v16 = vpack.c.bf16 %v1096_v61, %v1096_v61  ;;  %v8540_v17 = vpack.c.bf16 %v1097_v13, %v1097_v13  ;;  %v1192_v18 = vld [vmem:[#allocation2 + $0x7f] sm:$0xff]  ;;  %v1193_v19 = vld [vmem:[#allocation2 + $0x87] sm:$0xff]  ;;  %8938 = vmatprep.subr.bf16.mxu0 %v9976_v3 }
 0x25d   :  { %754 = vst [vmem:[#allocation3 + $0x30c] sm:$0xf] %v8477_v30  ;;  %850 = vst [vmem:[#allocation3 + $0x310] sm:$0xf] %v8493_v31  ;;  %v1383_v20 = vld [vmem:[#allocation2 + $0x79] sm:$0xff]  ;;  %v9978_v21 = vld [vmem:[#allocation5 + $0x8] sm:$0xff]   ;;  %v8555_v24 = vpack.c.bf16 %v1192_v18, %v1192_v18  ;;  %v8556_v25 = vpack.c.bf16 %v1193_v19, %v1193_v19 }
 0x25e   :  { %1521 = vst [vmem:[#allocation3 + $0x2f8] sm:$0xf] %v8477_v30  ;;  %1617 = vst [vmem:[#allocation3 + $0x2fc] sm:$0xf] %v8493_v31  ;;  %v1384_v27 = vld [vmem:[#allocation2 + $0x81] sm:$0xff]  ;;  %v8586_v28 = vpack.c.bf16 %v1383_v20, %v1383_v20  ;;  %v9988_v38 = vld [vmem:[#allocation5 + $0x178] sm:$0xff]  }
 0x25f   :  { %946 = vst [vmem:[#allocation3 + $0x314] sm:$0xf] %v8509_v26  ;;  %1042 = vst [vmem:[#allocation3 + $0x318] sm:$0xf] %v8525_v35  ;;  %v8587_v29 = vpack.c.bf16 %v1384_v27, %v1384_v27  ;;  %v9966_v30 = vld [vmem:[#allocation3 + $0x1ac] ss:$52 sps:$4 sm:$0xff]   ;;  %8939 = vmatpush3.bf16.msra.mxu0 %v9978_v21 }
 0x260   :  { %1138 = vst [vmem:[#allocation3 + $0x31c] sm:$0xf] %v8541_v37  ;;  %1713 = vst [vmem:[#allocation3 + $0x300] sm:$0xf] %v8509_v26  ;;  %v9968_v31 = vld [vmem:[#allocation3 + $0x1a8] ss:$52 sps:$4 sm:$0xff]   ;;  %3547 = vmatprep.mubr.bf16.mxu1 %v9966_v30  ;;  %v10866_v26 = vadd.f32 %v9007_v34, %v9006_v32 }
 0x261   :  { %1809 = vst [vmem:[#allocation3 + $0x304] sm:$0xf] %v8525_v35  ;;  %1905 = vst [vmem:[#allocation3 + $0x308] sm:$0xf] %v8541_v37  ;;  %v9971_v15 = vld [vmem:[#allocation3 + $0x214] ss:$52 sps:$4 sm:$0xff]   ;;  %3548 = vmatmul.mubr.bf16.gmra.mxu1 %v9968_v31  ;;  %v10868_v37 = vpop.f32.mrf.mxu1 }
 0x262   :  { %1234 = vst [vmem:[#allocation3 + $0x320] sm:$0xf] %v8557_v49  ;;  %1425 = vst [vmem:[#allocation3 + $0x2f4] sm:$0xf] %v8588_v50  ;;  %v9981_v33 = vld [vmem:[#allocation5 + $0x40] sm:$0xff]   ;;  %3555 = vmatprep.mubr.bf16.mxu1 %v9971_v15  ;;  %v9992_v53 = vld [vmem:[#allocation5 + $0x138] sm:$0xff]  }
 0x263   :  { %1426 = vst [vmem:[#allocation3 + $0x328] sm:$0xf] %v8589_v51  ;;  %1522 = vst [vmem:[#allocation3 + $0x32c] sm:$0xf] %v8605_v56  ;;  %v9985_v35 = vld [vmem:[#allocation5] sm:$0xff]   ;;  %8940 = vmatprep.subr.bf16.mxu0 %v9981_v33  ;;  %v10870_v39 = vpop.f32.mrf.mxu1  ;;  %v10000_v55 = vld [vmem:[#allocation5 + $0x170] sm:$0xff]  }
 0x264   :  { %1618 = vst [vmem:[#allocation3 + $0x330] sm:$0xf] %v8621_v57  ;;  %1714 = vst [vmem:[#allocation3 + $0x334] sm:$0xf] %v8637_v58  ;;  %v9987_v22 = vld [vmem:[#allocation3] ss:$52 sps:$4 sm:$0xff]   ;;  %8941 = vmatpush3.bf16.msra.mxu0 %v9985_v35 }
 0x265   :  { %1810 = vst [vmem:[#allocation3 + $0x338] sm:$0xf] %v8653_v0  ;;  %1906 = vst [vmem:[#allocation3 + $0x33c] sm:$0xf] %v8669_v23  ;;  %v9990_v49 = vld [vmem:[#allocation3 + $0x6c] ss:$52 sps:$4 sm:$0xff]   ;;  %v9012_v51 = vpop.f32.mrf.mxu1  ;;  %9054 = vmatprep.subr.bf16.mxu0 %v9988_v38 }
 0x266   :  { %752 = vst [vmem:[#allocation3 + $0x2a4] sm:$0xf] %v8475_v36  ;;  %1519 = vst [vmem:[#allocation3 + $0x290] sm:$0xf] %v8475_v36  ;;  %v9979_v50 = vld [vmem:[#allocation3 + $0x210] ss:$52 sps:$4 sm:$0xff]  }
 0x267   :  { %753 = vst [vmem:[#allocation3 + $0x2d8] sm:$0xf] %v8476_v42  ;;  %848 = vst [vmem:[#allocation3 + $0x2a8] sm:$0xf] %v8491_v4  ;;  %3419 = vmatmul.mubr.bf16.vlgmr.msra.gmra.mxu0 %v9987_v22  ;;  %v9013_v56 = vpop.f32.mrf.mxu1  ;;  %v10004_v59 = vld [vmem:[#allocation5 + $0x130] sm:$0xff]   ;;  %v10012_v60 = vld [vmem:[#allocation5 + $0x168] sm:$0xff]  }
 0x268   :  { %849 = vst [vmem:[#allocation3 + $0x2dc] sm:$0xf] %v8492_v5  ;;  %1520 = vst [vmem:[#allocation3 + $0x2c4] sm:$0xf] %v8476_v42  ;;  %3426 = vmatprep.mubr.bf16.mxu0 %v9990_v49  ;;  %v10872_v57 = vadd.f32 %v9013_v56, %v9012_v51  ;;  %9055 = vmatpush3.bf16.msra.mxu0 %v9992_v53  ;;  %v9999_v0 = vld [vmem:[#allocation3 + $0x68] ss:$52 sps:$4 sm:$0xff]  }
 0x269   :  { %1615 = vst [vmem:[#allocation3 + $0x294] sm:$0xf] %v8491_v4  ;;  %1616 = vst [vmem:[#allocation3 + $0x2c8] sm:$0xf] %v8492_v5  ;;  %3556 = vmatmul.mubr.bf16.gmra.mxu1 %v9979_v50  ;;  %v10874_v58 = vpop.f32.mrf.mxu1  ;;  %9056 = vmatprep.subr.bf16.mxu0 %v10000_v55  ;;  %v10016_v23 = vld [vmem:[#allocation5 + $0x128] sm:$0xff]   ;;  %v10021_v52 = vld [vmem:[#allocation5 + $0x160] sm:$0xff]  }
 0x26a   :  { %944 = vst [vmem:[#allocation3 + $0x2ac] sm:$0xf] %v8507_v9  ;;  %945 = vst [vmem:[#allocation3 + $0x2e0] sm:$0xf] %v8508_v10  ;;  %v10002_v2 = vld [vmem:[#allocation3 + $0xd4] ss:$52 sps:$4 sm:$0xff]  }
 0x26b   :  { %1040 = vst [vmem:[#allocation3 + $0x2b0] sm:$0xf] %v8523_v12  ;;  %1711 = vst [vmem:[#allocation3 + $0x298] sm:$0xf] %v8507_v9  ;;  %v10876_v62 = vpop.f32.mrf.mxu1  ;;  %v10024_v5 = vld [vmem:[#allocation5 + $0x120] sm:$0xff]   ;;  %v10029_v6 = vld [vmem:[#allocation5 + $0x158] sm:$0xff]  }
 0x26c   :  { %1712 = vst [vmem:[#allocation3 + $0x2cc] sm:$0xf] %v8508_v10  ;;  %1807 = vst [vmem:[#allocation3 + $0x29c] sm:$0xf] %v8523_v12  ;;  %9057 = vmatpush3.bf16.msra.mxu0 %v10004_v59  ;;  %v10008_v8 = vld [vmem:[#allocation3 + $0x1c] ss:$52 sps:$4 sm:$0xff]  }
 0x26d   :  { %1041 = vst [vmem:[#allocation3 + $0x2e4] sm:$0xf] %v8524_v14  ;;  %1136 = vst [vmem:[#allocation3 + $0x2b4] sm:$0xf] %v8539_v16  ;;  %v9018_v36 = vpop.f32.mrf.mxu1  ;;  %9058 = vmatprep.subr.bf16.mxu0 %v10012_v60  ;;  %v10011_v9 = vld [vmem:[#allocation3 + $0xd0] ss:$52 sps:$4 sm:$0xff]  }
 0x26e   :  { %1137 = vst [vmem:[#allocation3 + $0x2e8] sm:$0xf] %v8540_v17  ;;  %1808 = vst [vmem:[#allocation3 + $0x2d0] sm:$0xf] %v8524_v14  ;;  %v10014_v12 = vld [vmem:[#allocation3 + $0x13c] ss:$52 sps:$4 sm:$0xff]  }
 0x26f   :  { %1903 = vst [vmem:[#allocation3 + $0x2a0] sm:$0xf] %v8539_v16  ;;  %1904 = vst [vmem:[#allocation3 + $0x2d4] sm:$0xf] %v8540_v17  ;;  %3427 = vmatmul.mubr.bf16.gmra.mxu0 %v9999_v0  ;;  %v9019_v3 = vpop.f32.mrf.mxu1  ;;  %v10032_v61 = vld [vmem:[#allocation5 + $0x118] sm:$0xff]   ;;  %v10037_v13 = vld [vmem:[#allocation5 + $0x150] sm:$0xff]  }
 0x270   :  { %1232 = vst [vmem:[#allocation3 + $0x2b8] sm:$0xf] %v8555_v24  ;;  %1233 = vst [vmem:[#allocation3 + $0x2ec] sm:$0xf] %v8556_v25  ;;  %3434 = vmatprep.mubr.bf16.mxu0 %v10002_v2  ;;  %v10878_v42 = vadd.f32 %v9019_v3, %v9018_v36  ;;  %9059 = vmatpush3.bf16.msra.mxu0 %v10016_v23  ;;  %v10040_v17 = vld [vmem:[#allocation5 + $0x110] sm:$0xff]   ;;  %v10045_v18 = vld [vmem:[#allocation5 + $0x148] sm:$0xff]  }
 0x271   :  { %1423 = vst [vmem:[#allocation3 + $0x28c] sm:$0xf] %v8586_v28  ;;  %1424 = vst [vmem:[#allocation3 + $0x2c0] sm:$0xf] %v8587_v29  ;;  %v9993_v1 = vld [vmem:[#allocation3 + $0x278] ss:$52 sps:$4 sm:$0xff]   ;;  %v10880_v4 = vpop.f32.mrf.mxu1  ;;  %9060 = vmatprep.subr.bf16.mxu0 %v10021_v52 }
 0x272   :  { %v9982_v54 = vld [vmem:[#allocation3 + $0x27c] ss:$52 sps:$4 sm:$0xff]   ;;  %v10005_v10 = vld [vmem:[#allocation3 + $0x2e0] ss:$52 sps:$4 sm:$0xff]   ;;  %v10017_v19 = vld [vmem:[#allocation3 + $0x18] ss:$52 sps:$4 sm:$0xff]  }
 0x273   :  { %3563 = vmatprep.mubr.bf16.mxu1 %v9982_v54  ;;  %v10882_v7 = vpop.f32.mrf.mxu1  ;;  %v10020_v20 = vld [vmem:[#allocation3 + $0x138] ss:$52 sps:$4 sm:$0xff]   ;;  %v10054_v27 = vld [vmem:[#allocation5 + $0x2f0] sm:$0xff]   ;;  %v10056_v29 = vld [vmem:[#allocation5 + $0x140] sm:$0xff]  }
 0x274   :  { %v9995_v63 = vld [vmem:[#allocation3 + $0x2e4] ss:$52 sps:$4 sm:$0xff]   ;;  %3564 = vmatmul.mubr.bf16.gmra.mxu1 %v9993_v1  ;;  %9061 = vmatpush3.bf16.msra.mxu0 %v10024_v5  ;;  %v10048_v24 = vld [vmem:[#allocation5 + $0x108] sm:$0xff]   ;;  %v10057_v30 = vld [vmem:[#allocation5 + $0x2b0] sm:$0xff]  }
 0x275   :  { %3571 = vmatprep.mubr.bf16.mxu1 %v9995_v63  ;;  %v9024_v11 = vpop.f32.mrf.mxu1  ;;  %9062 = vmatprep.subr.bf16.mxu0 %v10029_v6  ;;  %v10018_v21 = vld [vmem:[#allocation3 + $0x84] ss:$52 sps:$4 sm:$0xff]   ;;  %v10062_v15 = vld [vmem:[#allocation5 + $0x2e8] sm:$0xff]   ;;  %v10025_v33 = vld [vmem:[#allocation3 + $0x80] ss:$52 sps:$4 sm:$0xff]  }
 0x276   :  { %v10053_v25 = vld [vmem:[#allocation5 + $0x2b8] sm:$0xff]   ;;  %v10058_v31 = vld [vmem:[#allocation5 + $0x100] sm:$0xff]   ;;  %v10065_v35 = vld [vmem:[#allocation5 + $0x2a8] sm:$0xff]  }
 0x277   :  { %3435 = vmatmul.mubr.bf16.gmra.mxu0 %v10011_v9  ;;  %v9025_v14 = vpop.f32.mrf.mxu1  ;;  %v10022_v28 = vld [vmem:[#allocation3 + $0x1a4] ss:$52 sps:$4 sm:$0xff]   ;;  %v10028_v34 = vld [vmem:[#allocation3 + $0x1a0] ss:$52 sps:$4 sm:$0xff]   ;;  %v10033_v53 = vld [vmem:[#allocation3 + $0xe8] ss:$52 sps:$4 sm:$0xff]  }
 0x278   :  { %3442 = vmatprep.mubr.bf16.mxu0 %v10014_v12  ;;  %v10884_v16 = vadd.f32 %v9025_v14, %v9024_v11  ;;  %9063 = vmatpush3.bf16.msra.mxu0 %v10032_v61  ;;  %v10068_v32 = vld [vmem:[#allocation5 + $0x278] sm:$0xff]   ;;  %v10026_v38 = vld [vmem:[#allocation3 + $0xec] ss:$52 sps:$4 sm:$0xff]   ;;  %v10034_v56 = vld [vmem:[#allocation3 + $0x154] ss:$52 sps:$4 sm:$0xff]  }
 0x279   :  { %9064 = vmatprep.subr.bf16.mxu0 %v10037_v13  ;;  %v10030_v22 = vld [vmem:[#allocation3 + $0x20c] ss:$52 sps:$4 sm:$0xff]   ;;  %v10074_v51 = vld [vmem:[#allocation5 + $0x2d8] sm:$0xff]   ;;  %v10038_v59 = vld [vmem:[#allocation3 + $0x274] ss:$52 sps:$4 sm:$0xff]  }
 0x27a   :  { %v10066_v49 = vld [vmem:[#allocation5 + $0x2e0] sm:$0xff]   ;;  %v10036_v54 = vld [vmem:[#allocation3 + $0x208] ss:$52 sps:$4 sm:$0xff]   ;;  %v10078_v60 = vld [vmem:[#allocation5 + $0x2d0] sm:$0xff]  }
 0x27b   :  { %v10069_v50 = vld [vmem:[#allocation5 + $0x2a0] sm:$0xff]   ;;  %v10077_v55 = vld [vmem:[#allocation5 + $0x298] sm:$0xff]   ;;  %v10081_v63 = vld [vmem:[#allocation5 + $0x290] sm:$0xff]  }
 0x27c   :  { %3572 = vmatmul.mubr.bf16.gmra.mxu1 %v10005_v10  ;;  %9065 = vmatpush3.bf16.msra.mxu0 %v10040_v17  ;;  %v10086_v0 = vld [vmem:[#allocation5 + $0x2c8] sm:$0xff]   ;;  %v10041_v23 = vld [vmem:[#allocation3 + $0x150] ss:$52 sps:$4 sm:$0xff]   ;;  %v10061_v11 = vld [vmem:[#allocation3 + $0x220] ss:$52 sps:$4 sm:$0xff]  }
 0x27d   :  { %3709 = vmatprep.mubr.bf16.mxu1 %v10008_v8  ;;  %9066 = vmatprep.subr.bf16.mxu0 %v10045_v18  ;;  %v10044_v1 = vld [vmem:[#allocation3 + $0x270] ss:$52 sps:$4 sm:$0xff]   ;;  %v10087_v36 = vld [vmem:[#allocation5 + $0x288] sm:$0xff]   ;;  %v10072_v61 = vld [vmem:[#allocation5 + $0x238] sm:$0xff]  }
 0x27e   :  { %v10042_v2 = vld [vmem:[#allocation3 + $0x1bc] ss:$52 sps:$4 sm:$0xff]   ;;  %v10090_v3 = vld [vmem:[#allocation5 + $0x2c0] sm:$0xff]   ;;  %v10049_v6 = vld [vmem:[#allocation3 + $0x1b8] ss:$52 sps:$4 sm:$0xff]  }
 0x27f   :  { %3443 = vmatmul.mubr.bf16.gmra.mxu0 %v10020_v20  ;;  %v10046_v52 = vld [vmem:[#allocation3 + $0x2dc] ss:$52 sps:$4 sm:$0xff]   ;;  %v10093_v5 = vld [vmem:[#allocation5 + $0x280] sm:$0xff]   ;;  %v10055_v8 = vld [vmem:[#allocation3 + $0x2d8] ss:$52 sps:$4 sm:$0xff]  }
 0x280   :  { %3450 = vmatprep.mubr.bf16.mxu0 %v10022_v28  ;;  %9067 = vmatpush3.bf16.msra.mxu0 %v10048_v24  ;;  %v10051_v9 = vld [vmem:[#allocation3 + $0x224] ss:$52 sps:$4 sm:$0xff]   ;;  %v10059_v10 = vld [vmem:[#allocation3 + $0x14] ss:$52 sps:$4 sm:$0xff]   ;;  %v10063_v13 = vld [vmem:[#allocation3 + $0x28c] ss:$52 sps:$4 sm:$0xff]  }
 0x281   :  { %9068 = vmatprep.subr.bf16.mxu0 %v10056_v29  ;;  %v10067_v12 = vld [vmem:[#allocation3 + $0x10] ss:$52 sps:$4 sm:$0xff]   ;;  %v10073_v20 = vld [vmem:[#allocation3 + $0x288] ss:$52 sps:$4 sm:$0xff]  }
 0x282   :  { %v10070_v14 = vld [vmem:[#allocation3 + $0x7c] ss:$52 sps:$4 sm:$0xff]   ;;  %v10096_v24 = vld [vmem:[#allocation5 + $0x228] sm:$0xff]   ;;  %v10101_v28 = vld [vmem:[#allocation5 + $0x260] sm:$0xff]  }
 0x283   :  { %v10080_v17 = vld [vmem:[#allocation5 + $0x270] sm:$0xff]   ;;  %v10104_v29 = vld [vmem:[#allocation5 + $0x220] sm:$0xff]  }
 0x284   :  { %3710 = vmatmul.mubr.bf16.vlgmr.msra.gmra.mxu1 %v10017_v19  ;;  %9069 = vmatpush3.bf16.msra.mxu0 %v10058_v31  ;;  %v10084_v18 = vld [vmem:[#allocation5 + $0x230] sm:$0xff]   ;;  %v10092_v19 = vld [vmem:[#allocation5 + $0x268] sm:$0xff]  }
 0x285   :  { %3717 = vmatprep.mubr.bf16.mxu1 %v10018_v21  ;;  %9247 = vmatpush3.bf16.msra.mxu1 %v10053_v25  ;;  %v10079_v21 = vld [vmem:[#allocation3 + $0x78] ss:$52 sps:$4 sm:$0xff]   ;;  %v10075_v25 = vld [vmem:[#allocation3 + $0x2f4] ss:$52 sps:$4 sm:$0xff]   ;;  %v10085_v31 = vld [vmem:[#allocation3 + $0x2f0] ss:$52 sps:$4 sm:$0xff]  }
 0x286   :  { %9248 = vmatprep.subr.bf16.mxu1 %v10054_v27  ;;  %9182 = vmatprep.subr.bf16.mxu0 %v10068_v32  ;;  %v10082_v27 = vld [vmem:[#allocation3 + $0xe4] ss:$52 sps:$4 sm:$0xff]  }
 0x287   :  { %3451 = vmatmul.mubr.bf16.gmra.mxu0 %v10028_v34  ;;  %v10112_v32 = vld [vmem:[#allocation5 + $0x218] sm:$0xff]   ;;  %v10094_v34 = vld [vmem:[#allocation3 + $0x14c] ss:$52 sps:$4 sm:$0xff]  }
 0x288   :  { %3458 = vmatprep.mubr.bf16.mxu0 %v10030_v22  ;;  %v10125_v22 = vld [vmem:[#allocation5 + $0x248] sm:$0xff]  }
 0x289   :  { %9249 = vmatpush3.bf16.msra.mxu1 %v10057_v30  ;;  %v10109_v30 = vld [vmem:[#allocation5 + $0x258] sm:$0xff]  }
 0x28a   :  { %9250 = vmatprep.subr.bf16.mxu1 %v10062_v15  ;;  %v10091_v15 = vld [vmem:[#allocation3 + $0xe0] ss:$52 sps:$4 sm:$0xff]  }
 0x28c   :  { %3718 = vmatmul.mubr.bf16.gmra.mxu1 %v10025_v33  ;;  %v10088_v33 = vld [vmem:[#allocation3 + $0x2c] ss:$52 sps:$4 sm:$0xff]  }
 0x28d   :  { %3725 = vmatprep.mubr.bf16.mxu1 %v10026_v38  ;;  %9251 = vmatpush3.bf16.msra.mxu1 %v10065_v35  ;;  %v10117_v35 = vld [vmem:[#allocation5 + $0x250] sm:$0xff]  }
 0x28e   :  { %9252 = vmatprep.subr.bf16.mxu1 %v10066_v49  ;;  %v10120_v38 = vld [vmem:[#allocation5 + $0x210] sm:$0xff]   ;;  %v10097_v49 = vld [vmem:[#allocation3 + $0x28] ss:$52 sps:$4 sm:$0xff]  }
 0x28f   :  { %3459 = vmatmul.mubr.bf16.gmra.mxu0 %v10036_v54  ;;  %v10102_v54 = vld [vmem:[#allocation3 + $0x1b4] ss:$52 sps:$4 sm:$0xff]  }
 0x290   :  { %3466 = vmatprep.mubr.bf16.mxu0 %v10038_v59  ;;  %v10141_v59 = vld [vmem:[#allocation5 + $0x338] sm:$0xff]  }
 0x291   :  { %9253 = vmatpush3.bf16.msra.mxu1 %v10069_v50  ;;  %v10100_v50 = vld [vmem:[#allocation3 + $0x148] ss:$52 sps:$4 sm:$0xff]  }
 0x292   :  { %9254 = vmatprep.subr.bf16.mxu1 %v10074_v51  ;;  %v10128_v51 = vld [vmem:[#allocation5 + $0x208] sm:$0xff]  }
 0x294   :  { %3726 = vmatmul.mubr.bf16.gmra.mxu1 %v10033_v53  ;;  %v10098_v53 = vld [vmem:[#allocation3 + $0x94] ss:$52 sps:$4 sm:$0xff]  }
 0x295   :  { %3733 = vmatprep.mubr.bf16.mxu1 %v10034_v56  ;;  %9255 = vmatpush3.bf16.msra.mxu1 %v10077_v55  ;;  %v10133_v55 = vld [vmem:[#allocation5 + $0x240] sm:$0xff]  }
 0x296   :  { %9256 = vmatprep.subr.bf16.mxu1 %v10078_v60  ;;  %v10134_v56 = vld [vmem:[#allocation5 + $0x200] sm:$0xff]  }
 0x297   :  { %3467 = vmatmul.mubr.bf16.gmra.mxu0 %v10044_v1  ;;  %v10105_v60 = vld [vmem:[#allocation3 + $0x90] ss:$52 sps:$4 sm:$0xff]   ;;  %v10113_v1 = vld [vmem:[#allocation3 + $0xf8] ss:$52 sps:$4 sm:$0xff]  }
 0x298   :  { %3474 = vmatprep.mubr.bf16.mxu0 %v10046_v52  ;;  %v10118_v52 = vld [vmem:[#allocation3 + $0x284] ss:$52 sps:$4 sm:$0xff]  }
 0x299   :  { %9257 = vmatpush3.bf16.msra.mxu1 %v10081_v63  ;;  %v10108_v63 = vld [vmem:[#allocation3 + $0x1b0] ss:$52 sps:$4 sm:$0xff]  }
 0x29a   :  { %9258 = vmatprep.subr.bf16.mxu1 %v10086_v0  ;;  %v10106_v0 = vld [vmem:[#allocation3 + $0xfc] ss:$52 sps:$4 sm:$0xff]  }
 0x29c   :  { %3734 = vmatmul.mubr.bf16.gmra.mxu1 %v10041_v23  ;;  %v10110_v23 = vld [vmem:[#allocation3 + $0x21c] ss:$52 sps:$4 sm:$0xff]  }
 0x29d   :  { %3741 = vmatprep.mubr.bf16.mxu1 %v10042_v2  ;;  %9259 = vmatpush3.bf16.msra.mxu1 %v10087_v36  ;;  %v10116_v36 = vld [vmem:[#allocation3 + $0x218] ss:$52 sps:$4 sm:$0xff]  }
 0x29e   :  { %9260 = vmatprep.subr.bf16.mxu1 %v10090_v3  ;;  %v10114_v2 = vld [vmem:[#allocation3 + $0x164] ss:$52 sps:$4 sm:$0xff]   ;;  %v10121_v3 = vld [vmem:[#allocation3 + $0x160] ss:$52 sps:$4 sm:$0xff]  }
 0x29f   :  { %3475 = vmatmul.mubr.bf16.gmra.mxu0 %v10055_v8  ;;  %v10126_v8 = vld [vmem:[#allocation3 + $0x2ec] ss:$52 sps:$4 sm:$0xff]  }
 0x2a0   :  { %3612 = vmatprep.mubr.bf16.mxu0 %v10059_v10  ;;  %v10132_v10 = vld [vmem:[#allocation3 + $0x2e8] ss:$52 sps:$4 sm:$0xff]  }
 0x2a1   :  { %9261 = vmatpush3.bf16.msra.mxu1 %v10093_v5  ;;  %v10124_v5 = vld [vmem:[#allocation3 + $0x280] ss:$52 sps:$4 sm:$0xff]  }
 0x2a4   :  { %3742 = vmatmul.mubr.bf16.gmra.mxu1 %v10049_v6  ;;  %v10122_v6 = vld [vmem:[#allocation3 + $0x1cc] ss:$52 sps:$4 sm:$0xff]  }
 0x2a5   :  { %3749 = vmatprep.mubr.bf16.mxu1 %v10051_v9  ;;  %v10129_v9 = vld [vmem:[#allocation3 + $0x1c8] ss:$52 sps:$4 sm:$0xff]  }
 0x2a7   :  { %3613 = vmatmul.mubr.bf16.vlgmr.msra.gmra.mxu0 %v10067_v12  ;;  %v10135_v12 = vld [vmem:[#allocation3 + $0x24] ss:$52 sps:$4 sm:$0xff]  }
 0x2a8   :  { %3620 = vmatprep.mubr.bf16.mxu0 %v10070_v14  ;;  %9183 = vmatpush3.bf16.msra.mxu0 %v10072_v61  ;;  %v10137_v61 = vld [vmem:[#allocation3 + $0x230] ss:$52 sps:$4 sm:$0xff]  }
 0x2a9   :  { %9184 = vmatprep.subr.bf16.mxu0 %v10080_v17  ;;  %v10138_v14 = vld [vmem:[#allocation3 + $0x29c] ss:$52 sps:$4 sm:$0xff]   ;;  %v10142_v17 = vld [vmem:[#allocation3 + $0x8c] ss:$52 sps:$4 sm:$0xff]  }
 0x2ac   :  { %3750 = vmatmul.mubr.bf16.gmra.mxu1 %v10061_v11  ;;  %9185 = vmatpush3.bf16.msra.mxu0 %v10084_v18  ;;  %v10130_v11 = vld [vmem:[#allocation3 + $0x234] ss:$52 sps:$4 sm:$0xff]  }
 0x2ad   :  { %3757 = vmatprep.mubr.bf16.mxu1 %v10063_v13  ;;  %9186 = vmatprep.subr.bf16.mxu0 %v10092_v19  ;;  %v10140_v13 = vld [vmem:[#allocation3 + $0x20] ss:$52 sps:$4 sm:$0xff]   ;;  %v10153_v19 = vld [vmem:[#allocation5 + $0x328] sm:$0xff]  }
 0x2ae   :  { %v10148_v18 = vld [vmem:[#allocation5 + $0x330] sm:$0xff]  }
 0x2af   :  { %3621 = vmatmul.mubr.bf16.gmra.mxu0 %v10079_v21  ;;  %v10147_v21 = vld [vmem:[#allocation3 + $0x88] ss:$52 sps:$4 sm:$0xff]  }
 0x2b0   :  { %3628 = vmatprep.mubr.bf16.mxu0 %v10082_v27  ;;  %9187 = vmatpush3.bf16.msra.mxu0 %v10096_v24  ;;  %v10145_v24 = vld [vmem:[#allocation3 + $0x304] ss:$52 sps:$4 sm:$0xff]  }
 0x2b1   :  { %9188 = vmatprep.subr.bf16.mxu0 %v10101_v28  ;;  %v10157_v27 = vld [vmem:[#allocation5 + $0x320] sm:$0xff]   ;;  %v10161_v28 = vld [vmem:[#allocation5 + $0x318] sm:$0xff]  }
 0x2b4   :  { %3758 = vmatmul.mubr.bf16.gmra.mxu1 %v10073_v20  ;;  %9189 = vmatpush3.bf16.msra.mxu0 %v10104_v29  ;;  %v10144_v20 = vld [vmem:[#allocation3 + $0x298] ss:$52 sps:$4 sm:$0xff]   ;;  %v10151_v29 = vld [vmem:[#allocation3 + $0x300] ss:$52 sps:$4 sm:$0xff]  }
 0x2b5   :  { %3765 = vmatprep.mubr.bf16.mxu1 %v10075_v25  ;;  %9190 = vmatprep.subr.bf16.mxu0 %v10109_v30  ;;  %v10149_v25 = vld [vmem:[#allocation3 + $0xf4] ss:$52 sps:$4 sm:$0xff]   ;;  %v10152_v30 = vld [vmem:[#allocation3 + $0xf0] ss:$52 sps:$4 sm:$0xff]  }
 0x2b7   :  { %3629 = vmatmul.mubr.bf16.gmra.mxu0 %v10091_v15  ;;  %v10165_v15 = vld [vmem:[#allocation5 + $0x310] sm:$0xff]  }
 0x2b8   :  { %3636 = vmatprep.mubr.bf16.mxu0 %v10094_v34  ;;  %9191 = vmatpush3.bf16.msra.mxu0 %v10112_v32  ;;  %v10169_v32 = vld [vmem:[#allocation5 + $0x308] sm:$0xff]   ;;  %v10158_v34 = vld [vmem:[#allocation3 + $0x1c4] ss:$52 sps:$4 sm:$0xff]  }
 0x2b9   :  { %9192 = vmatprep.subr.bf16.mxu0 %v10117_v35  ;;  %v10173_v35 = vld [vmem:[#allocation5 + $0x300] sm:$0xff]  }
 0x2bc   :  { %3766 = vmatmul.mubr.bf16.gmra.mxu1 %v10085_v31  ;;  %9193 = vmatpush3.bf16.msra.mxu0 %v10120_v38  ;;  %v10154_v31 = vld [vmem:[#allocation3 + $0x15c] ss:$52 sps:$4 sm:$0xff]   ;;  %v10160_v38 = vld [vmem:[#allocation3 + $0x1c0] ss:$52 sps:$4 sm:$0xff]  }
 0x2bd   :  { %3903 = vmatprep.mubr.bf16.mxu1 %v10088_v33  ;;  %9194 = vmatprep.subr.bf16.mxu0 %v10125_v22  ;;  %v10156_v33 = vld [vmem:[#allocation3 + $0x158] ss:$52 sps:$4 sm:$0xff]  }
 0x2be   :  { %v10162_v22 = vld [vmem:[#allocation3 + $0x22c] ss:$52 sps:$4 sm:$0xff]  }
 0x2bf   :  { %3637 = vmatmul.mubr.bf16.gmra.mxu0 %v10100_v50  ;;  %v10164_v50 = vld [vmem:[#allocation3 + $0x228] ss:$52 sps:$4 sm:$0xff]  }
 0x2c0   :  { %3644 = vmatprep.mubr.bf16.mxu0 %v10102_v54  ;;  %9195 = vmatpush3.bf16.msra.mxu0 %v10128_v51  ;;  %v10166_v51 = vld [vmem:[#allocation3 + $0x294] ss:$52 sps:$4 sm:$0xff]  }
 0x2c1   :  { %9196 = vmatprep.subr.bf16.mxu0 %v10133_v55  ;;  %v10168_v55 = vld [vmem:[#allocation3 + $0x290] ss:$52 sps:$4 sm:$0xff]  }
 0x2c4   :  { %3904 = vmatmul.mubr.bf16.vlgmr.msra.gmra.mxu1 %v10097_v49  ;;  %9197 = vmatpush3.bf16.msra.mxu0 %v10134_v56  ;;  %v10170_v56 = vld [vmem:[#allocation3 + $0x2fc] ss:$52 sps:$4 sm:$0xff]  }
 0x2c5   :  { %3911 = vmatprep.mubr.bf16.mxu1 %v10098_v53  ;;  %9822 = vmatprep.subr.bf16.mxu0 %v10141_v59 }
 0x2c7   :  { %3645 = vmatmul.mubr.bf16.gmra.mxu0 %v10108_v63 }
 0x2c8   :  { %3652 = vmatprep.mubr.bf16.mxu0 %v10110_v23 }
 0x2cc   :  { %3912 = vmatmul.mubr.bf16.gmra.mxu1 %v10105_v60  ;;  %v10894_v60 = vpop.f32.mrf.mxu1 }
 0x2cd   :  { %3919 = vmatprep.mubr.bf16.mxu1 %v10106_v0 }
 0x2ce   :  { %v10898_v0 = vpop.f32.mrf.mxu1 }
 0x2cf   :  { %3653 = vmatmul.mubr.bf16.gmra.mxu0 %v10116_v36  ;;  %v10174_v36 = vld [vmem:[#allocation3 + $0x30] ss:$52 sps:$4 sm:$0xff]  }
 0x2d0   :  { %3660 = vmatprep.mubr.bf16.mxu0 %v10118_v52 }
 0x2d4   :  { %3920 = vmatmul.mubr.bf16.gmra.mxu1 %v10113_v1  ;;  %v10172_v1 = vld [vmem:[#allocation3 + $0x2f8] ss:$52 sps:$4 sm:$0xff]  }
 0x2d5   :  { %3927 = vmatprep.mubr.bf16.mxu1 %v10114_v2 }
 0x2d7   :  { %3661 = vmatmul.mubr.bf16.gmra.mxu0 %v10124_v5 }
 0x2d8   :  { %3668 = vmatprep.mubr.bf16.mxu0 %v10126_v8 }
 0x2dc   :  { %3928 = vmatmul.mubr.bf16.gmra.mxu1 %v10121_v3 }
 0x2dd   :  { %3935 = vmatprep.mubr.bf16.mxu1 %v10122_v6 }
 0x2df   :  { %3669 = vmatmul.mubr.bf16.gmra.mxu0 %v10132_v10  ;;  %v10175_v10 = vld [vmem:[#allocation3 + $0x98] ss:$52 sps:$4 sm:$0xff]  }
 0x2e0   :  { %3806 = vmatprep.mubr.bf16.mxu0 %v10135_v12 }
 0x2e4   :  { %3936 = vmatmul.mubr.bf16.gmra.mxu1 %v10129_v9 }
 0x2e5   :  { %3943 = vmatprep.mubr.bf16.mxu1 %v10130_v11  ;;  %v10176_v11 = vld [vmem:[#allocation3 + $0x100] ss:$52 sps:$4 sm:$0xff]  }
 0x2e7   :  { %3807 = vmatmul.mubr.bf16.vlgmr.msra.gmra.mxu0 %v10140_v13 }
 0x2e8   :  { %3814 = vmatprep.mubr.bf16.mxu0 %v10142_v17  ;;  %9823 = vmatpush3.bf16.msra.mxu0 %v10141_v59 }
 0x2e9   :  { %9824 = vmatprep.subr.bf16.mxu0 %v10148_v18 }
 0x2ec   :  { %3944 = vmatmul.mubr.bf16.gmra.mxu1 %v10137_v61  ;;  %9825 = vmatpush3.bf16.msra.mxu0 %v10148_v18 }
 0x2ed   :  { %3951 = vmatprep.mubr.bf16.mxu1 %v10138_v14  ;;  %9826 = vmatprep.subr.bf16.mxu0 %v10153_v19  ;;  %v10915_v14 = vld [vmem:[%s11549_s4] ss:$0 sm:$0xff] }
 0x2ef   :  { %3815 = vmatmul.mubr.bf16.gmra.mxu0 %v10147_v21 }
 0x2f0   :  { %3822 = vmatprep.mubr.bf16.mxu0 %v10149_v25  ;;  %9827 = vmatpush3.bf16.msra.mxu0 %v10153_v19 }
 0x2f1   :  { %9828 = vmatprep.subr.bf16.mxu0 %v10157_v27 }
 0x2f4   :  { %3952 = vmatmul.mubr.bf16.gmra.mxu1 %v10144_v20  ;;  %9829 = vmatpush3.bf16.msra.mxu0 %v10157_v27 }
 0x2f5   :  { %3959 = vmatprep.mubr.bf16.mxu1 %v10145_v24  ;;  %9830 = vmatprep.subr.bf16.mxu0 %v10161_v28 }
 0x2f7   :  { %3823 = vmatmul.mubr.bf16.gmra.mxu0 %v10152_v30  ;;  %v10178_v30 = vld [vmem:[#allocation3 + $0x1d0] ss:$52 sps:$4 sm:$0xff]  }
 0x2f8   :  { %3830 = vmatprep.mubr.bf16.mxu0 %v10154_v31  ;;  %9831 = vmatpush3.bf16.msra.mxu0 %v10161_v28  ;;  %v10177_v28 = vld [vmem:[#allocation3 + $0x168] ss:$52 sps:$4 sm:$0xff]  }
 0x2f9   :  { %9832 = vmatprep.subr.bf16.mxu0 %v10165_v15 }
 0x2fc   :  { %3960 = vmatmul.mubr.bf16.gmra.mxu1 %v10151_v29  ;;  %9833 = vmatpush3.bf16.msra.mxu0 %v10165_v15  ;;  %v10886_v49 = vpop.f32.mrf.mxu0 }
 0x2fd   :  { %9834 = vmatprep.subr.bf16.mxu0 %v10169_v32  ;;  %11561 = vst [vmem:[#allocation22_spill] sm:$0xff] %v10886_v49 }
 0x2fe   :  { %v10888_v53 = vpop.f32.mrf.mxu0 }
 0x2ff   :  { %3831 = vmatmul.mubr.bf16.gmra.mxu0 %v10156_v33  ;;  %11562 = vst [vmem:[#allocation23_spill] sm:$0xff] %v10888_v53  ;;  %v9011_v33 = vadd.f32 %v10870_v39, %v10868_v37  ;;  %v10180_v39 = vld [vmem:[#allocation3 + $0x2a0] ss:$52 sps:$4 sm:$0xff]  }
 0x300   :  { %3838 = vmatprep.mubr.bf16.mxu0 %v10158_v34  ;;  %9835 = vmatpush3.bf16.msra.mxu0 %v10169_v32  ;;  %v10890_v54 = vpop.f32.mrf.mxu0 }
 0x301   :  { %9836 = vmatprep.subr.bf16.mxu0 %v10173_v35  ;;  %11563 = vst [vmem:[#allocation24_spill] sm:$0xff] %v10890_v54 }
 0x302   :  { %v10892_v59 = vpop.f32.mrf.mxu0 }
 0x303   :  { %11564 = vst [vmem:[#allocation25_spill] sm:$0xff] %v10892_v59 }
 0x304   :  { %9837 = vmatpush3.bf16.msra.mxu0 %v10173_v35  ;;  %v10896_v63 = vpop.f32.mrf.mxu0 }
 0x305   :  { %11565 = vst [vmem:[#allocation26_spill] sm:$0xff] %v10896_v63 }
 0x306   :  { %v10900_v23 = vpop.f32.mrf.mxu0 }
 0x307   :  { %3839 = vmatmul.mubr.bf16.gmra.mxu0 %v10160_v38  ;;  %11566 = vst [vmem:[#allocation27_spill] sm:$0xff] %v10900_v23 }
 0x308   :  { %3846 = vmatprep.mubr.bf16.mxu0 %v10162_v22  ;;  %v10902_v52 = vpop.f32.mrf.mxu0 }
 0x309   :  { %11567 = vst [vmem:[#allocation28_spill] sm:$0xff] %v10902_v52 }
 0x30a   :  { %v10908_v8 = vpop.f32.mrf.mxu0 }
 0x30b   :  { %11568 = vst [vmem:[#allocation29_spill] sm:$0xff] %v10908_v8  ;;  %v10192_v8 = vld [vmem:[#allocation8 + $0x18] sm:$0xff]  }
 0x30f   :  { %3847 = vmatmul.mubr.bf16.gmra.mxu0 %v10164_v50 }
 0x310   :  { %3854 = vmatprep.mubr.bf16.mxu0 %v10166_v51 }
 0x317   :  { %3855 = vmatmul.mubr.bf16.gmra.mxu0 %v10168_v55 }
 0x318   :  { %3862 = vmatprep.mubr.bf16.mxu0 %v10170_v56 }
 0x31f   :  { %3863 = vmatmul.mubr.bf16.gmra.mxu0 %v10172_v1 }
 0x320   :  { %9838 = vmatprep.mubr.bf16.mxu0 %v10174_v36 }
 0x321   :  { %v9030_v2 = vpop.f32.mrf.mxu1 }
 0x323   :  { %v9031_v3 = vpop.f32.mrf.mxu1 }
 0x324   :  { %v10904_v5 = vadd.f32 %v9031_v3, %v9030_v2  ;;  %v10179_v2 = vld [vmem:[#allocation3 + $0x238] ss:$52 sps:$4 sm:$0xff]  }
 0x325   :  { %v10906_v6 = vpop.f32.mrf.mxu1 }
 0x327   :  { %v10910_v9 = vpop.f32.mrf.mxu1  ;;  %v8942_v61 = vpop.f32.mrf.mxu0  ;;  %9839 = vmatmul.mubr.bf16.vlgmr.msra.gmra.mxu0 %v10175_v10 }
 0x328   :  { %9842 = vmatprep.mubr.bf16.mxu0 %v10176_v11 }
 0x329   :  { %v9036_v12 = vpop.f32.mrf.mxu1  ;;  %v8943_v17 = vpop.f32.mrf.mxu0 }
 0x32a   :  { %v8944_v19 = vadd.f32 %v8943_v17, %v8942_v61 }
 0x32b   :  { %v9037_v13 = vpop.f32.mrf.mxu1  ;;  %v8945_v21 = vpop.f32.mrf.mxu0 }
 0x32c   :  { %v10917_v18 = vadd.f32 %v9037_v13, %v9036_v12  ;;  %v3421_v24 = vadd.f32 %v8944_v19, %v10915_v14  ;;  %v9017_v12 = vadd.f32 %v10876_v62, %v10874_v58 }
 0x32d   :  { %v10919_v20 = vpop.f32.mrf.mxu1  ;;  %v8946_v27 = vpop.f32.mrf.mxu0 }
 0x32e   :  { %v8947_v29 = vadd.f32 %v8946_v27, %v8945_v21  ;;  %v10925_v31 = vadd.f32 %v10866_v26, %v3421_v24 }
 0x32f   :  { %v10922_v25 = vpop.f32.mrf.mxu1  ;;  %v8948_v32 = vpop.f32.mrf.mxu0  ;;  %9843 = vmatmul.mubr.bf16.gmra.mxu0 %v10177_v28 }
 0x330   :  { %v3424_v34 = vadd.f32 %v8947_v29, %v10915_v14  ;;  %9846 = vmatprep.mubr.bf16.mxu0 %v10178_v30 }
 0x331   :  { %v8949_v38 = vpop.f32.mrf.mxu0 }
 0x332   :  { %v8950_v50 = vadd.f32 %v8949_v38, %v8948_v32  ;;  %v10932_v51 = vadd.f32 %v9011_v33, %v3424_v34  ;;  %v9023_v34 = vadd.f32 %v10882_v7, %v10880_v4 }
 0x333   :  { %v8951_v26 = vpop.f32.mrf.mxu0 }
 0x334   :  { %v9042_v15 = vpop.f32.mrf.mxu1  ;;  %v3429_v56 = vadd.f32 %v8950_v50, %v10915_v14 }
 0x335   :  { %v8952_v36 = vpop.f32.mrf.mxu0 }
 0x336   :  { %v9043_v35 = vpop.f32.mrf.mxu1  ;;  %v8953_v37 = vadd.f32 %v8952_v36, %v8951_v26  ;;  %v10940_v3 = vadd.f32 %v10872_v57, %v3429_v56 }
 0x337   :  { %v10930_v22 = vadd.f32 %v9043_v35, %v9042_v15  ;;  %v8954_v11 = vpop.f32.mrf.mxu0  ;;  %9847 = vmatmul.mubr.bf16.gmra.mxu0 %v10179_v2  ;;  %v10181_v15 = vld [vmem:[#allocation3 + $0x308] ss:$52 sps:$4 sm:$0xff]  }
 0x338   :  { %v10934_v55 = vpop.f32.mrf.mxu1  ;;  %v3432_v61 = vadd.f32 %v8953_v37, %v10915_v14  ;;  %9850 = vmatprep.mubr.bf16.mxu0 %v10180_v39 }
 0x339   :  { %v8955_v17 = vpop.f32.mrf.mxu0 }
 0x33a   :  { %v10937_v1 = vpop.f32.mrf.mxu1  ;;  %v8956_v21 = vadd.f32 %v8955_v17, %v8954_v11  ;;  %v10947_v24 = vadd.f32 %v9017_v12, %v3432_v61  ;;  %v9029_v61 = vadd.f32 %v10898_v0, %v10894_v60  ;;  %v10182_v17 = vld [vmem:[#allocation8 + $0x78] sm:$0xff]  }
 0x33b   :  { %v8957_v57 = vpop.f32.mrf.mxu0  ;;  %9326 = vmatprep.subr.bf16.mxu1 %v10182_v17 }
 0x33c   :  { %v9048_v10 = vpop.f32.mrf.mxu1  ;;  %v3437_v28 = vadd.f32 %v8956_v21, %v10915_v14  ;;  %v10183_v21 = vld [vmem:[#allocation8 + $0x38] sm:$0xff]  }
 0x33d   :  { %v8958_v30 = vpop.f32.mrf.mxu0  ;;  %9327 = vmatpush3.bf16.msra.mxu1 %v10183_v21 }
 0x33e   :  { %v9049_v13 = vpop.f32.mrf.mxu1  ;;  %v8959_v58 = vadd.f32 %v8958_v30, %v8957_v57  ;;  %v10955_v62 = vadd.f32 %v10878_v42, %v3437_v28 }
 0x33f   :  { %v10945_v19 = vadd.f32 %v9049_v13, %v9048_v10  ;;  %v8960_v33 = vpop.f32.mrf.mxu0  ;;  %9851 = vmatmul.mubr.bf16.gmra.mxu0 %v10181_v15 }
 0x340   :  { %v10949_v27 = vpop.f32.mrf.mxu1  ;;  %v3440_v35 = vadd.f32 %v8959_v58, %v10915_v14 }
 0x341   :  { %v8961_v50 = vpop.f32.mrf.mxu0 }
 0x342   :  { %v10952_v29 = vpop.f32.mrf.mxu1  ;;  %v8962_v56 = vadd.f32 %v8961_v50, %v8960_v33  ;;  %v10962_v36 = vadd.f32 %v9023_v34, %v3440_v35 }
 0x343   :  { %v8963_v37 = vpop.f32.mrf.mxu0 }
 0x344   :  { %v9134_v32 = vpop.f32.mrf.mxu1  ;;  %v3445_v42 = vadd.f32 %v8962_v56, %v10915_v14  ;;  %v9035_v56 = vadd.f32 %v10910_v9, %v10906_v6 }
 0x345   :  { %v8964_v10 = vpop.f32.mrf.mxu0 }
 0x346   :  { %v9135_v38 = vpop.f32.mrf.mxu1  ;;  %v8965_v11 = vadd.f32 %v8964_v10, %v8963_v37  ;;  %v10970_v4 = vadd.f32 %v10884_v16, %v3445_v42  ;;  %v10184_v42 = vld [vmem:[#allocation8 + $0x70] sm:$0xff]  }
 0x347   :  { %v10960_v26 = vadd.f32 %v9135_v38, %v9134_v32  ;;  %v8966_v12 = vpop.f32.mrf.mxu0  ;;  %v10185_v10 = vld [vmem:[#allocation8 + $0x30] sm:$0xff]   ;;  %9328 = vmatprep.subr.bf16.mxu1 %v10184_v42 }
 0x348   :  { %v10964_v2 = vpop.f32.mrf.mxu1  ;;  %v3448_v13 = vadd.f32 %v8965_v11, %v10915_v14  ;;  %9329 = vmatpush3.bf16.msra.mxu1 %v10185_v10 }
 0x349   :  { %v8967_v28 = vpop.f32.mrf.mxu0 }
 0x34a   :  { %v10967_v39 = vpop.f32.mrf.mxu1  ;;  %v8968_v15 = vadd.f32 %v8967_v28, %v8966_v12  ;;  %v10977_v58 = vadd.f32 %v9029_v61, %v3448_v13 }
 0x34b   :  { %v8969_v16 = vpop.f32.mrf.mxu0 }
 0x34c   :  { %v9140_v7 = vpop.f32.mrf.mxu1  ;;  %v3453_v33 = vadd.f32 %v8968_v15, %v10915_v14 }
 0x34d   :  { %v8970_v60 = vpop.f32.mrf.mxu0 }
 0x34e   :  { %v9141_v57 = vpop.f32.mrf.mxu1  ;;  %v8971_v0 = vadd.f32 %v8970_v60, %v8969_v16  ;;  %v10985_v35 = vadd.f32 %v10904_v5, %v3453_v33  ;;  %v9041_v33 = vadd.f32 %v10922_v25, %v10919_v20 }
 0x34f   :  { %v10975_v30 = vadd.f32 %v9141_v57, %v9140_v7  ;;  %v8972_v50 = vpop.f32.mrf.mxu0 }
 0x350   :  { %v10979_v32 = vpop.f32.mrf.mxu1  ;;  %v3456_v37 = vadd.f32 %v8971_v0, %v10915_v14  ;;  %v10186_v0 = vld [vmem:[#allocation8 + $0x68] sm:$0xff]  }
 0x351   :  { %v8973_v7 = vpop.f32.mrf.mxu0  ;;  %9330 = vmatprep.subr.bf16.mxu1 %v10186_v0 }
 0x352   :  { %v10982_v34 = vpop.f32.mrf.mxu1  ;;  %v8974_v61 = vadd.f32 %v8973_v7, %v8972_v50  ;;  %v10992_v13 = vadd.f32 %v9035_v56, %v3456_v37 }
 0x353   :  { %v8975_v5 = vpop.f32.mrf.mxu0 }
 0x354   :  { %v9146_v38 = vpop.f32.mrf.mxu1  ;;  %v3461_v21 = vadd.f32 %v8974_v61, %v10915_v14 }
 0x355   :  { %v8976_v6 = vpop.f32.mrf.mxu0 }
 0x356   :  { %v9147_v11 = vpop.f32.mrf.mxu1  ;;  %v8977_v9 = vadd.f32 %v8976_v6, %v8975_v5  ;;  %v11000_v28 = vadd.f32 %v10917_v18, %v3461_v21 }
 0x357   :  { %v10990_v12 = vadd.f32 %v9147_v11, %v9146_v38  ;;  %v8978_v16 = vpop.f32.mrf.mxu0  ;;  %v10187_v38 = vld [vmem:[#allocation8 + $0x28] sm:$0xff]  }
 0x358   :  { %v10994_v17 = vpop.f32.mrf.mxu1  ;;  %v3464_v60 = vadd.f32 %v8977_v9, %v10915_v14  ;;  %9331 = vmatpush3.bf16.msra.mxu1 %v10187_v38  ;;  %v9047_v9 = vadd.f32 %v10937_v1, %v10934_v55 }
 0x359   :  { %v8979_v56 = vpop.f32.mrf.mxu0 }
 0x35a   :  { %v10997_v57 = vpop.f32.mrf.mxu1  ;;  %v8980_v42 = vadd.f32 %v8979_v56, %v8978_v16  ;;  %v11007_v10 = vadd.f32 %v9041_v33, %v3464_v60  ;;  %v10188_v16 = vld [vmem:[#allocation8 + $0x60] sm:$0xff]  }
 0x35b   :  { %v8981_v18 = vpop.f32.mrf.mxu0  ;;  %v10189_v33 = vld [vmem:[#allocation8 + $0x20] sm:$0xff]   ;;  %9332 = vmatprep.subr.bf16.mxu1 %v10188_v16 }
 0x35c   :  { %v9152_v15 = vpop.f32.mrf.mxu1  ;;  %v3469_v7 = vadd.f32 %v8980_v42, %v10915_v14  ;;  %9333 = vmatpush3.bf16.msra.mxu1 %v10189_v33 }
 0x35d   :  { %v8982_v20 = vpop.f32.mrf.mxu0 }
 0x35e   :  { %v9153_v50 = vpop.f32.mrf.mxu1  ;;  %v8983_v25 = vadd.f32 %v8982_v20, %v8981_v18  ;;  %v11015_v5 = vadd.f32 %v10930_v22, %v3469_v7 }
 0x35f   :  { %v11005_v37 = vadd.f32 %v9153_v50, %v9152_v15  ;;  %v8984_v6 = vpop.f32.mrf.mxu0 }
 0x360   :  { %v11009_v11 = vpop.f32.mrf.mxu1  ;;  %v3472_v15 = vadd.f32 %v8983_v25, %v10915_v14 }
 0x361   :  { %v8985_v0 = vpop.f32.mrf.mxu0 }
 0x362   :  { %v11012_v61 = vpop.f32.mrf.mxu1  ;;  %v8986_v50 = vadd.f32 %v8985_v0, %v8984_v6  ;;  %v11022_v56 = vadd.f32 %v9047_v9, %v3472_v15  ;;  %v9053_v6 = vadd.f32 %v10952_v29, %v10949_v27  ;;  %v10193_v29 = vld [vmem:[#allocation8 + $0xb8] sm:$0xff]  }
 0x363   :  { %v8987_v22 = vpop.f32.mrf.mxu0 }
 0x364   :  { %v9158_v21 = vpop.f32.mrf.mxu1  ;;  %v3477_v18 = vadd.f32 %v8986_v50, %v10915_v14 }
 0x365   :  { %v8988_v55 = vpop.f32.mrf.mxu0 }
 0x366   :  { %v9159_v60 = vpop.f32.mrf.mxu1  ;;  %v8989_v1 = vadd.f32 %v8988_v55, %v8987_v22  ;;  %v11030_v20 = vadd.f32 %v10945_v19, %v3477_v18  ;;  %v10190_v18 = vld [vmem:[#allocation8 + $0x58] sm:$0xff]  }
 0x367   :  { %v11020_v38 = vadd.f32 %v9159_v60, %v9158_v21  ;;  %v9070_v21 = vpop.f32.mrf.mxu0  ;;  %v10191_v55 = vld [vmem:[#allocation8 + $0xf8] sm:$0xff]   ;;  %9334 = vmatprep.subr.bf16.mxu1 %v10190_v18 }
 0x368   :  { %v11024_v42 = vpop.f32.mrf.mxu1  ;;  %v3480_v9 = vadd.f32 %v8989_v1, %v10915_v14  ;;  %9390 = vmatprep.subr.bf16.mxu0 %v10191_v55  ;;  %9335 = vmatpush3.bf16.msra.mxu1 %v10192_v8  ;;  %v10196_v55 = vld [vmem:[#allocation8 + $0x50] sm:$0xff]  }
 0x369   :  { %v9071_v16 = vpop.f32.mrf.mxu0  ;;  %9391 = vmatpush3.bf16.msra.mxu0 %v10193_v29  ;;  %v10199_v29 = vld [vmem:[#allocation8 + $0xa8] sm:$0xff]   ;;  %9336 = vmatprep.subr.bf16.mxu1 %v10196_v55 }
 0x36a   :  { %v11027_v7 = vpop.f32.mrf.mxu1  ;;  %v9072_v33 = vadd.f32 %v9071_v16, %v9070_v21  ;;  %v11037_v0 = vadd.f32 %v9053_v6, %v3480_v9  ;;  %v10194_v9 = vld [vmem:[#allocation8 + $0xf0] sm:$0xff]  }
 0x36b   :  { %v9073_v22 = vpop.f32.mrf.mxu0  ;;  %9392 = vmatprep.subr.bf16.mxu0 %v10194_v9  ;;  %v10200_v9 = vld [vmem:[#allocation8 + $0xe0] sm:$0xff]  }
 0x36c   :  { %v9164_v25 = vpop.f32.mrf.mxu1  ;;  %v3615_v19 = vadd.f32 %v9072_v33, %v10925_v31  ;;  %v9139_v31 = vadd.f32 %v10967_v39, %v10964_v2  ;;  %v10197_v2 = vld [vmem:[#allocation8 + $0xe8] sm:$0xff]   ;;  %v10198_v39 = vld [vmem:[#allocation8 + $0x10] sm:$0xff]  }
 0x36d   :  { %v9074_v27 = vpop.f32.mrf.mxu0  ;;  %9337 = vmatpush3.bf16.msra.mxu1 %v10198_v39  ;;  %v10203_v39 = vld [vmem:[#allocation8 + $0xd8] sm:$0xff]  }
 0x36e   :  { %v9165_v15 = vpop.f32.mrf.mxu1  ;;  %v9075_v14 = vadd.f32 %v9074_v27, %v9073_v22  ;;  %v11045_v1 = vadd.f32 %v10960_v26, %v3615_v19 }
 0x36f   :  { %v11035_v60 = vadd.f32 %v9165_v15, %v9164_v25  ;;  %v9076_v21 = vpop.f32.mrf.mxu0  ;;  %v10195_v15 = vld [vmem:[#allocation8 + $0xb0] sm:$0xff]  }
 0x370   :  { %v11039_v50 = vpop.f32.mrf.mxu1  ;;  %v3618_v6 = vadd.f32 %v9075_v14, %v10932_v51  ;;  %9393 = vmatpush3.bf16.msra.mxu0 %v10195_v15  ;;  %v10201_v15 = vld [vmem:[#allocation8 + $0xa0] sm:$0xff]  }
 0x371   :  { %v9077_v33 = vpop.f32.mrf.mxu0  ;;  %9394 = vmatprep.subr.bf16.mxu0 %v10197_v2  ;;  %v10202_v2 = vld [vmem:[#allocation8 + $0x48] sm:$0xff]  }
 0x372   :  { %v11042_v52 = vpop.f32.mrf.mxu1  ;;  %v9078_v22 = vadd.f32 %v9077_v33, %v9076_v21  ;;  %v11052_v26 = vadd.f32 %v9139_v31, %v3618_v6  ;;  %9338 = vmatprep.subr.bf16.mxu1 %v10202_v2 }
 0x373   :  { %v9079_v18 = vpop.f32.mrf.mxu0 }
 0x374   :  { %v9170_v25 = vpop.f32.mrf.mxu1  ;;  %v3623_v8 = vadd.f32 %v9078_v22, %v10940_v3  ;;  %9395 = vmatpush3.bf16.msra.mxu0 %v10199_v29  ;;  %v9145_v3 = vadd.f32 %v10982_v34, %v10979_v32  ;;  %v10204_v32 = vld [vmem:[#allocation8 + $0x8] sm:$0xff]  }
 0x375   :  { %v9080_v27 = vpop.f32.mrf.mxu0  ;;  %9396 = vmatprep.subr.bf16.mxu0 %v10200_v9  ;;  %9339 = vmatpush3.bf16.msra.mxu1 %v10204_v32  ;;  %v10206_v9 = vld [vmem:[#allocation8 + $0xd0] sm:$0xff]   ;;  %v10208_v32 = vld [vmem:[#allocation8 + $0x40] sm:$0xff]  }
 0x376   :  { %v9171_v16 = vpop.f32.mrf.mxu1  ;;  %v9081_v14 = vadd.f32 %v9080_v27, %v9079_v18  ;;  %v10205_v27 = vld [vmem:[#allocation8 + $0x98] sm:$0xff]   ;;  %9340 = vmatprep.subr.bf16.mxu1 %v10208_v32 }
 0x377   :  { %v11050_v23 = vadd.f32 %v9171_v16, %v9170_v25  ;;  %v11060_v25 = vadd.f32 %v10975_v30, %v3623_v8  ;;  %v9082_v31 = vpop.f32.mrf.mxu0 }
 0x378   :  { %v11054_v19 = vpop.f32.mrf.mxu1  ;;  %v3626_v6 = vadd.f32 %v9081_v14, %v10947_v24  ;;  %9397 = vmatpush3.bf16.msra.mxu0 %v10201_v15  ;;  %v10207_v15 = vld [vmem:[#allocation8 + $0x90] sm:$0xff]  }
 0x379   :  { %v9083_v33 = vpop.f32.mrf.mxu0  ;;  %9398 = vmatprep.subr.bf16.mxu0 %v10203_v39 }
 0x37a   :  { %v11057_v51 = vpop.f32.mrf.mxu1  ;;  %v9084_v22 = vadd.f32 %v9083_v33, %v9082_v31  ;;  %v11069_v30 = vadd.f32 %v9145_v3, %v3626_v6 }
 0x37b   :  { %v9085_v8 = vpop.f32.mrf.mxu0 }
 0x37c   :  { %v11062_v21 = vpop.f32.mrf.mxu1  ;;  %v3631_v55 = vadd.f32 %v9084_v22, %v10955_v62  ;;  %9399 = vmatpush3.bf16.msra.mxu0 %v10205_v27  ;;  %v9151_v62 = vadd.f32 %v10997_v57, %v10994_v17  ;;  %v10210_v17 = vld [vmem:[#allocation8] sm:$0xff]   ;;  %v10211_v27 = vld [vmem:[#allocation8 + $0x88] sm:$0xff]  }
 0x37d   :  { %v9086_v24 = vpop.f32.mrf.mxu0  ;;  %9400 = vmatprep.subr.bf16.mxu0 %v10206_v9  ;;  %9341 = vmatpush3.bf16.msra.mxu1 %v10210_v17  ;;  %v10212_v9 = vld [vmem:[#allocation8 + $0xc0] sm:$0xff]  }
 0x37e   :  { %v11067_v16 = vpop.f32.mrf.mxu1  ;;  %v9087_v29 = vadd.f32 %v9086_v24, %v9085_v8  ;;  %v11077_v14 = vadd.f32 %v10990_v12, %v3631_v55  ;;  %v10209_v24 = vld [vmem:[#allocation8 + $0xc8] sm:$0xff]  }
 0x37f   :  { %v9088_v3 = vpop.f32.mrf.mxu0 }
 0x380   :  { %v11071_v18 = vpop.f32.mrf.mxu1  ;;  %11569 = vst [vmem:[#allocation30_spill] sm:$0xff] %v11077_v14  ;;  %v3634_v6 = vadd.f32 %v9087_v29, %v10962_v36  ;;  %9401 = vmatpush3.bf16.msra.mxu0 %v10207_v15  ;;  %v10213_v15 = vld [vmem:[#allocation8 + $0x80] sm:$0xff]  }
 0x381   :  { %v9089_v22 = vpop.f32.mrf.mxu0  ;;  %9402 = vmatprep.subr.bf16.mxu0 %v10209_v24 }
 0x382   :  { %v11074_v34 = vpop.f32.mrf.mxu1  ;;  %v9090_v8 = vadd.f32 %v9089_v22, %v9088_v3  ;;  %v11086_v12 = vadd.f32 %v9151_v62, %v3634_v6 }
 0x383   :  { %v9091_v2 = vpop.f32.mrf.mxu0 }
 0x384   :  { %v11079_v31 = vpop.f32.mrf.mxu1  ;;  %11570 = vst [vmem:[#allocation31_spill] sm:$0xff] %v11086_v12  ;;  %v3639_v39 = vadd.f32 %v9090_v8, %v10970_v4  ;;  %9403 = vmatpush3.bf16.msra.mxu0 %v10211_v27  ;;  %v9157_v4 = vadd.f32 %v11012_v61, %v11009_v11 }
 0x385   :  { %v9092_v36 = vpop.f32.mrf.mxu0  ;;  %9404 = vmatprep.subr.bf16.mxu0 %v10212_v9 }
 0x386   :  { %v11084_v33 = vpop.f32.mrf.mxu1  ;;  %v9093_v29 = vadd.f32 %v9092_v36, %v9091_v2  ;;  %v11094_v63 = vadd.f32 %v11005_v37, %v3639_v39  ;;  %v10220_v39 = vld [vmem:[#allocation8 + $0x178] sm:$0xff]  }
 0x387   :  { %v9094_v62 = vpop.f32.mrf.mxu0  ;;  %9454 = vmatprep.subr.bf16.mxu1 %v10220_v39 }
 0x388   :  { %v11088_v55 = vpop.f32.mrf.mxu1  ;;  %11571 = vst [vmem:[#allocation32_spill] sm:$0xff] %v11094_v63  ;;  %v3642_v6 = vadd.f32 %v9093_v29, %v10977_v58  ;;  %9405 = vmatpush3.bf16.msra.mxu0 %v10213_v15  ;;  %v9163_v29 = vadd.f32 %v11027_v7, %v11024_v42 }
 0x389   :  { %v9095_v8 = vpop.f32.mrf.mxu0 }
 0x38a   :  { %v11091_v57 = vpop.f32.mrf.mxu1  ;;  %v9096_v2 = vadd.f32 %v9095_v8, %v9094_v62  ;;  %v11103_v37 = vadd.f32 %v9157_v4, %v3642_v6 }
 0x38b   :  { %v9097_v24 = vpop.f32.mrf.mxu0 }
 0x38c   :  { %v11096_v3 = vpop.f32.mrf.mxu1  ;;  %11572 = vst [vmem:[#allocation33_spill] sm:$0xff] %v11103_v37  ;;  %v3647_v17 = vadd.f32 %v9096_v2, %v10985_v35 }
 0x38d   :  { %v9098_v11 = vpop.f32.mrf.mxu0 }
 0x38e   :  { %v11101_v22 = vpop.f32.mrf.mxu1  ;;  %v9099_v61 = vadd.f32 %v9098_v11, %v9097_v24  ;;  %v11109_v58 = vadd.f32 %v11020_v38, %v3647_v17 }
 0x38f   :  { %v9100_v27 = vpop.f32.mrf.mxu0 }
 0x390   :  { %v11105_v32 = vpop.f32.mrf.mxu1  ;;  %11573 = vst [vmem:[#allocation34_spill] sm:$0xff] %v11109_v58  ;;  %v3650_v62 = vadd.f32 %v9099_v61, %v10992_v13  ;;  %v9169_v13 = vadd.f32 %v11042_v52, %v11039_v50  ;;  %v9175_v52 = vadd.f32 %v11057_v51, %v11054_v19  ;;  %v10252_v50 = vld [vmem:[#allocation8 + $0x1f8] sm:$0xff]  }
 0x391   :  { %v9101_v4 = vpop.f32.mrf.mxu0  ;;  %9518 = vmatprep.subr.bf16.mxu0 %v10252_v50 }
 0x392   :  { %v11111_v36 = vpop.f32.mrf.mxu1  ;;  %v9102_v6 = vadd.f32 %v9101_v4, %v9100_v27  ;;  %v11116_v9 = vadd.f32 %v9163_v29, %v3650_v62 }
 0x393   :  { %v9103_v35 = vpop.f32.mrf.mxu0 }
 0x394   :  { %11574 = vst [vmem:[#allocation35_spill] sm:$0xff] %v11116_v9  ;;  %v11118_v15 = vpop.f32.mrf.mxu1  ;;  %v3655_v8 = vadd.f32 %v9102_v6, %v11000_v28 }
 0x395   :  { %v9104_v2 = vpop.f32.mrf.mxu0 }
 0x396   :  { %v9105_v38 = vadd.f32 %v9104_v2, %v9103_v35  ;;  %v11122_v39 = vadd.f32 %v11035_v60, %v3655_v8  ;;  %v11124_v24 = vpop.f32.mrf.mxu1 }
 0x397   :  { %v9106_v17 = vpop.f32.mrf.mxu0 }
 0x398   :  { %11575 = vst [vmem:[#allocation36_spill] sm:$0xff] %v11122_v39  ;;  %v3658_v42 = vadd.f32 %v9105_v38, %v11007_v10  ;;  %v11131_v27 = vpop.f32.mrf.mxu1 }
 0x399   :  { %v9107_v7 = vpop.f32.mrf.mxu0  ;;  %11577 = vst [vmem:[#allocation38_spill] sm:$0xff] %v11131_v27 }
 0x39a   :  { %v9108_v11 = vadd.f32 %v9107_v7, %v9106_v17  ;;  %v11129_v61 = vadd.f32 %v9169_v13, %v3658_v42  ;;  %v11137_v6 = vpop.f32.mrf.mxu1 }
 0x39b   :  { %v9109_v28 = vpop.f32.mrf.mxu0  ;;  %11579 = vst [vmem:[#allocation40_spill] sm:$0xff] %v11137_v6  ;;  %v9178_v6 = vadd.f32 %v11067_v16, %v11062_v21  ;;  %v9276_v21 = vadd.f32 %v11124_v24, %v11118_v15 }
 0x39c   :  { %11576 = vst [vmem:[#allocation37_spill] sm:$0xff] %v11129_v61  ;;  %v3663_v29 = vadd.f32 %v9108_v11, %v11015_v5  ;;  %v11144_v5 = vpop.f32.mrf.mxu1 }
 0x39d   :  { %v9110_v62 = vpop.f32.mrf.mxu0  ;;  %11581 = vst [vmem:[#allocation42_spill] sm:$0xff] %v11144_v5 }
 0x39e   :  { %v9111_v60 = vadd.f32 %v9110_v62, %v9109_v28  ;;  %v11135_v4 = vadd.f32 %v11050_v23, %v3663_v29  ;;  %v11149_v7 = vpop.f32.mrf.mxu1 }
 0x39f   :  { %v9112_v35 = vpop.f32.mrf.mxu0  ;;  %11583 = vst [vmem:[#allocation44_spill] sm:$0xff] %v11149_v7 }
 0x3a0   :  { %11578 = vst [vmem:[#allocation39_spill] sm:$0xff] %v11135_v4  ;;  %v3666_v10 = vadd.f32 %v9111_v60, %v11022_v56  ;;  %v11154_v51 = vpop.f32.mrf.mxu1 }
 0x3a1   :  { %v9113_v8 = vpop.f32.mrf.mxu0  ;;  %11585 = vst [vmem:[#allocation46_spill] sm:$0xff] %v11154_v51 }
 0x3a2   :  { %v9114_v2 = vadd.f32 %v9113_v8, %v9112_v35  ;;  %v11142_v38 = vadd.f32 %v9175_v52, %v3666_v10  ;;  %v9284_v62 = vpop.f32.mrf.mxu1 }
 0x3a3   :  { %v9115_v17 = vpop.f32.mrf.mxu0 }
 0x3a4   :  { %11580 = vst [vmem:[#allocation41_spill] sm:$0xff] %v11142_v38  ;;  %v11147_v23 = vadd.f32 %v9114_v2, %v11030_v20  ;;  %v9286_v52 = vpop.f32.mrf.mxu1 }
 0x3a5   :  { %v9116_v13 = vpop.f32.mrf.mxu0 }
 0x3a6   :  { %11582 = vst [vmem:[#allocation43_spill] sm:$0xff] %v11147_v23  ;;  %v9117_v42 = vadd.f32 %v9116_v13, %v9115_v17  ;;  %v9287_v50 = vpop.f32.mrf.mxu1 }
 0x3a7   :  { %v9198_v11 = vpop.f32.mrf.mxu0 }
 0x3a8   :  { %v11152_v19 = vadd.f32 %v9117_v42, %v11037_v0  ;;  %v9289_v17 = vpop.f32.mrf.mxu1 }
 0x3a9   :  { %v9199_v56 = vpop.f32.mrf.mxu0 }
 0x3aa   :  { %11584 = vst [vmem:[#allocation45_spill] sm:$0xff] %v11152_v19  ;;  %v9290_v0 = vpop.f32.mrf.mxu1  ;;  %v9200_v23 = vadd.f32 %v9199_v56, %v9198_v11  ;;  %v9267_v11 = vadd.f32 %v11091_v57, %v11088_v55  ;;  %v9270_v56 = vadd.f32 %v11101_v22, %v11096_v3  ;;  %v11594_v55 = vld [vmem:[#allocation42_spill] sm:$0xff]  ;;  %v11595_v57 = vld [vmem:[#allocation44_spill] sm:$0xff] }
 0x3ab   :  { %v9201_v28 = vpop.f32.mrf.mxu0  ;;  %v9282_v3 = vadd.f32 %v11595_v57, %v11594_v55 }
 0x3ac   :  { %v9292_v53 = vpop.f32.mrf.mxu1 }
 0x3ad   :  { %v9202_v29 = vpop.f32.mrf.mxu0 }
 0x3ae   :  { %v9293_v47 = vpop.f32.mrf.mxu1  ;;  %v9203_v51 = vadd.f32 %v9202_v29, %v9201_v28 }
 0x3af   :  { %v9204_v60 = vpop.f32.mrf.mxu0 }
 0x3b0   :  { %v9295_v44 = vpop.f32.mrf.mxu1  ;;  %v3812_v16 = vadd.f32 %v9203_v51, %v11052_v26  ;;  %v11597_v26 = vld [vmem:[#allocation43_spill] sm:$0xff] }
 0x3b1   :  { %v9205_v35 = vpop.f32.mrf.mxu0  ;;  %v3768_v24 = vadd.f32 %v9178_v6, %v11597_v26 }
 0x3b2   :  { %v9296_v40 = vpop.f32.mrf.mxu1 }
 0x3b3   :  { %v9207_v10 = vpop.f32.mrf.mxu0 }
 0x3b4   :  { %v11162_v61 = vpop.f32.mrf.mxu1 }
 0x3b5   :  { %v9208_v20 = vpop.f32.mrf.mxu0  ;;  %11589 = vst [vmem:[#allocation50_spill] sm:$0xff] %v11162_v61 }
 0x3b6   :  { %v9299_v58 = vpop.f32.mrf.mxu1  ;;  %v9209_v7 = vadd.f32 %v9208_v20, %v9207_v10  ;;  %v9297_v20 = vadd.f32 %v9296_v40, %v9295_v44  ;;  %v11603_v40 = vld [vmem:[#allocation30_spill] sm:$0xff] }
 0x3b7   :  { %v9210_v8 = vpop.f32.mrf.mxu0 }
 0x3b8   :  { %v11164_v14 = vpop.f32.mrf.mxu1 }
 0x3b9   :  { %v9211_v2 = vpop.f32.mrf.mxu0  ;;  %11590 = vst [vmem:[#allocation51_spill] sm:$0xff] %v11164_v14  ;;  %v9181_v14 = vadd.f32 %v11074_v34, %v11071_v18  ;;  %v3820_v18 = vadd.f32 %v9209_v7, %v11069_v30  ;;  %v9294_v7 = vadd.f32 %v9293_v47, %v9292_v53 }
 0x3ba   :  { %v11170_v63 = vpop.f32.mrf.mxu1  ;;  %v9212_v51 = vadd.f32 %v9211_v2, %v9210_v8 }
 0x3bb   :  { %v11156_v13 = vpop.f32.mrf.mxu0 }
 0x3bc   :  { %11586 = vst [vmem:[#allocation47_spill] sm:$0xff] %v11156_v13  ;;  %v9304_v27 = vpop.f32.mrf.mxu1  ;;  %v3825_v44 = vadd.f32 %v9212_v51, %v11603_v40 }
 0x3bd   :  { %v11158_v59 = vpop.f32.mrf.mxu0 }
 0x3be   :  { %11587 = vst [vmem:[#allocation48_spill] sm:$0xff] %v11158_v59  ;;  %v9305_v15 = vpop.f32.mrf.mxu1 }
 0x3bf   :  { %v9216_v42 = vpop.f32.mrf.mxu0 }
 0x3c1   :  { %v9217_v54 = vpop.f32.mrf.mxu0 }
 0x3c2   :  { %v9218_v22 = vadd.f32 %v9217_v54, %v9216_v42  ;;  %v11599_v42 = vld [vmem:[#allocation32_spill] sm:$0xff] }
 0x3c3   :  { %v9219_v49 = vpop.f32.mrf.mxu0 }
 0x3c5   :  { %v9220_v48 = vpop.f32.mrf.mxu0  ;;  %v11601_v57 = vld [vmem:[#allocation48_spill] sm:$0xff] }
 0x3c7   :  { %v11160_v46 = vpop.f32.mrf.mxu0 }
 0x3c8   :  { %11588 = vst [vmem:[#allocation49_spill] sm:$0xff] %v11160_v46  ;;  %v9206_v46 = vadd.f32 %v9205_v35, %v9204_v60  ;;  %v9264_v60 = vadd.f32 %v11084_v33, %v11079_v31  ;;  %v11592_v31 = vld [vmem:[#allocation38_spill] sm:$0xff]  ;;  %v11593_v33 = vld [vmem:[#allocation40_spill] sm:$0xff] }
 0x3c9   :  { %v9223_v45 = vpop.f32.mrf.mxu0  ;;  %v11194_v28 = vadd.f32 %v11593_v33, %v11592_v31  ;;  %v11598_v31 = vld [vmem:[#allocation45_spill] sm:$0xff] }
 0x3ca   :  { %v3817_v61 = vadd.f32 %v9206_v46, %v11060_v25  ;;  %v3809_v46 = vadd.f32 %v9200_v23, %v11045_v1  ;;  %v9273_v25 = vadd.f32 %v11111_v36, %v11105_v32  ;;  %v11596_v23 = vld [vmem:[#allocation46_spill] sm:$0xff]  ;;  %v11199_v32 = vadd.f32 %v9287_v50, %v9286_v52 }
 0x3cb   :  { %v9225_v43 = vpop.f32.mrf.mxu0  ;;  %v9285_v29 = vadd.f32 %v9284_v62, %v11596_v23  ;;  %v11201_v36 = vadd.f32 %v9290_v0, %v9289_v17  ;;  %v3771_v33 = vadd.f32 %v9181_v14, %v11598_v31  ;;  %v3833_v62 = vadd.f32 %v9218_v22, %v11599_v42  ;;  %v9307_v0 = vpop.f32.mrf.mxu1  ;;  %v11605_v22 = vld [vmem:[#allocation33_spill] sm:$0xff] }
 0x3cc   :  { %v3914_v1 = vadd.f32 %v9270_v56, %v3817_v61  ;;  %v3906_v10 = vadd.f32 %v9264_v60, %v3809_v46  ;;  %v3917_v54 = vadd.f32 %v9273_v25, %v3820_v18  ;;  %v3909_v61 = vadd.f32 %v9267_v11, %v3812_v16  ;;  %v11600_v56 = vld [vmem:[#allocation47_spill] sm:$0xff]  ;;  %v11604_v46 = vld [vmem:[#allocation50_spill] sm:$0xff] }
 0x3cd   :  { %v9226_v41 = vpop.f32.mrf.mxu0  ;;  %v9221_v52 = vadd.f32 %v9220_v48, %v9219_v49  ;;  %v9215_v6 = vadd.f32 %v11601_v57, %v11600_v56  ;;  %v9300_v25 = vadd.f32 %v9299_v58, %v11604_v46  ;;  %v9306_v48 = vadd.f32 %v9305_v15, %v9304_v27  ;;  %v11610_v27 = vld [vmem:[#allocation37_spill] sm:$0xff]  ;;  %v11611_v15 = vld [vmem:[#allocation39_spill] sm:$0xff] }
 0x3ce   :  { %v9227_v53 = vadd.f32 %v9226_v41, %v9225_v43  ;;  %v3930_v41 = vadd.f32 %v9282_v3, %v3833_v62  ;;  %v9308_v43 = vpop.f32.mrf.mxu1 }
 0x3cf   :  { %v9228_v38 = vpop.f32.mrf.mxu0  ;;  %v11602_v23 = vld [vmem:[#allocation49_spill] sm:$0xff]  ;;  %v11221_v62 = vadd.f32 %v9308_v43, %v9307_v0 }
 0x3d0   :  { %v9224_v47 = vadd.f32 %v9223_v45, %v11602_v23 }
 0x3d1   :  { %v9229_v4 = vpop.f32.mrf.mxu0 }
 0x3d2   :  { %v9230_v8 = vadd.f32 %v9229_v4, %v9228_v38  ;;  %v11606_v4 = vld [vmem:[#allocation31_spill] sm:$0xff] }
 0x3d3   :  { %v9231_v39 = vpop.f32.mrf.mxu0  ;;  %v3828_v38 = vadd.f32 %v9215_v6, %v11606_v4 }
 0x3d5   :  { %v9232_v9 = vpop.f32.mrf.mxu0  ;;  %v3925_v57 = vadd.f32 %v11194_v28, %v3828_v38 }
 0x3d6   :  { %v9233_v14 = vadd.f32 %v9232_v9, %v9231_v39  ;;  %v11608_v39 = vld [vmem:[#allocation35_spill] sm:$0xff] }
 0x3d7   :  { %v9234_v12 = vpop.f32.mrf.mxu0  ;;  %v3844_v51 = vadd.f32 %v9227_v53, %v11608_v39 }
 0x3d9   :  { %v9235_v37 = vpop.f32.mrf.mxu0  ;;  %v11226_v23 = vadd.f32 %v11201_v36, %v3844_v51 }
 0x3da   :  { %v9236_v49 = vadd.f32 %v9235_v37, %v9234_v12  ;;  %v3852_v12 = vadd.f32 %v9233_v14, %v11610_v27 }
 0x3db   :  { %v11166_v59 = vpop.f32.mrf.mxu0 }
 0x3dc   :  { %11591 = vst [vmem:[#allocation52_spill] sm:$0xff] %v11166_v59  ;;  %v3857_v31 = vadd.f32 %v9236_v49, %v11611_v15 }
 0x3dd   :  { %v11168_v13 = vpop.f32.mrf.mxu0 }
 0x3df   :  { %v9240_v19 = vpop.f32.mrf.mxu0 }
 0x3e1   :  { %v9241_v5 = vpop.f32.mrf.mxu0 }
 0x3e2   :  { %v9242_v16 = vadd.f32 %v9241_v5, %v9240_v19  ;;  %v3922_v19 = vadd.f32 %v9276_v21, %v3825_v44 }
 0x3e3   :  { %v11177_v59 = vpop.f32.mrf.mxu0 }
 0x3e5   :  { %v9244_v34 = vpop.f32.mrf.mxu0 }
 0x3e7   :  { %v9840_v30 = vpop.f32.mrf.mxu0 }
 0x3e8   :  { %v4011_v35 = vadd.f32 %v9840_v30, %v3914_v1  ;;  %v3836_v1 = vadd.f32 %v9221_v52, %v11605_v22  ;;  %v11607_v30 = vld [vmem:[#allocation34_spill] sm:$0xff] }
 0x3e9   :  { %v4002_v55 = vpop.f32.mrf.mxu0  ;;  %v3841_v9 = vadd.f32 %v9224_v47, %v11607_v30  ;;  %v11613_v47 = vld [vmem:[#allocation41_spill] sm:$0xff] }
 0x3ea   :  { %v4067_v50 = vmax.f32 %v4011_v35, 0.0  ;;  %v4003_v17 = vadd.f32 %v4002_v55, %v3906_v10  ;;  %v11609_v35 = vld [vmem:[#allocation36_spill] sm:$0xff] }
 0x3eb   :  { %v9841_v2 = vpop.f32.mrf.mxu0  ;;  %v3849_v10 = vadd.f32 %v9230_v8, %v11609_v35  ;;  %v11612_v55 = vld [vmem:[#allocation52_spill] sm:$0xff]  ;;  %v3938_v21 = vadd.f32 %v11199_v32, %v3841_v9 }
 0x3ec   :  { %4083 = vst [vmem:[#allocation2 + $0x18] sm:$0xff] %v4067_v50  ;;  %v4065_v60 = vmax.f32 %v4003_v17, 0.0  ;;  %v4014_v11 = vadd.f32 %v9841_v2, %v3917_v54  ;;  %v9239_v3 = vadd.f32 %v11168_v13, %v11612_v55  ;;  %v3865_v54 = vadd.f32 %v9242_v16, %v3768_v24 }
 0x3ed   :  { %v4005_v18 = vpop.f32.mrf.mxu0  ;;  %v3933_v17 = vadd.f32 %v9285_v29, %v3836_v1  ;;  %v3946_v6 = vadd.f32 %v9294_v7, %v3849_v10  ;;  %v11237_v7 = vadd.f32 %v9300_v25, %v3857_v31 }
 0x3ee   :  { %4081 = vst [vmem:[#allocation2 + $0x8] sm:$0xff] %v4065_v60  ;;  %v4068_v26 = vmax.f32 %v4014_v11, 0.0  ;;  %v4006_v45 = vadd.f32 %v4005_v18, %v3909_v61  ;;  %v9245_v61 = vadd.f32 %v9244_v34, %v11177_v59  ;;  %v11228_v34 = vadd.f32 %v9297_v20, %v3852_v12 }
 0x3ef   :  { %v9844_v58 = vpop.f32.mrf.mxu0  ;;  %v11231_v53 = vadd.f32 %v9239_v3, %v11613_v47  ;;  %v11235_v28 = vadd.f32 %v9306_v48, %v3865_v54 }
 0x3f0   :  { %4084 = vst [vmem:[#allocation2 + $0x20] sm:$0xff] %v4068_v26  ;;  %v4066_v37 = vmax.f32 %v4006_v45, 0.0  ;;  %v4027_v5 = vadd.f32 %v9844_v58, %v3930_v41  ;;  %v11233_v29 = vadd.f32 %v9245_v61, %v3771_v33 }
 0x3f1   :  { %v4018_v42 = vpop.f32.mrf.mxu0 }
 0x3f2   :  { %4082 = vst [vmem:[#allocation2 + $0x10] sm:$0xff] %v4066_v37  ;;  %v4071_v52 = vmax.f32 %v4027_v5, 0.0  ;;  %v4019_v50 = vadd.f32 %v4018_v42, %v3922_v19 }
 0x3f3   :  { %v9845_v56 = vpop.f32.mrf.mxu0  ;;  %v4675_v13 = vld [vmem:[#allocation2 + $0x18] sm:$0xff] }
 0x3f4   :  { %4087 = vst [vmem:[#allocation2 + $0x38] sm:$0xff] %v4071_v52  ;;  %v4069_v24 = vmax.f32 %v4019_v50, 0.0  ;;  %v4030_v59 = vadd.f32 %v9845_v56, %v3933_v17  ;;  %v8768_v0 = vpack.c.bf16 %v4675_v13, %v4675_v13 }
 0x3f5   :  { %v4021_v8 = vpop.f32.mrf.mxu0  ;;  %v4097_v32 = vld [vmem:[#allocation2 + $0x2] sm:$0xff] }
 0x3f6   :  { %v4193_v36 = vld [vmem:[#allocation2 + $0x3] sm:$0xff]  ;;  %4085 = vst [vmem:[#allocation2 + $0x28] sm:$0xff] %v4069_v24  ;;  %v4072_v40 = vmax.f32 %v4030_v59, 0.0  ;;  %v4022_v44 = vadd.f32 %v4021_v8, %v3925_v57  ;;  %v8670_v14 = vpack.c.bf16 %v4097_v32, %v4097_v32  ;;  %4715 = vst [vmem:[#allocation3 + $0x80] sm:$0xf] %v8768_v0 }
 0x3f7   :  { %v4289_v2 = vld [vmem:[#allocation2 + $0x4] sm:$0xff]  ;;  %v8686_v20 = vpack.c.bf16 %v4193_v36, %v4193_v36  ;;  %v9848_v49 = vpop.f32.mrf.mxu0  ;;  %v4100_v18 = vld [vmem:[#allocation2 + $0x1a] sm:$0xff] }
 0x3f8   :  { %v4385_v60 = vld [vmem:[#allocation2 + $0x5] sm:$0xff]  ;;  %v8702_v33 = vpack.c.bf16 %v4289_v2, %v4289_v2  ;;  %v4196_v48 = vld [vmem:[#allocation2 + $0x1b] sm:$0xff]  ;;  %4088 = vst [vmem:[#allocation2 + $0x40] sm:$0xff] %v4072_v40  ;;  %v4070_v26 = vmax.f32 %v4022_v44, 0.0  ;;  %v4043_v45 = vadd.f32 %v9848_v49, %v3946_v6  ;;  %4137 = vst [vmem:[#allocation3] sm:$0xf] %v8670_v14  ;;  %v8673_v41 = vpack.c.bf16 %v4100_v18, %v4100_v18 }
 0x3f9   :  { %v4481_v11 = vld [vmem:[#allocation2 + $0x6] sm:$0xff]  ;;  %v8718_v16 = vpack.c.bf16 %v4385_v60, %v4385_v60  ;;  %v4292_v22 = vld [vmem:[#allocation2 + $0x1c] sm:$0xff]  ;;  %4233 = vst [vmem:[#allocation3 + $0x4] sm:$0xf] %v8686_v20  ;;  %v8689_v43 = vpack.c.bf16 %v4196_v48, %v4196_v48  ;;  %v4034_v9 = vpop.f32.mrf.mxu0  ;;  %v4099_v55 = vld [vmem:[#allocation2 + $0x12] sm:$0xff] }
 0x3fa   :  { %v4577_v46 = vld [vmem:[#allocation2 + $0x7] sm:$0xff]  ;;  %v8734_v25 = vpack.c.bf16 %v4481_v11, %v4481_v11  ;;  %v4388_v4 = vld [vmem:[#allocation2 + $0x1d] sm:$0xff]  ;;  %4329 = vst [vmem:[#allocation3 + $0x8] sm:$0xf] %v8702_v33  ;;  %v8705_v10 = vpack.c.bf16 %v4292_v22, %v4292_v22  ;;  %4086 = vst [vmem:[#allocation2 + $0x30] sm:$0xff] %v4070_v26  ;;  %v4075_v37 = vmax.f32 %v4043_v45, 0.0  ;;  %v4035_v5 = vadd.f32 %v4034_v9, %v3938_v21 }
 0x3fb   :  { %v8750_v1 = vpack.c.bf16 %v4577_v46, %v4577_v46  ;;  %v4673_v38 = vld [vmem:[#allocation2 + $0x8] sm:$0xff]  ;;  %v4484_v30 = vld [vmem:[#allocation2 + $0x1e] sm:$0xff]  ;;  %4425 = vst [vmem:[#allocation3 + $0xc] sm:$0xf] %v8718_v16  ;;  %v8721_v58 = vpack.c.bf16 %v4388_v4, %v4388_v4  ;;  %4140 = vst [vmem:[#allocation3 + $0x9c] sm:$0xf] %v8673_v41  ;;  %v9849_v54 = vpop.f32.mrf.mxu0  ;;  %v8672_v52 = vpack.c.bf16 %v4099_v55, %v4099_v55 }
 0x3fc   :  { %v4098_v39 = vld [vmem:[#allocation2 + $0xa] sm:$0xff]  ;;  %4521 = vst [vmem:[#allocation3 + $0x10] sm:$0xf] %v8734_v25  ;;  %v8766_v27 = vpack.c.bf16 %v4673_v38, %v4673_v38  ;;  %v8737_v12 = vpack.c.bf16 %v4484_v30, %v4484_v30  ;;  %v4195_v3 = vld [vmem:[#allocation2 + $0x13] sm:$0xff]  ;;  %4236 = vst [vmem:[#allocation3 + $0xa0] sm:$0xf] %v8689_v43  ;;  %v4046_v21 = vadd.f32 %v9849_v54, %v11228_v34 }
 0x3fd   :  { %v4194_v51 = vld [vmem:[#allocation2 + $0xb] sm:$0xff]  ;;  %4617 = vst [vmem:[#allocation3 + $0x14] sm:$0xf] %v8750_v1  ;;  %v8671_v19 = vpack.c.bf16 %v4098_v39, %v4098_v39  ;;  %v8688_v50 = vpack.c.bf16 %v4195_v3, %v4195_v3  ;;  %v4291_v17 = vld [vmem:[#allocation2 + $0x14] sm:$0xff]  ;;  %4332 = vst [vmem:[#allocation3 + $0xa4] sm:$0xf] %v8705_v10  ;;  %v4037_v8 = vpop.f32.mrf.mxu0 }
 0x3fe   :  { %v4290_v35 = vld [vmem:[#allocation2 + $0xc] sm:$0xff]  ;;  %v8687_v15 = vpack.c.bf16 %v4194_v51, %v4194_v51  ;;  %v4387_v56 = vld [vmem:[#allocation2 + $0x15] sm:$0xff]  ;;  %4428 = vst [vmem:[#allocation3 + $0xa8] sm:$0xf] %v8721_v58  ;;  %4713 = vst [vmem:[#allocation3 + $0x18] sm:$0xf] %v8766_v27  ;;  %v8704_v13 = vpack.c.bf16 %v4291_v17, %v4291_v17  ;;  %v4038_v60 = vadd.f32 %v4037_v8, %v11226_v23 }
 0x3ff   :  { %v4386_v31 = vld [vmem:[#allocation2 + $0xd] sm:$0xff]  ;;  %v8703_v61 = vpack.c.bf16 %v4290_v35, %v4290_v35  ;;  %4524 = vst [vmem:[#allocation3 + $0xac] sm:$0xf] %v8737_v12  ;;  %4091 = vst [vmem:[#allocation2 + $0x68] sm:$0xff] %v4075_v37  ;;  %v4073_v6 = vmax.f32 %v4035_v5, 0.0  ;;  %v8720_v24 = vpack.c.bf16 %v4387_v56, %v4387_v56  ;;  %v4101_v32 = vld [vmem:[#allocation2 + $0x22] sm:$0xff]  ;;  %v9852_v18 = vpop.f32.mrf.mxu0  ;;  %v3965_v35 = vadd.f32 %v11221_v62, %v11233_v29 }
 0x400   :  { %v8719_v42 = vpack.c.bf16 %v4386_v31, %v4386_v31  ;;  %v4482_v57 = vld [vmem:[#allocation2 + $0xe] sm:$0xff]  ;;  %4138 = vst [vmem:[#allocation3 + $0x34] sm:$0xf] %v8671_v19  ;;  %4234 = vst [vmem:[#allocation3 + $0x38] sm:$0xf] %v8687_v15  ;;  %v4197_v36 = vld [vmem:[#allocation2 + $0x23] sm:$0xff]  ;;  %v8674_v11 = vpack.c.bf16 %v4101_v32, %v4101_v32  ;;  %v4059_v41 = vadd.f32 %v9852_v18, %v11235_v28 }
 0x401   :  { %v4578_v59 = vld [vmem:[#allocation2 + $0xf] sm:$0xff]  ;;  %4330 = vst [vmem:[#allocation3 + $0x3c] sm:$0xf] %v8703_v61  ;;  %4139 = vst [vmem:[#allocation3 + $0x68] sm:$0xf] %v8672_v52  ;;  %v4293_v2 = vld [vmem:[#allocation2 + $0x24] sm:$0xff]  ;;  %v8735_v40 = vpack.c.bf16 %v4482_v57, %v4482_v57  ;;  %v8690_v46 = vpack.c.bf16 %v4197_v36, %v4197_v36  ;;  %v4050_v51 = vpop.f32.mrf.mxu0 }
 0x402   :  { %v4674_v0 = vld [vmem:[#allocation2 + $0x10] sm:$0xff]  ;;  %4426 = vst [vmem:[#allocation3 + $0x40] sm:$0xf] %v8719_v42  ;;  %4235 = vst [vmem:[#allocation3 + $0x6c] sm:$0xf] %v8688_v50  ;;  %v8751_v44 = vpack.c.bf16 %v4578_v59, %v4578_v59  ;;  %v4076_v34 = vmax.f32 %v4046_v21, 0.0  ;;  %v8706_v48 = vpack.c.bf16 %v4293_v2, %v4293_v2  ;;  %v4051_v37 = vadd.f32 %v4050_v51, %v11237_v7 }
 0x403   :  { %v4769_v47 = vld [vmem:[#allocation2 + $0x9] sm:$0xff]  ;;  %v8767_v14 = vpack.c.bf16 %v4674_v0, %v4674_v0  ;;  %4089 = vst [vmem:[#allocation2 + $0x58] sm:$0xff] %v4073_v6  ;;  %4331 = vst [vmem:[#allocation3 + $0x70] sm:$0xf] %v8704_v13  ;;  %v4770_v33 = vld [vmem:[#allocation2 + $0x11] sm:$0xff]  ;;  %v4074_v23 = vmax.f32 %v4038_v60, 0.0  ;;  %v9853_v62 = vpop.f32.mrf.mxu0 }
 0x404   :  { %v8782_v20 = vpack.c.bf16 %v4769_v47, %v4769_v47  ;;  %4427 = vst [vmem:[#allocation3 + $0x74] sm:$0xf] %v8720_v24  ;;  %v4389_v49 = vld [vmem:[#allocation2 + $0x25] sm:$0xff]  ;;  %v4483_v16 = vld [vmem:[#allocation2 + $0x16] sm:$0xff]  ;;  %4522 = vst [vmem:[#allocation3 + $0x44] sm:$0xf] %v8735_v40  ;;  %v8783_v26 = vpack.c.bf16 %v4770_v33, %v4770_v33  ;;  %v4062_v52 = vadd.f32 %v9853_v62, %v3965_v35 }
 0x405   :  { %v8722_v22 = vpack.c.bf16 %v4389_v49, %v4389_v49  ;;  %v4104_v25 = vld [vmem:[#allocation2 + $0x3a] sm:$0xff]  ;;  %4618 = vst [vmem:[#allocation3 + $0x48] sm:$0xf] %v8751_v44  ;;  %4714 = vst [vmem:[#allocation3 + $0x4c] sm:$0xf] %v8767_v14  ;;  %v8736_v45 = vpack.c.bf16 %v4483_v16, %v4483_v16  ;;  %v11614_v9 = vld [vmem:[#allocation51_spill] sm:$0xff]  ;;  %v4053_v56 = vpop.f32.mrf.mxu0 }
 0x406   :  { %v4200_v1 = vld [vmem:[#allocation2 + $0x3b] sm:$0xff]  ;;  %4809 = vst [vmem:[#allocation3 + $0x1c] sm:$0xf] %v8782_v20  ;;  %4092 = vst [vmem:[#allocation2 + $0x70] sm:$0xff] %v4076_v34  ;;  %v8677_v43 = vpack.c.bf16 %v4104_v25, %v4104_v25  ;;  %v9303_v39 = vadd.f32 %v11170_v63, %v11614_v9  ;;  %v4102_v10 = vld [vmem:[#allocation2 + $0x2a] sm:$0xff]  ;;  %v4079_v28 = vmax.f32 %v4059_v41, 0.0 }
 0x407   :  { %4141 = vst [vmem:[#allocation3 + $0xd0] sm:$0xf] %v8674_v11  ;;  %4237 = vst [vmem:[#allocation3 + $0xd4] sm:$0xf] %v8690_v46  ;;  %v8693_v4 = vpack.c.bf16 %v4200_v1, %v4200_v1  ;;  %v4296_v38 = vld [vmem:[#allocation2 + $0x3c] sm:$0xff]  ;;  %v4198_v58 = vld [vmem:[#allocation2 + $0x2b] sm:$0xff]  ;;  %v8675_v19 = vpack.c.bf16 %v4102_v10, %v4102_v10 }
 0x408   :  { %v4392_v30 = vld [vmem:[#allocation2 + $0x3d] sm:$0xff]  ;;  %4333 = vst [vmem:[#allocation3 + $0xd8] sm:$0xf] %v8706_v48  ;;  %4429 = vst [vmem:[#allocation3 + $0xdc] sm:$0xf] %v8722_v22  ;;  %v8709_v27 = vpack.c.bf16 %v4296_v38, %v4296_v38  ;;  %v8691_v15 = vpack.c.bf16 %v4198_v58, %v4198_v58  ;;  %v4294_v63 = vld [vmem:[#allocation2 + $0x2c] sm:$0xff]  ;;  %v3957_v7 = vadd.f32 %v9303_v39, %v11231_v53 }
 0x409   :  { %v8725_v12 = vpack.c.bf16 %v4392_v30, %v4392_v30  ;;  %4810 = vst [vmem:[#allocation3 + $0x50] sm:$0xf] %v8783_v26  ;;  %4523 = vst [vmem:[#allocation3 + $0x78] sm:$0xf] %v8736_v45  ;;  %v10227_v5 = vld [vmem:[#allocation8 + $0x138] sm:$0xff]   ;;  %v4390_v31 = vld [vmem:[#allocation2 + $0x2d] sm:$0xff]  ;;  %v8707_v54 = vpack.c.bf16 %v4294_v63, %v4294_v63 }
 0x40a   :  { %4090 = vst [vmem:[#allocation2 + $0x60] sm:$0xff] %v4074_v23  ;;  %4144 = vst [vmem:[#allocation3 + $0x16c] sm:$0xf] %v8677_v43  ;;  %v10214_v29 = vld [vmem:[#allocation3] ss:$52 sps:$4 sm:$0xff]   ;;  %v8723_v61 = vpack.c.bf16 %v4390_v31, %v4390_v31  ;;  %v4077_v42 = vmax.f32 %v4051_v37, 0.0  ;;  %v4054_v13 = vadd.f32 %v4053_v56, %v3957_v7 }
 0x40b   :  { %4240 = vst [vmem:[#allocation3 + $0x170] sm:$0xf] %v8693_v4  ;;  %v10216_v55 = vld [vmem:[#allocation3 + $0x4] ss:$52 sps:$4 sm:$0xff]   ;;  %v10228_v3 = vld [vmem:[#allocation8 + $0x170] sm:$0xff]   ;;  %4095 = vst [vmem:[#allocation2 + $0x88] sm:$0xff] %v4079_v28 }
 0x40c   :  { %4336 = vst [vmem:[#allocation3 + $0x174] sm:$0xf] %v8709_v27  ;;  %4432 = vst [vmem:[#allocation3 + $0x178] sm:$0xf] %v8725_v12  ;;  %v10217_v50 = vld [vmem:[#allocation3 + $0x8] ss:$52 sps:$4 sm:$0xff]   ;;  %6856 = vmatprep.mubr.bf16.mxu1 %v10216_v55 }
 0x40d   :  { %v10219_v17 = vld [vmem:[#allocation3 + $0xc] ss:$52 sps:$4 sm:$0xff]   ;;  %4142 = vst [vmem:[#allocation3 + $0x104] sm:$0xf] %v8675_v19  ;;  %4238 = vst [vmem:[#allocation3 + $0x108] sm:$0xf] %v8691_v15  ;;  %6857 = vmatmul.mubr.bf16.vlgmr.msra.gmra.mxu1 %v10214_v29 }
 0x40e   :  { %v10223_v57 = vld [vmem:[#allocation3 + $0x6c] ss:$52 sps:$4 sm:$0xff]   ;;  %4334 = vst [vmem:[#allocation3 + $0x10c] sm:$0xf] %v8707_v54  ;;  %4430 = vst [vmem:[#allocation3 + $0x110] sm:$0xf] %v8723_v61  ;;  %6953 = vmatprep.mubr.bf16.mxu0 %v10219_v17  ;;  %9455 = vmatpush3.bf16.msra.mxu1 %v10227_v5 }
 0x40f   :  { %v10253_v6 = vld [vmem:[#allocation8 + $0x1b8] sm:$0xff]   ;;  %4093 = vst [vmem:[#allocation2 + $0x78] sm:$0xff] %v4077_v42  ;;  %v4080_v21 = vmax.f32 %v4062_v52, 0.0  ;;  %v10226_v24 = vld [vmem:[#allocation3 + $0x74] ss:$52 sps:$4 sm:$0xff]   ;;  %6954 = vmatmul.mubr.bf16.vlgmr.msra.gmra.mxu0 %v10217_v50  ;;  %6864 = vmatprep.mubr.bf16.mxu1 %v10223_v57  ;;  %v4078_v36 = vmax.f32 %v4054_v13, 0.0 }
 0x410   :  { %v10235_v59 = vld [vmem:[#allocation8 + $0x130] sm:$0xff]   ;;  %v10236_v53 = vld [vmem:[#allocation8 + $0x168] sm:$0xff]   ;;  %6961 = vmatprep.mubr.bf16.mxu0 %v10226_v24  ;;  %9456 = vmatprep.subr.bf16.mxu1 %v10228_v3  ;;  %v10244_v1 = vld [vmem:[#allocation8 + $0x160] sm:$0xff]  }
 0x411   :  { %v10262_v0 = vld [vmem:[#allocation8 + $0x1f0] sm:$0xff]   ;;  %4096 = vst [vmem:[#allocation2 + $0x90] sm:$0xff] %v4080_v21  ;;  %v10265_v20 = vld [vmem:[#allocation8 + $0x1e8] sm:$0xff]   ;;  %v4146_v46 = vld [vmem:[#allocation2 + $0x5a] sm:$0xff]  ;;  %9519 = vmatpush3.bf16.msra.mxu0 %v10253_v6 }
 0x412   :  { %v4103_v47 = vld [vmem:[#allocation2 + $0x32] sm:$0xff]  ;;  %4094 = vst [vmem:[#allocation2 + $0x80] sm:$0xff] %v4078_v36  ;;  %v10243_v49 = vld [vmem:[#allocation8 + $0x128] sm:$0xff]   ;;  %v8679_v16 = vpack.c.bf16 %v4146_v46, %v4146_v46  ;;  %v4242_v48 = vld [vmem:[#allocation2 + $0x5b] sm:$0xff]  ;;  %9520 = vmatprep.subr.bf16.mxu0 %v10262_v0  ;;  %9457 = vmatpush3.bf16.msra.mxu1 %v10235_v59 }
 0x413   :  { %v4199_v8 = vld [vmem:[#allocation2 + $0x33] sm:$0xff]  ;;  %v8676_v2 = vpack.c.bf16 %v4103_v47, %v4103_v47  ;;  %v10221_v22 = vld [vmem:[#allocation3 + $0x68] ss:$52 sps:$4 sm:$0xff]   ;;  %v8695_v45 = vpack.c.bf16 %v4242_v48, %v4242_v48  ;;  %v10274_v4 = vld [vmem:[#allocation8 + $0x1e0] sm:$0xff]   ;;  %9458 = vmatprep.subr.bf16.mxu1 %v10236_v53 }
 0x414   :  { %v10263_v32 = vld [vmem:[#allocation8 + $0x1b0] sm:$0xff]   ;;  %v8692_v40 = vpack.c.bf16 %v4199_v8, %v4199_v8  ;;  %v10273_v23 = vld [vmem:[#allocation8 + $0x1a8] sm:$0xff]   ;;  %4186 = vst [vmem:[#allocation3 + $0x1d4] sm:$0xf] %v8679_v16  ;;  %v4338_v30 = vld [vmem:[#allocation2 + $0x5c] sm:$0xff] }
 0x415   :  { %v4295_v44 = vld [vmem:[#allocation2 + $0x34] sm:$0xff]  ;;  %4143 = vst [vmem:[#allocation3 + $0x138] sm:$0xf] %v8676_v2  ;;  %v10224_v25 = vld [vmem:[#allocation3 + $0x70] ss:$52 sps:$4 sm:$0xff]   ;;  %9521 = vmatpush3.bf16.msra.mxu0 %v10263_v32  ;;  %6865 = vmatmul.mubr.bf16.gmra.mxu1 %v10221_v22  ;;  %v8711_v51 = vpack.c.bf16 %v4338_v30, %v4338_v30  ;;  %v10276_v22 = vld [vmem:[#allocation8 + $0x148] sm:$0xff]  }
 0x416   :  { %v4391_v14 = vld [vmem:[#allocation2 + $0x35] sm:$0xff]  ;;  %v8708_v34 = vpack.c.bf16 %v4295_v44, %v4295_v44  ;;  %4239 = vst [vmem:[#allocation3 + $0x13c] sm:$0xf] %v8692_v40  ;;  %4282 = vst [vmem:[#allocation3 + $0x1d8] sm:$0xf] %v8695_v45  ;;  %v4434_v35 = vld [vmem:[#allocation2 + $0x5d] sm:$0xff]  ;;  %9522 = vmatprep.subr.bf16.mxu0 %v10265_v20  ;;  %9459 = vmatpush3.bf16.msra.mxu1 %v10243_v49 }
 0x417   :  { %v8724_v60 = vpack.c.bf16 %v4391_v14, %v4391_v14  ;;  %v4145_v11 = vld [vmem:[#allocation2 + $0x52] sm:$0xff]  ;;  %v10251_v58 = vld [vmem:[#allocation8 + $0x120] sm:$0xff]   ;;  %v4148_v12 = vld [vmem:[#allocation2 + $0x6a] sm:$0xff]  ;;  %6962 = vmatmul.mubr.bf16.gmra.mxu0 %v10224_v25  ;;  %v8727_v28 = vpack.c.bf16 %v4434_v35, %v4434_v35  ;;  %4378 = vst [vmem:[#allocation3 + $0x1dc] sm:$0xf] %v8711_v51  ;;  %9460 = vmatprep.subr.bf16.mxu1 %v10244_v1 }
 0x418   :  { %v8678_v33 = vpack.c.bf16 %v4145_v11, %v4145_v11  ;;  %v4241_v18 = vld [vmem:[#allocation2 + $0x53] sm:$0xff]  ;;  %4335 = vst [vmem:[#allocation3 + $0x140] sm:$0xf] %v8708_v34  ;;  %v4147_v27 = vld [vmem:[#allocation2 + $0x62] sm:$0xff]  ;;  %v8681_v5 = vpack.c.bf16 %v4148_v12, %v4148_v12  ;;  %v4244_v15 = vld [vmem:[#allocation2 + $0x6b] sm:$0xff] }
 0x419   :  { %4431 = vst [vmem:[#allocation3 + $0x144] sm:$0xf] %v8724_v60  ;;  %v8694_v26 = vpack.c.bf16 %v4241_v18, %v4241_v18  ;;  %v10231_v41 = vld [vmem:[#allocation3 + $0xd4] ss:$52 sps:$4 sm:$0xff]   ;;  %v10234_v43 = vld [vmem:[#allocation3 + $0xdc] ss:$52 sps:$4 sm:$0xff]   ;;  %v8680_v37 = vpack.c.bf16 %v4147_v27, %v4147_v27  ;;  %v8697_v62 = vpack.c.bf16 %v4244_v15, %v4244_v15  ;;  %9523 = vmatpush3.bf16.msra.mxu0 %v10273_v23 }
 0x41a   :  { %4185 = vst [vmem:[#allocation3 + $0x1a0] sm:$0xf] %v8678_v33  ;;  %v4337_v38 = vld [vmem:[#allocation2 + $0x54] sm:$0xff]  ;;  %6872 = vmatprep.mubr.bf16.mxu1 %v10231_v41  ;;  %v4243_v19 = vld [vmem:[#allocation2 + $0x63] sm:$0xff]  ;;  %6969 = vmatprep.mubr.bf16.mxu0 %v10234_v43  ;;  %v4340_v29 = vld [vmem:[#allocation2 + $0x6c] sm:$0xff] }
 0x41b   :  { %4281 = vst [vmem:[#allocation3 + $0x1a4] sm:$0xf] %v8694_v26  ;;  %v4433_v9 = vld [vmem:[#allocation2 + $0x55] sm:$0xff]  ;;  %v8710_v39 = vpack.c.bf16 %v4337_v38, %v4337_v38  ;;  %v4339_v63 = vld [vmem:[#allocation2 + $0x64] sm:$0xff]  ;;  %v8696_v31 = vpack.c.bf16 %v4243_v19, %v4243_v19  ;;  %v4436_v54 = vld [vmem:[#allocation2 + $0x6d] sm:$0xff]  ;;  %v8713_v42 = vpack.c.bf16 %v4340_v29, %v4340_v29  ;;  %9524 = vmatprep.subr.bf16.mxu0 %v10274_v4 }
 0x41c   :  { %v8726_v10 = vpack.c.bf16 %v4433_v9, %v4433_v9  ;;  %v8712_v55 = vpack.c.bf16 %v4339_v63, %v4339_v63  ;;  %v4435_v3 = vld [vmem:[#allocation2 + $0x65] sm:$0xff]  ;;  %4474 = vst [vmem:[#allocation3 + $0x1e0] sm:$0xf] %v8727_v28  ;;  %v10254_v61 = vld [vmem:[#allocation8 + $0x158] sm:$0xff]   ;;  %4187 = vst [vmem:[#allocation3 + $0x208] sm:$0xf] %v8680_v37  ;;  %v8729_v7 = vpack.c.bf16 %v4436_v54, %v4436_v54  ;;  %9461 = vmatpush3.bf16.msra.mxu1 %v10251_v58 }
 0x41d   :  { %4377 = vst [vmem:[#allocation3 + $0x1a8] sm:$0xf] %v8710_v39  ;;  %4188 = vst [vmem:[#allocation3 + $0x23c] sm:$0xf] %v8681_v5  ;;  %v8728_v52 = vpack.c.bf16 %v4435_v3, %v4435_v3  ;;  %v10275_v50 = vld [vmem:[#allocation8 + $0x1a0] sm:$0xff]   ;;  %v10261_v56 = vld [vmem:[#allocation8 + $0x118] sm:$0xff]   ;;  %9462 = vmatprep.subr.bf16.mxu1 %v10254_v61 }
 0x41e   :  { %4473 = vst [vmem:[#allocation3 + $0x1ac] sm:$0xf] %v8726_v10  ;;  %v10229_v17 = vld [vmem:[#allocation3 + $0xd0] ss:$52 sps:$4 sm:$0xff]   ;;  %4283 = vst [vmem:[#allocation3 + $0x20c] sm:$0xf] %v8696_v31  ;;  %9525 = vmatpush3.bf16.msra.mxu0 %v10275_v50 }
 0x41f   :  { %4284 = vst [vmem:[#allocation3 + $0x240] sm:$0xf] %v8697_v62  ;;  %4379 = vst [vmem:[#allocation3 + $0x210] sm:$0xf] %v8712_v55  ;;  %v10277_v57 = vld [vmem:[#allocation8 + $0x1d8] sm:$0xff]   ;;  %v10264_v21 = vld [vmem:[#allocation8 + $0x150] sm:$0xff]   ;;  %6873 = vmatmul.mubr.bf16.gmra.mxu1 %v10229_v17 }
 0x420   :  { %v10232_v6 = vld [vmem:[#allocation3 + $0xd8] ss:$52 sps:$4 sm:$0xff]   ;;  %4380 = vst [vmem:[#allocation3 + $0x244] sm:$0xf] %v8713_v42  ;;  %4475 = vst [vmem:[#allocation3 + $0x214] sm:$0xf] %v8728_v52  ;;  %9526 = vmatprep.subr.bf16.mxu0 %v10277_v57  ;;  %9463 = vmatpush3.bf16.msra.mxu1 %v10261_v56 }
 0x421   :  { %4476 = vst [vmem:[#allocation3 + $0x248] sm:$0xf] %v8729_v7  ;;  %v4149_v13 = vld [vmem:[#allocation2 + $0x72] sm:$0xff]  ;;  %v4150_v24 = vld [vmem:[#allocation2 + $0x7a] sm:$0xff]  ;;  %6970 = vmatmul.mubr.bf16.gmra.mxu0 %v10232_v6  ;;  %v4151_v18 = vld [vmem:[#allocation2 + $0x82] sm:$0xff]  ;;  %9464 = vmatprep.subr.bf16.mxu1 %v10264_v21 }
 0x422   :  { %v4245_v59 = vld [vmem:[#allocation2 + $0x73] sm:$0xff]  ;;  %v8682_v47 = vpack.c.bf16 %v4149_v13, %v4149_v13  ;;  %v8683_v8 = vpack.c.bf16 %v4150_v24, %v4150_v24  ;;  %v4246_v40 = vld [vmem:[#allocation2 + $0x7b] sm:$0xff]  ;;  %v4152_v48 = vld [vmem:[#allocation2 + $0x8a] sm:$0xff]  ;;  %v8684_v25 = vpack.c.bf16 %v4151_v18, %v4151_v18 }
 0x423   :  { %v10285_v0 = vld [vmem:[#allocation8 + $0x198] sm:$0xff]   ;;  %v8698_v32 = vpack.c.bf16 %v4245_v59, %v4245_v59  ;;  %v10286_v36 = vld [vmem:[#allocation8 + $0x1d0] sm:$0xff]   ;;  %v8699_v14 = vpack.c.bf16 %v4246_v40, %v4246_v40  ;;  %v8685_v1 = vpack.c.bf16 %v4152_v48, %v4152_v48  ;;  %v10289_v45 = vld [vmem:[#allocation8 + $0x1c8] sm:$0xff]  }
 0x424   :  { %v10239_v53 = vld [vmem:[#allocation3 + $0x13c] ss:$52 sps:$4 sm:$0xff]   ;;  %v10242_v2 = vld [vmem:[#allocation3 + $0x144] ss:$52 sps:$4 sm:$0xff]   ;;  %4189 = vst [vmem:[#allocation3 + $0x270] sm:$0xf] %v8682_v47  ;;  %9527 = vmatpush3.bf16.msra.mxu0 %v10285_v0 }
 0x425   :  { %v4341_v44 = vld [vmem:[#allocation2 + $0x74] sm:$0xff]  ;;  %4190 = vst [vmem:[#allocation3 + $0x2a4] sm:$0xf] %v8683_v8  ;;  %4285 = vst [vmem:[#allocation3 + $0x274] sm:$0xf] %v8698_v32  ;;  %v4342_v20 = vld [vmem:[#allocation2 + $0x7c] sm:$0xff]  ;;  %6880 = vmatprep.mubr.bf16.mxu1 %v10239_v53  ;;  %6977 = vmatprep.mubr.bf16.mxu0 %v10242_v2 }
 0x426   :  { %v8714_v34 = vpack.c.bf16 %v4341_v44, %v4341_v44  ;;  %v4437_v60 = vld [vmem:[#allocation2 + $0x75] sm:$0xff]  ;;  %v4438_v11 = vld [vmem:[#allocation2 + $0x7d] sm:$0xff]  ;;  %v8715_v49 = vpack.c.bf16 %v4342_v20, %v4342_v20  ;;  %4286 = vst [vmem:[#allocation3 + $0x2a8] sm:$0xf] %v8699_v14  ;;  %4191 = vst [vmem:[#allocation3 + $0x2d8] sm:$0xf] %v8684_v25  ;;  %9528 = vmatprep.subr.bf16.mxu0 %v10286_v36 }
 0x427   :  { %v10272_v46 = vld [vmem:[#allocation8 + $0x110] sm:$0xff]   ;;  %v8730_v33 = vpack.c.bf16 %v4437_v60, %v4437_v60  ;;  %v8731_v16 = vpack.c.bf16 %v4438_v11, %v4438_v11  ;;  %v10237_v23 = vld [vmem:[#allocation3 + $0x138] ss:$52 sps:$4 sm:$0xff]   ;;  %4192 = vst [vmem:[#allocation3 + $0x30c] sm:$0xf] %v8685_v1  ;;  %v4247_v38 = vld [vmem:[#allocation2 + $0x83] sm:$0xff] }
 0x428   :  { %4381 = vst [vmem:[#allocation3 + $0x278] sm:$0xf] %v8714_v34  ;;  %v10287_v26 = vld [vmem:[#allocation8 + $0x190] sm:$0xff]   ;;  %4382 = vst [vmem:[#allocation3 + $0x2ac] sm:$0xf] %v8715_v49  ;;  %v10284_v41 = vld [vmem:[#allocation8 + $0x108] sm:$0xff]   ;;  %9465 = vmatpush3.bf16.msra.mxu1 %v10272_v46  ;;  %v8700_v51 = vpack.c.bf16 %v4247_v38, %v4247_v38 }
 0x429   :  { %4477 = vst [vmem:[#allocation3 + $0x27c] sm:$0xf] %v8730_v33  ;;  %4478 = vst [vmem:[#allocation3 + $0x2b0] sm:$0xf] %v8731_v16  ;;  %v10240_v43 = vld [vmem:[#allocation3 + $0x140] ss:$52 sps:$4 sm:$0xff]   ;;  %9466 = vmatprep.subr.bf16.mxu1 %v10276_v22  ;;  %9529 = vmatpush3.bf16.msra.mxu0 %v10287_v26 }
 0x42a   :  { %v10247_v4 = vld [vmem:[#allocation3 + $0x1a4] ss:$52 sps:$4 sm:$0xff]   ;;  %v10294_v9 = vld [vmem:[#allocation8 + $0x188] sm:$0xff]   ;;  %6881 = vmatmul.mubr.bf16.gmra.mxu1 %v10237_v23  ;;  %4287 = vst [vmem:[#allocation3 + $0x2dc] sm:$0xf] %v8700_v51  ;;  %9530 = vmatprep.subr.bf16.mxu0 %v10289_v45  ;;  %v4678_v44 = vld [vmem:[#allocation2 + $0x30] sm:$0xff] }
 0x42b   :  { %v10288_v30 = vld [vmem:[#allocation8 + $0x140] sm:$0xff]   ;;  %v4248_v39 = vld [vmem:[#allocation2 + $0x8b] sm:$0xff]  ;;  %6978 = vmatmul.mubr.bf16.gmra.mxu0 %v10240_v43  ;;  %6888 = vmatprep.mubr.bf16.mxu1 %v10247_v4  ;;  %v10300_v29 = vld [vmem:[#allocation8 + $0x278] sm:$0xff]   ;;  %v8771_v11 = vpack.c.bf16 %v4678_v44, %v4678_v44 }
 0x42c   :  { %v4343_v35 = vld [vmem:[#allocation2 + $0x84] sm:$0xff]  ;;  %v4344_v10 = vld [vmem:[#allocation2 + $0x8c] sm:$0xff]  ;;  %v8701_v27 = vpack.c.bf16 %v4248_v39, %v4248_v39  ;;  %9467 = vmatpush3.bf16.msra.mxu1 %v10284_v41  ;;  %v10245_v55 = vld [vmem:[#allocation3 + $0x1a0] ss:$52 sps:$4 sm:$0xff]  }
 0x42d   :  { %v10298_v58 = vld [vmem:[#allocation8 + $0x1c0] sm:$0xff]   ;;  %v8716_v12 = vpack.c.bf16 %v4343_v35, %v4343_v35  ;;  %v8717_v28 = vpack.c.bf16 %v4344_v10, %v4344_v10  ;;  %v4440_v5 = vld [vmem:[#allocation2 + $0x8d] sm:$0xff]  ;;  %9468 = vmatprep.subr.bf16.mxu1 %v10288_v30  ;;  %9531 = vmatpush3.bf16.msra.mxu0 %v10294_v9  ;;  %v10332_v3 = vld [vmem:[#allocation8 + $0x2f8] sm:$0xff]   ;;  %4718 = vst [vmem:[#allocation3 + $0x11c] sm:$0xf] %v8771_v11 }
 0x42e   :  { %v4439_v37 = vld [vmem:[#allocation2 + $0x85] sm:$0xff]  ;;  %v8733_v63 = vpack.c.bf16 %v4440_v5, %v4440_v5  ;;  %4288 = vst [vmem:[#allocation3 + $0x310] sm:$0xf] %v8701_v27  ;;  %9532 = vmatprep.subr.bf16.mxu0 %v10298_v58  ;;  %v4579_v42 = vld [vmem:[#allocation2 + $0x17] sm:$0xff]  ;;  %v4486_v59 = vld [vmem:[#allocation2 + $0x2e] sm:$0xff] }
 0x42f   :  { %v10250_v19 = vld [vmem:[#allocation3 + $0x1ac] ss:$52 sps:$4 sm:$0xff]   ;;  %v8732_v15 = vpack.c.bf16 %v4439_v37, %v4439_v37  ;;  %4383 = vst [vmem:[#allocation3 + $0x2e0] sm:$0xf] %v8716_v12  ;;  %4384 = vst [vmem:[#allocation3 + $0x314] sm:$0xf] %v8717_v28  ;;  %v8752_v50 = vpack.c.bf16 %v4579_v42, %v4579_v42  ;;  %v8739_v8 = vpack.c.bf16 %v4486_v59, %v4486_v59 }
 0x430   :  { %6985 = vmatprep.mubr.bf16.mxu0 %v10250_v19  ;;  %4480 = vst [vmem:[#allocation3 + $0x318] sm:$0xf] %v8733_v63  ;;  %v10290_v31 = vld [vmem:[#allocation8 + $0x100] sm:$0xff]   ;;  %v10248_v54 = vld [vmem:[#allocation3 + $0x1a8] ss:$52 sps:$4 sm:$0xff]   ;;  %v4582_v36 = vld [vmem:[#allocation2 + $0x2f] sm:$0xff] }
 0x431   :  { %4479 = vst [vmem:[#allocation3 + $0x2e4] sm:$0xf] %v8732_v15  ;;  %v10299_v62 = vld [vmem:[#allocation8 + $0x180] sm:$0xff]   ;;  %9469 = vmatpush3.bf16.msra.mxu1 %v10290_v31  ;;  %v10260_v47 = vld [vmem:[#allocation3 + $0x214] ss:$52 sps:$4 sm:$0xff]   ;;  %v8755_v40 = vpack.c.bf16 %v4582_v36, %v4582_v36  ;;  %v4679_v45 = vld [vmem:[#allocation2 + $0x38] sm:$0xff] }
 0x432   :  { %v10257_v61 = vld [vmem:[#allocation3 + $0x20c] ss:$52 sps:$4 sm:$0xff]   ;;  %9533 = vmatpush3.bf16.msra.mxu0 %v10299_v62  ;;  %9582 = vmatprep.subr.bf16.mxu1 %v10300_v29  ;;  %4619 = vst [vmem:[#allocation3 + $0x7c] sm:$0xf] %v8752_v50  ;;  %4526 = vst [vmem:[#allocation3 + $0x114] sm:$0xf] %v8739_v8  ;;  %v8772_v43 = vpack.c.bf16 %v4679_v45, %v4679_v45 }
 0x433   :  { %v4580_v52 = vld [vmem:[#allocation2 + $0x1f] sm:$0xff]  ;;  %v4581_v53 = vld [vmem:[#allocation2 + $0x27] sm:$0xff]  ;;  %6889 = vmatmul.mubr.bf16.gmra.mxu1 %v10245_v55  ;;  %9646 = vmatprep.subr.bf16.mxu0 %v10332_v3  ;;  %v4774_v34 = vld [vmem:[#allocation2 + $0x31] sm:$0xff]  ;;  %4622 = vst [vmem:[#allocation3 + $0x118] sm:$0xf] %v8755_v40 }
 0x434   :  { %v4676_v7 = vld [vmem:[#allocation2 + $0x20] sm:$0xff]  ;;  %v8753_v17 = vpack.c.bf16 %v4580_v52, %v4580_v52  ;;  %v8754_v32 = vpack.c.bf16 %v4581_v53, %v4581_v53  ;;  %6986 = vmatmul.mubr.bf16.gmra.mxu0 %v10248_v54  ;;  %6896 = vmatprep.mubr.bf16.mxu1 %v10257_v61  ;;  %v4677_v2 = vld [vmem:[#allocation2 + $0x28] sm:$0xff]  ;;  %v8787_v49 = vpack.c.bf16 %v4774_v34, %v4774_v34  ;;  %v4487_v33 = vld [vmem:[#allocation2 + $0x36] sm:$0xff] }
 0x435   :  { %v8769_v56 = vpack.c.bf16 %v4676_v7, %v4676_v7  ;;  %v4771_v57 = vld [vmem:[#allocation2 + $0x19] sm:$0xff]  ;;  %v4772_v6 = vld [vmem:[#allocation2 + $0x21] sm:$0xff]  ;;  %6993 = vmatprep.mubr.bf16.mxu0 %v10260_v47  ;;  %v8770_v14 = vpack.c.bf16 %v4677_v2, %v4677_v2  ;;  %v4773_v20 = vld [vmem:[#allocation2 + $0x29] sm:$0xff]  ;;  %v8740_v22 = vpack.c.bf16 %v4487_v33, %v4487_v33  ;;  %4719 = vst [vmem:[#allocation3 + $0x150] sm:$0xf] %v8772_v43 }
 0x436   :  { %v4485_v21 = vld [vmem:[#allocation2 + $0x26] sm:$0xff]  ;;  %v8784_v13 = vpack.c.bf16 %v4771_v57, %v4771_v57  ;;  %v8785_v24 = vpack.c.bf16 %v4772_v6, %v4772_v6  ;;  %4620 = vst [vmem:[#allocation3 + $0xb0] sm:$0xf] %v8753_v17  ;;  %4621 = vst [vmem:[#allocation3 + $0xe4] sm:$0xf] %v8754_v32  ;;  %v8786_v46 = vpack.c.bf16 %v4773_v20, %v4773_v20  ;;  %v4488_v16 = vld [vmem:[#allocation2 + $0x3e] sm:$0xff] }
 0x437   :  { %v8738_v0 = vpack.c.bf16 %v4485_v21, %v4485_v21  ;;  %4716 = vst [vmem:[#allocation3 + $0xb4] sm:$0xf] %v8769_v56  ;;  %v10255_v60 = vld [vmem:[#allocation3 + $0x208] ss:$52 sps:$4 sm:$0xff]   ;;  %v10258_v48 = vld [vmem:[#allocation3 + $0x210] ss:$52 sps:$4 sm:$0xff]   ;;  %v8741_v25 = vpack.c.bf16 %v4488_v16, %v4488_v16 }
 0x438   :  { %4811 = vst [vmem:[#allocation3 + $0x84] sm:$0xf] %v8784_v13  ;;  %4812 = vst [vmem:[#allocation3 + $0xb8] sm:$0xf] %v8785_v24  ;;  %v4583_v18 = vld [vmem:[#allocation2 + $0x37] sm:$0xff]  ;;  %v4584_v1 = vld [vmem:[#allocation2 + $0x3f] sm:$0xff] }
 0x439   :  { %4525 = vst [vmem:[#allocation3 + $0xe0] sm:$0xf] %v8738_v0  ;;  %4717 = vst [vmem:[#allocation3 + $0xe8] sm:$0xf] %v8770_v14  ;;  %v8756_v26 = vpack.c.bf16 %v4583_v18, %v4583_v18  ;;  %v4680_v23 = vld [vmem:[#allocation2 + $0x40] sm:$0xff]  ;;  %v8757_v41 = vpack.c.bf16 %v4584_v1, %v4584_v1  ;;  %v4529_v9 = vld [vmem:[#allocation2 + $0x56] sm:$0xff] }
 0x43a   :  { %4813 = vst [vmem:[#allocation3 + $0xec] sm:$0xf] %v8786_v46  ;;  %4814 = vst [vmem:[#allocation3 + $0x120] sm:$0xf] %v8787_v49  ;;  %v8773_v4 = vpack.c.bf16 %v4680_v23, %v4680_v23  ;;  %v4775_v38 = vld [vmem:[#allocation2 + $0x39] sm:$0xff]  ;;  %v4776_v30 = vld [vmem:[#allocation2 + $0x41] sm:$0xff]  ;;  %v8742_v10 = vpack.c.bf16 %v4529_v9, %v4529_v9 }
 0x43b   :  { %v10268_v39 = vld [vmem:[#allocation3 + $0x274] ss:$52 sps:$4 sm:$0xff]   ;;  %4527 = vst [vmem:[#allocation3 + $0x148] sm:$0xf] %v8740_v22  ;;  %4528 = vst [vmem:[#allocation3 + $0x17c] sm:$0xf] %v8741_v25  ;;  %v8788_v51 = vpack.c.bf16 %v4775_v38, %v4775_v38  ;;  %v8789_v35 = vpack.c.bf16 %v4776_v30, %v4776_v30  ;;  %6897 = vmatmul.mubr.bf16.gmra.mxu1 %v10255_v60 }
 0x43c   :  { %4623 = vst [vmem:[#allocation3 + $0x14c] sm:$0xf] %v8756_v26  ;;  %v10271_v58 = vld [vmem:[#allocation3 + $0x27c] ss:$52 sps:$4 sm:$0xff]   ;;  %4624 = vst [vmem:[#allocation3 + $0x180] sm:$0xf] %v8757_v41  ;;  %6994 = vmatmul.mubr.bf16.gmra.mxu0 %v10258_v48  ;;  %6904 = vmatprep.mubr.bf16.mxu1 %v10268_v39 }
 0x43d   :  { %4720 = vst [vmem:[#allocation3 + $0x184] sm:$0xf] %v8773_v4  ;;  %4815 = vst [vmem:[#allocation3 + $0x154] sm:$0xf] %v8788_v51  ;;  %7001 = vmatprep.mubr.bf16.mxu0 %v10271_v58  ;;  %v4530_v27 = vld [vmem:[#allocation2 + $0x5e] sm:$0xff]  ;;  %v4531_v50 = vld [vmem:[#allocation2 + $0x66] sm:$0xff] }
 0x43e   :  { %4816 = vst [vmem:[#allocation3 + $0x188] sm:$0xf] %v8789_v35  ;;  %4569 = vst [vmem:[#allocation3 + $0x1b0] sm:$0xf] %v8742_v10  ;;  %v4625_v12 = vld [vmem:[#allocation2 + $0x57] sm:$0xff]  ;;  %v4626_v28 = vld [vmem:[#allocation2 + $0x5f] sm:$0xff]  ;;  %v8743_v37 = vpack.c.bf16 %v4530_v27, %v4530_v27  ;;  %v8744_v56 = vpack.c.bf16 %v4531_v50, %v4531_v50 }
 0x43f   :  { %v8758_v5 = vpack.c.bf16 %v4625_v12, %v4625_v12  ;;  %v8759_v19 = vpack.c.bf16 %v4626_v28, %v4626_v28  ;;  %v4721_v15 = vld [vmem:[#allocation2 + $0x58] sm:$0xff]  ;;  %v4722_v63 = vld [vmem:[#allocation2 + $0x60] sm:$0xff]  ;;  %v4532_v17 = vld [vmem:[#allocation2 + $0x6e] sm:$0xff] }
 0x440   :  { %v4817_v31 = vld [vmem:[#allocation2 + $0x59] sm:$0xff]  ;;  %v8774_v62 = vpack.c.bf16 %v4721_v15, %v4721_v15  ;;  %v8775_v29 = vpack.c.bf16 %v4722_v63, %v4722_v63  ;;  %4570 = vst [vmem:[#allocation3 + $0x1e4] sm:$0xf] %v8743_v37  ;;  %v10266_v3 = vld [vmem:[#allocation3 + $0x270] ss:$52 sps:$4 sm:$0xff]   ;;  %v8745_v57 = vpack.c.bf16 %v4532_v17, %v4532_v17  ;;  %v4723_v13 = vld [vmem:[#allocation2 + $0x68] sm:$0xff] }
 0x441   :  { %v8790_v55 = vpack.c.bf16 %v4817_v31, %v4817_v31  ;;  %4665 = vst [vmem:[#allocation3 + $0x1b4] sm:$0xf] %v8758_v5  ;;  %4666 = vst [vmem:[#allocation3 + $0x1e8] sm:$0xf] %v8759_v19  ;;  %v4818_v54 = vld [vmem:[#allocation2 + $0x61] sm:$0xff]  ;;  %v4628_v21 = vld [vmem:[#allocation2 + $0x6f] sm:$0xff]  ;;  %v8776_v53 = vpack.c.bf16 %v4723_v13, %v4723_v13 }
 0x442   :  { %4761 = vst [vmem:[#allocation3 + $0x1b8] sm:$0xf] %v8774_v62  ;;  %4762 = vst [vmem:[#allocation3 + $0x1ec] sm:$0xf] %v8775_v29  ;;  %v10269_v61 = vld [vmem:[#allocation3 + $0x278] ss:$52 sps:$4 sm:$0xff]   ;;  %v8791_v52 = vpack.c.bf16 %v4818_v54, %v4818_v54  ;;  %v8761_v59 = vpack.c.bf16 %v4628_v21, %v4628_v21 }
 0x443   :  { %4857 = vst [vmem:[#allocation3 + $0x1bc] sm:$0xf] %v8790_v55  ;;  %v10280_v42 = vld [vmem:[#allocation3 + $0x2dc] ss:$52 sps:$4 sm:$0xff]   ;;  %6905 = vmatmul.mubr.bf16.gmra.mxu1 %v10266_v3  ;;  %v10283_v7 = vld [vmem:[#allocation3 + $0x2e4] ss:$52 sps:$4 sm:$0xff]  }
 0x444   :  { %7002 = vmatmul.mubr.bf16.gmra.mxu0 %v10269_v61  ;;  %6912 = vmatprep.mubr.bf16.mxu1 %v10280_v42  ;;  %4858 = vst [vmem:[#allocation3 + $0x1f0] sm:$0xf] %v8791_v52  ;;  %v4627_v6 = vld [vmem:[#allocation2 + $0x67] sm:$0xff]  ;;  %v4724_v0 = vld [vmem:[#allocation2 + $0x70] sm:$0xff]  ;;  %4571 = vst [vmem:[#allocation3 + $0x218] sm:$0xf] %v8744_v56 }
 0x445   :  { %7009 = vmatprep.mubr.bf16.mxu0 %v10283_v7  ;;  %v8760_v24 = vpack.c.bf16 %v4627_v6, %v4627_v6  ;;  %v4819_v47 = vld [vmem:[#allocation2 + $0x69] sm:$0xff]  ;;  %v4820_v8 = vld [vmem:[#allocation2 + $0x71] sm:$0xff]  ;;  %4572 = vst [vmem:[#allocation3 + $0x24c] sm:$0xf] %v8745_v57  ;;  %v8777_v36 = vpack.c.bf16 %v4724_v0, %v4724_v0  ;;  %4668 = vst [vmem:[#allocation3 + $0x250] sm:$0xf] %v8761_v59 }
 0x446   :  { %v10278_v32 = vld [vmem:[#allocation3 + $0x2d8] ss:$52 sps:$4 sm:$0xff]   ;;  %v8792_v2 = vpack.c.bf16 %v4819_v47, %v4819_v47  ;;  %v8793_v40 = vpack.c.bf16 %v4820_v8, %v4820_v8  ;;  %v10281_v44 = vld [vmem:[#allocation3 + $0x2e0] ss:$52 sps:$4 sm:$0xff]   ;;  %4763 = vst [vmem:[#allocation3 + $0x220] sm:$0xf] %v8776_v53 }
 0x447   :  { %v10293_v14 = vld [vmem:[#allocation3 + $0x14] ss:$52 sps:$4 sm:$0xff]   ;;  %4667 = vst [vmem:[#allocation3 + $0x21c] sm:$0xf] %v8760_v24  ;;  %4764 = vst [vmem:[#allocation3 + $0x254] sm:$0xf] %v8777_v36 }
 0x448   :  { %v4533_v20 = vld [vmem:[#allocation2 + $0x76] sm:$0xff]  ;;  %4859 = vst [vmem:[#allocation3 + $0x224] sm:$0xf] %v8792_v2  ;;  %4860 = vst [vmem:[#allocation3 + $0x258] sm:$0xf] %v8793_v40  ;;  %v4534_v34 = vld [vmem:[#allocation2 + $0x7e] sm:$0xff] }
 0x449   :  { %v8746_v60 = vpack.c.bf16 %v4533_v20, %v4533_v20  ;;  %v4629_v11 = vld [vmem:[#allocation2 + $0x77] sm:$0xff]  ;;  %v4630_v46 = vld [vmem:[#allocation2 + $0x7f] sm:$0xff]  ;;  %v8747_v49 = vpack.c.bf16 %v4534_v34, %v4534_v34  ;;  %v4536_v4 = vld [vmem:[#allocation2 + $0x8e] sm:$0xff] }
 0x44a   :  { %v8762_v33 = vpack.c.bf16 %v4629_v11, %v4629_v11  ;;  %v8763_v16 = vpack.c.bf16 %v4630_v46, %v4630_v46  ;;  %v4725_v18 = vld [vmem:[#allocation2 + $0x78] sm:$0xff]  ;;  %v4726_v48 = vld [vmem:[#allocation2 + $0x80] sm:$0xff]  ;;  %v8749_v9 = vpack.c.bf16 %v4536_v4, %v4536_v4  ;;  %v4632_v39 = vld [vmem:[#allocation2 + $0x8f] sm:$0xff] }
 0x44b   :  { %v4821_v22 = vld [vmem:[#allocation2 + $0x79] sm:$0xff]  ;;  %6913 = vmatmul.mubr.bf16.gmra.mxu1 %v10278_v32  ;;  %4573 = vst [vmem:[#allocation3 + $0x280] sm:$0xf] %v8746_v60  ;;  %v8778_v1 = vpack.c.bf16 %v4725_v18, %v4725_v18  ;;  %v8779_v26 = vpack.c.bf16 %v4726_v48, %v4726_v48  ;;  %4574 = vst [vmem:[#allocation3 + $0x2b4] sm:$0xf] %v8747_v49  ;;  %v4822_v23 = vld [vmem:[#allocation2 + $0x81] sm:$0xff]  ;;  %v8765_v27 = vpack.c.bf16 %v4632_v39, %v4632_v39 }
 0x44c   :  { %v10297_v25 = vld [vmem:[#allocation3 + $0x1c] ss:$52 sps:$4 sm:$0xff]   ;;  %v8794_v45 = vpack.c.bf16 %v4821_v22, %v4821_v22  ;;  %7010 = vmatmul.mubr.bf16.gmra.mxu0 %v10281_v44  ;;  %7050 = vmatprep.mubr.bf16.mxu1 %v10293_v14  ;;  %4669 = vst [vmem:[#allocation3 + $0x284] sm:$0xf] %v8762_v33  ;;  %4670 = vst [vmem:[#allocation3 + $0x2b8] sm:$0xf] %v8763_v16  ;;  %v8795_v41 = vpack.c.bf16 %v4822_v23, %v4822_v23 }
 0x44d   :  { %7147 = vmatprep.mubr.bf16.mxu0 %v10297_v25  ;;  %4765 = vst [vmem:[#allocation3 + $0x288] sm:$0xf] %v8778_v1  ;;  %4766 = vst [vmem:[#allocation3 + $0x2bc] sm:$0xf] %v8779_v26  ;;  %v4535_v43 = vld [vmem:[#allocation2 + $0x86] sm:$0xff]  ;;  %v4728_v10 = vld [vmem:[#allocation2 + $0x90] sm:$0xff] }
 0x44e   :  { %4861 = vst [vmem:[#allocation3 + $0x28c] sm:$0xf] %v8794_v45  ;;  %v4631_v38 = vld [vmem:[#allocation2 + $0x87] sm:$0xff]  ;;  %v8748_v30 = vpack.c.bf16 %v4535_v43, %v4535_v43  ;;  %v10307_v58 = vld [vmem:[#allocation8 + $0x238] sm:$0xff]   ;;  %4862 = vst [vmem:[#allocation3 + $0x2c0] sm:$0xf] %v8795_v41  ;;  %v8781_v28 = vpack.c.bf16 %v4728_v10, %v4728_v10 }
 0x44f   :  { %v8764_v51 = vpack.c.bf16 %v4631_v38, %v4631_v38  ;;  %v4727_v35 = vld [vmem:[#allocation2 + $0x88] sm:$0xff]  ;;  %v10308_v37 = vld [vmem:[#allocation8 + $0x270] sm:$0xff]   ;;  %v10333_v5 = vld [vmem:[#allocation8 + $0x2b8] sm:$0xff]   ;;  %4576 = vst [vmem:[#allocation3 + $0x31c] sm:$0xf] %v8749_v9 }
 0x450   :  { %v8780_v12 = vpack.c.bf16 %v4727_v35, %v4727_v35  ;;  %4575 = vst [vmem:[#allocation3 + $0x2e8] sm:$0xf] %v8748_v30  ;;  %5342 = vst [vmem:[#allocation3 + $0x2d4] sm:$0xf] %v8748_v30  ;;  %v10291_v19 = vld [vmem:[#allocation3 + $0x10] ss:$52 sps:$4 sm:$0xff]  }
 0x451   :  { %4671 = vst [vmem:[#allocation3 + $0x2ec] sm:$0xf] %v8764_v51  ;;  %v10342_v15 = vld [vmem:[#allocation8 + $0x2f0] sm:$0xff]   ;;  %4672 = vst [vmem:[#allocation3 + $0x320] sm:$0xf] %v8765_v27  ;;  %v10316_v42 = vld [vmem:[#allocation8 + $0x268] sm:$0xff]  }
 0x452   :  { %4767 = vst [vmem:[#allocation3 + $0x2f0] sm:$0xf] %v8780_v12  ;;  %4768 = vst [vmem:[#allocation3 + $0x324] sm:$0xf] %v8781_v28  ;;  %v4823_v63 = vld [vmem:[#allocation2 + $0x89] sm:$0xff]  ;;  %v4824_v29 = vld [vmem:[#allocation2 + $0x91] sm:$0xff] }
 0x453   :  { %v10295_v31 = vld [vmem:[#allocation3 + $0x18] ss:$52 sps:$4 sm:$0xff]   ;;  %v10303_v62 = vld [vmem:[#allocation3 + $0x7c] ss:$52 sps:$4 sm:$0xff]   ;;  %v8796_v55 = vpack.c.bf16 %v4823_v63, %v4823_v63  ;;  %7051 = vmatmul.mubr.bf16.vlgmr.msra.gmra.mxu1 %v10291_v19  ;;  %v8797_v54 = vpack.c.bf16 %v4824_v29, %v4824_v29  ;;  %v10304_v57 = vld [vmem:[#allocation3 + $0x80] ss:$52 sps:$4 sm:$0xff]  }
 0x454   :  { %v10306_v3 = vld [vmem:[#allocation3 + $0x84] ss:$52 sps:$4 sm:$0xff]   ;;  %7148 = vmatmul.mubr.bf16.vlgmr.msra.gmra.mxu0 %v10295_v31  ;;  %7058 = vmatprep.mubr.bf16.mxu1 %v10303_v62  ;;  %v10315_v61 = vld [vmem:[#allocation8 + $0x230] sm:$0xff]   ;;  %v10345_v7 = vld [vmem:[#allocation8 + $0x2e8] sm:$0xff]  }
 0x455   :  { %4863 = vst [vmem:[#allocation3 + $0x2f4] sm:$0xf] %v8796_v55  ;;  %7155 = vmatprep.mubr.bf16.mxu0 %v10306_v3  ;;  %9583 = vmatpush3.bf16.msra.mxu1 %v10307_v58  ;;  %4864 = vst [vmem:[#allocation3 + $0x328] sm:$0xf] %v8797_v54  ;;  %v10343_v52 = vld [vmem:[#allocation8 + $0x2b0] sm:$0xff]   ;;  %v10323_v17 = vld [vmem:[#allocation8 + $0x228] sm:$0xff]  }
 0x456   :  { %9584 = vmatprep.subr.bf16.mxu1 %v10308_v37  ;;  %9647 = vmatpush3.bf16.msra.mxu0 %v10333_v5  ;;  %v10301_v50 = vld [vmem:[#allocation3 + $0x78] ss:$52 sps:$4 sm:$0xff]   ;;  %v10324_v21 = vld [vmem:[#allocation8 + $0x260] sm:$0xff]   ;;  %v10312_v30 = vld [vmem:[#allocation3 + $0xe8] ss:$52 sps:$4 sm:$0xff]  }
 0x457   :  { %9648 = vmatprep.subr.bf16.mxu0 %v10342_v15  ;;  %v4865_v56 = vld [vmem:[#allocation2 + $0xa] sm:$0xff]  ;;  %v10311_v6 = vld [vmem:[#allocation3 + $0xe4] ss:$52 sps:$4 sm:$0xff]   ;;  %v10309_v1 = vld [vmem:[#allocation3 + $0xe0] ss:$52 sps:$4 sm:$0xff]  }
 0x458   :  { %v10353_v13 = vld [vmem:[#allocation8 + $0x2a8] sm:$0xff]   ;;  %v8798_v24 = vpack.c.bf16 %v4865_v56, %v4865_v56  ;;  %v10354_v59 = vld [vmem:[#allocation8 + $0x2e0] sm:$0xff]   ;;  %v4866_v0 = vld [vmem:[#allocation2 + $0x12] sm:$0xff] }
 0x459   :  { %9585 = vmatpush3.bf16.msra.mxu1 %v10315_v61  ;;  %v4961_v53 = vld [vmem:[#allocation2 + $0xb] sm:$0xff]  ;;  %v4962_v47 = vld [vmem:[#allocation2 + $0x13] sm:$0xff]  ;;  %v8799_v32 = vpack.c.bf16 %v4866_v0, %v4866_v0  ;;  %v10331_v11 = vld [vmem:[#allocation8 + $0x220] sm:$0xff]  }
 0x45a   :  { %v10314_v8 = vld [vmem:[#allocation3 + $0xec] ss:$52 sps:$4 sm:$0xff]   ;;  %9586 = vmatprep.subr.bf16.mxu1 %v10316_v42  ;;  %9649 = vmatpush3.bf16.msra.mxu0 %v10343_v52  ;;  %4905 = vst [vmem:[#allocation3 + $0x20] sm:$0xf] %v8798_v24  ;;  %v8814_v36 = vpack.c.bf16 %v4961_v53, %v4961_v53  ;;  %v8815_v2 = vpack.c.bf16 %v4962_v47, %v4962_v47  ;;  %v5058_v44 = vld [vmem:[#allocation2 + $0x14] sm:$0xff]  ;;  %v5060_v38 = vld [vmem:[#allocation2 + $0x24] sm:$0xff] }
 0x45b   :  { %v5057_v40 = vld [vmem:[#allocation2 + $0xc] sm:$0xff]  ;;  %7059 = vmatmul.mubr.bf16.gmra.mxu1 %v10301_v50  ;;  %9650 = vmatprep.subr.bf16.mxu0 %v10345_v7  ;;  %v8831_v20 = vpack.c.bf16 %v5058_v44, %v5058_v44  ;;  %v5154_v60 = vld [vmem:[#allocation2 + $0x15] sm:$0xff]  ;;  %4906 = vst [vmem:[#allocation3 + $0x54] sm:$0xf] %v8799_v32  ;;  %v10355_v16 = vld [vmem:[#allocation8 + $0x2a0] sm:$0xff]   ;;  %v8833_v58 = vpack.c.bf16 %v5060_v38, %v5060_v38 }
 0x45c   :  { %v8830_v14 = vpack.c.bf16 %v5057_v40, %v5057_v40  ;;  %v5153_v34 = vld [vmem:[#allocation2 + $0xd] sm:$0xff]  ;;  %7156 = vmatmul.mubr.bf16.gmra.mxu0 %v10304_v57  ;;  %7066 = vmatprep.mubr.bf16.mxu1 %v10311_v6  ;;  %5001 = vst [vmem:[#allocation3 + $0x24] sm:$0xf] %v8814_v36  ;;  %5002 = vst [vmem:[#allocation3 + $0x58] sm:$0xf] %v8815_v2  ;;  %v8847_v49 = vpack.c.bf16 %v5154_v60, %v5154_v60  ;;  %v10334_v33 = vld [vmem:[#allocation8 + $0x258] sm:$0xff]  }
 0x45d   :  { %v8846_v46 = vpack.c.bf16 %v5153_v34, %v5153_v34  ;;  %7163 = vmatprep.mubr.bf16.mxu0 %v10314_v8  ;;  %9587 = vmatpush3.bf16.msra.mxu1 %v10323_v17  ;;  %v10357_v18 = vld [vmem:[#allocation8 + $0x2d8] sm:$0xff]   ;;  %5098 = vst [vmem:[#allocation3 + $0x5c] sm:$0xf] %v8831_v20  ;;  %v4868_v22 = vld [vmem:[#allocation2 + $0x22] sm:$0xff]  ;;  %v10344_v39 = vld [vmem:[#allocation8 + $0x250] sm:$0xff]  }
 0x45e   :  { %5097 = vst [vmem:[#allocation3 + $0x28] sm:$0xf] %v8830_v14  ;;  %9588 = vmatprep.subr.bf16.mxu1 %v10324_v21  ;;  %9651 = vmatpush3.bf16.msra.mxu0 %v10353_v13  ;;  %5194 = vst [vmem:[#allocation3 + $0x60] sm:$0xf] %v8847_v49  ;;  %v4867_v48 = vld [vmem:[#allocation2 + $0x1a] sm:$0xff]  ;;  %v8801_v23 = vpack.c.bf16 %v4868_v22, %v4868_v22  ;;  %v4964_v41 = vld [vmem:[#allocation2 + $0x23] sm:$0xff] }
 0x45f   :  { %5193 = vst [vmem:[#allocation3 + $0x2c] sm:$0xf] %v8846_v46  ;;  %v4963_v25 = vld [vmem:[#allocation2 + $0x1b] sm:$0xff]  ;;  %9652 = vmatprep.subr.bf16.mxu0 %v10354_v59  ;;  %v8800_v45 = vpack.c.bf16 %v4867_v48, %v4867_v48  ;;  %v8817_v35 = vpack.c.bf16 %v4964_v41, %v4964_v41  ;;  %v5156_v12 = vld [vmem:[#allocation2 + $0x25] sm:$0xff]  ;;  %v4870_v15 = vld [vmem:[#allocation2 + $0x32] sm:$0xff] }
 0x460   :  { %v10341_v26 = vld [vmem:[#allocation8 + $0x218] sm:$0xff]   ;;  %v8816_v43 = vpack.c.bf16 %v4963_v25, %v4963_v25  ;;  %v10319_v9 = vld [vmem:[#allocation3 + $0x14c] ss:$52 sps:$4 sm:$0xff]   ;;  %v10322_v28 = vld [vmem:[#allocation3 + $0x154] ss:$52 sps:$4 sm:$0xff]   ;;  %v8849_v5 = vpack.c.bf16 %v5156_v12, %v5156_v12  ;;  %v8803_v62 = vpack.c.bf16 %v4870_v15, %v4870_v15 }
 0x461   :  { %v5059_v4 = vld [vmem:[#allocation2 + $0x1c] sm:$0xff]  ;;  %9589 = vmatpush3.bf16.msra.mxu1 %v10331_v11  ;;  %4907 = vst [vmem:[#allocation3 + $0x88] sm:$0xf] %v8800_v45  ;;  %4908 = vst [vmem:[#allocation3 + $0xbc] sm:$0xf] %v8801_v23  ;;  %v4869_v19 = vld [vmem:[#allocation2 + $0x2a] sm:$0xff] }
 0x462   :  { %v10365_v51 = vld [vmem:[#allocation8 + $0x298] sm:$0xff]   ;;  %v8832_v10 = vpack.c.bf16 %v5059_v4, %v5059_v4  ;;  %5003 = vst [vmem:[#allocation3 + $0x8c] sm:$0xf] %v8816_v43  ;;  %v4965_v63 = vld [vmem:[#allocation2 + $0x2b] sm:$0xff]  ;;  %9590 = vmatprep.subr.bf16.mxu1 %v10334_v33  ;;  %9653 = vmatpush3.bf16.msra.mxu0 %v10355_v16  ;;  %5004 = vst [vmem:[#allocation3 + $0xc0] sm:$0xf] %v8817_v35  ;;  %v8802_v31 = vpack.c.bf16 %v4869_v19, %v4869_v19 }
 0x463   :  { %v5155_v27 = vld [vmem:[#allocation2 + $0x1d] sm:$0xff]  ;;  %5100 = vst [vmem:[#allocation3 + $0xc4] sm:$0xf] %v8833_v58  ;;  %v4966_v29 = vld [vmem:[#allocation2 + $0x33] sm:$0xff]  ;;  %v8818_v55 = vpack.c.bf16 %v4965_v63, %v4965_v63  ;;  %7067 = vmatmul.mubr.bf16.gmra.mxu1 %v10309_v1  ;;  %9654 = vmatprep.subr.bf16.mxu0 %v10357_v18  ;;  %5196 = vst [vmem:[#allocation3 + $0xc8] sm:$0xf] %v8849_v5 }
 0x464   :  { %v8848_v37 = vpack.c.bf16 %v5155_v27, %v5155_v27  ;;  %5099 = vst [vmem:[#allocation3 + $0x90] sm:$0xf] %v8832_v10  ;;  %v5061_v3 = vld [vmem:[#allocation2 + $0x2c] sm:$0xff]  ;;  %v5062_v54 = vld [vmem:[#allocation2 + $0x34] sm:$0xff]  ;;  %v8819_v42 = vpack.c.bf16 %v4966_v29, %v4966_v29  ;;  %7164 = vmatmul.mubr.bf16.gmra.mxu0 %v10312_v30  ;;  %7074 = vmatprep.mubr.bf16.mxu1 %v10319_v9  ;;  %4909 = vst [vmem:[#allocation3 + $0xf0] sm:$0xf] %v8802_v31 }
 0x465   :  { %v10366_v61 = vld [vmem:[#allocation8 + $0x2d0] sm:$0xff]   ;;  %v8834_v52 = vpack.c.bf16 %v5061_v3, %v5061_v3  ;;  %v8835_v7 = vpack.c.bf16 %v5062_v54, %v5062_v54  ;;  %4910 = vst [vmem:[#allocation3 + $0x124] sm:$0xf] %v8803_v62  ;;  %5005 = vst [vmem:[#allocation3 + $0xf4] sm:$0xf] %v8818_v55  ;;  %7171 = vmatprep.mubr.bf16.mxu0 %v10322_v28  ;;  %9591 = vmatpush3.bf16.msra.mxu1 %v10341_v26  ;;  %v10356_v57 = vld [vmem:[#allocation8 + $0x248] sm:$0xff]  }
 0x466   :  { %5195 = vst [vmem:[#allocation3 + $0x94] sm:$0xf] %v8848_v37  ;;  %v10352_v50 = vld [vmem:[#allocation8 + $0x210] sm:$0xff]   ;;  %5006 = vst [vmem:[#allocation3 + $0x128] sm:$0xf] %v8819_v42  ;;  %9592 = vmatprep.subr.bf16.mxu1 %v10344_v39  ;;  %9655 = vmatpush3.bf16.msra.mxu0 %v10365_v51  ;;  %v10369_v24 = vld [vmem:[#allocation8 + $0x2c8] sm:$0xff]  }
 0x467   :  { %v5157_v17 = vld [vmem:[#allocation2 + $0x2d] sm:$0xff]  ;;  %v5158_v56 = vld [vmem:[#allocation2 + $0x35] sm:$0xff]  ;;  %5101 = vst [vmem:[#allocation3 + $0xf8] sm:$0xf] %v8834_v52  ;;  %5102 = vst [vmem:[#allocation3 + $0x12c] sm:$0xf] %v8835_v7  ;;  %9656 = vmatprep.subr.bf16.mxu0 %v10366_v61 }
 0x468   :  { %v8850_v6 = vpack.c.bf16 %v5157_v17, %v5157_v17  ;;  %v8851_v21 = vpack.c.bf16 %v5158_v56, %v5158_v56  ;;  %v10367_v13 = vld [vmem:[#allocation8 + $0x290] sm:$0xff]   ;;  %v4871_v59 = vld [vmem:[#allocation2 + $0x3a] sm:$0xff]  ;;  %v4872_v53 = vld [vmem:[#allocation2 + $0x42] sm:$0xff] }
 0x469   :  { %v10317_v0 = vld [vmem:[#allocation3 + $0x148] ss:$52 sps:$4 sm:$0xff]   ;;  %v8804_v47 = vpack.c.bf16 %v4871_v59, %v4871_v59  ;;  %v10320_v36 = vld [vmem:[#allocation3 + $0x150] ss:$52 sps:$4 sm:$0xff]   ;;  %v8805_v40 = vpack.c.bf16 %v4872_v53, %v4872_v53  ;;  %9593 = vmatpush3.bf16.msra.mxu1 %v10352_v50  ;;  %v10328_v58 = vld [vmem:[#allocation3 + $0x1b8] ss:$52 sps:$4 sm:$0xff]  }
 0x46a   :  { %5197 = vst [vmem:[#allocation3 + $0xfc] sm:$0xf] %v8850_v6  ;;  %5198 = vst [vmem:[#allocation3 + $0x130] sm:$0xf] %v8851_v21  ;;  %v4967_v8 = vld [vmem:[#allocation2 + $0x3b] sm:$0xff]  ;;  %v4968_v32 = vld [vmem:[#allocation2 + $0x43] sm:$0xff]  ;;  %9594 = vmatprep.subr.bf16.mxu1 %v10356_v57  ;;  %9657 = vmatpush3.bf16.msra.mxu0 %v10367_v13 }
 0x46b   :  { %v10327_v2 = vld [vmem:[#allocation3 + $0x1b4] ss:$52 sps:$4 sm:$0xff]   ;;  %v8820_v44 = vpack.c.bf16 %v4967_v8, %v4967_v8  ;;  %v8821_v14 = vpack.c.bf16 %v4968_v32, %v4968_v32  ;;  %v5063_v20 = vld [vmem:[#allocation2 + $0x3c] sm:$0xff]  ;;  %4911 = vst [vmem:[#allocation3 + $0x158] sm:$0xf] %v8804_v47  ;;  %7075 = vmatmul.mubr.bf16.gmra.mxu1 %v10317_v0  ;;  %9658 = vmatprep.subr.bf16.mxu0 %v10369_v24  ;;  %v5107_v42 = vld [vmem:[#allocation2 + $0x6c] sm:$0xff] }
 0x46c   :  { %v5064_v34 = vld [vmem:[#allocation2 + $0x44] sm:$0xff]  ;;  %v10330_v60 = vld [vmem:[#allocation3 + $0x1bc] ss:$52 sps:$4 sm:$0xff]   ;;  %v8836_v49 = vpack.c.bf16 %v5063_v20, %v5063_v20  ;;  %4912 = vst [vmem:[#allocation3 + $0x18c] sm:$0xf] %v8805_v40  ;;  %7172 = vmatmul.mubr.bf16.gmra.mxu0 %v10320_v36  ;;  %7082 = vmatprep.mubr.bf16.mxu1 %v10327_v2  ;;  %v5108_v50 = vld [vmem:[#allocation2 + $0x74] sm:$0xff]  ;;  %v8840_v17 = vpack.c.bf16 %v5107_v42, %v5107_v42 }
 0x46d   :  { %v10364_v11 = vld [vmem:[#allocation8 + $0x208] sm:$0xff]   ;;  %v10368_v46 = vld [vmem:[#allocation8 + $0x240] sm:$0xff]   ;;  %v8837_v33 = vpack.c.bf16 %v5064_v34, %v5064_v34  ;;  %5007 = vst [vmem:[#allocation3 + $0x15c] sm:$0xf] %v8820_v44  ;;  %5008 = vst [vmem:[#allocation3 + $0x190] sm:$0xf] %v8821_v14  ;;  %7179 = vmatprep.mubr.bf16.mxu0 %v10330_v60  ;;  %v8841_v57 = vpack.c.bf16 %v5108_v50, %v5108_v50 }
 0x46e   :  { %v10374_v16 = vld [vmem:[#allocation8 + $0x288] sm:$0xff]   ;;  %v10378_v18 = vld [vmem:[#allocation8 + $0x2c0] sm:$0xff]   ;;  %5103 = vst [vmem:[#allocation3 + $0x160] sm:$0xf] %v8836_v49  ;;  %9595 = vmatpush3.bf16.msra.mxu1 %v10364_v11  ;;  %v11248_v23 = vld [vmem:[#allocation8 + $0x338] sm:$0xff]  }
 0x46f   :  { %5104 = vst [vmem:[#allocation3 + $0x194] sm:$0xf] %v8837_v33  ;;  %v5159_v48 = vld [vmem:[#allocation2 + $0x3d] sm:$0xff]  ;;  %v5160_v26 = vld [vmem:[#allocation2 + $0x45] sm:$0xff]  ;;  %9596 = vmatprep.subr.bf16.mxu1 %v10368_v46  ;;  %9659 = vmatpush3.bf16.msra.mxu0 %v10374_v16  ;;  %v4916_v29 = vld [vmem:[#allocation2 + $0x72] sm:$0xff] }
 0x470   :  { %v10370_v22 = vld [vmem:[#allocation8 + $0x200] sm:$0xff]   ;;  %v8852_v25 = vpack.c.bf16 %v5159_v48, %v5159_v48  ;;  %v8853_v41 = vpack.c.bf16 %v5160_v26, %v5160_v26  ;;  %9660 = vmatprep.subr.bf16.mxu0 %v10378_v18  ;;  %v10337_v37 = vld [vmem:[#allocation3 + $0x21c] ss:$52 sps:$4 sm:$0xff]   ;;  %v8809_v3 = vpack.c.bf16 %v4916_v29, %v4916_v29  ;;  %v10335_v24 = vld [vmem:[#allocation3 + $0x218] ss:$52 sps:$4 sm:$0xff]  }
 0x471   :  { %v10379_v1 = vld [vmem:[#allocation8 + $0x280] sm:$0xff]   ;;  %v4915_v62 = vld [vmem:[#allocation2 + $0x6a] sm:$0xff]  ;;  %v5012_v61 = vld [vmem:[#allocation2 + $0x73] sm:$0xff]  ;;  %5147 = vst [vmem:[#allocation3 + $0x230] sm:$0xf] %v8840_v17 }
 0x472   :  { %v4913_v45 = vld [vmem:[#allocation2 + $0x5a] sm:$0xff]  ;;  %5199 = vst [vmem:[#allocation3 + $0x164] sm:$0xf] %v8852_v25  ;;  %v10325_v4 = vld [vmem:[#allocation3 + $0x1b0] ss:$52 sps:$4 sm:$0xff]   ;;  %9597 = vmatpush3.bf16.msra.mxu1 %v10370_v22  ;;  %v8808_v55 = vpack.c.bf16 %v4915_v62, %v4915_v62  ;;  %v8825_v7 = vpack.c.bf16 %v5012_v61, %v5012_v61 }
 0x473   :  { %v8806_v43 = vpack.c.bf16 %v4913_v45, %v4913_v45  ;;  %v4914_v38 = vld [vmem:[#allocation2 + $0x62] sm:$0xff]  ;;  %5200 = vst [vmem:[#allocation3 + $0x198] sm:$0xf] %v8853_v41  ;;  %9661 = vmatpush3.bf16.msra.mxu0 %v10379_v1  ;;  %9854 = vmatprep.subr.bf16.mxu1 %v11248_v23  ;;  %v5011_v54 = vld [vmem:[#allocation2 + $0x6b] sm:$0xff]  ;;  %4956 = vst [vmem:[#allocation3 + $0x25c] sm:$0xf] %v8809_v3 }
 0x474   :  { %v5009_v30 = vld [vmem:[#allocation2 + $0x5b] sm:$0xff]  ;;  %v8807_v9 = vpack.c.bf16 %v4914_v38, %v4914_v38  ;;  %v5010_v39 = vld [vmem:[#allocation2 + $0x63] sm:$0xff]  ;;  %7083 = vmatmul.mubr.bf16.gmra.mxu1 %v10325_v4  ;;  %7180 = vmatmul.mubr.bf16.gmra.mxu0 %v10328_v58  ;;  %v8824_v52 = vpack.c.bf16 %v5011_v54, %v5011_v54  ;;  %v5203_v56 = vld [vmem:[#allocation2 + $0x6d] sm:$0xff]  ;;  %4955 = vst [vmem:[#allocation3 + $0x228] sm:$0xf] %v8808_v55 }
 0x475   :  { %4953 = vst [vmem:[#allocation3 + $0x1c0] sm:$0xf] %v8806_v43  ;;  %v8822_v51 = vpack.c.bf16 %v5009_v30, %v5009_v30  ;;  %v5105_v35 = vld [vmem:[#allocation2 + $0x5c] sm:$0xff]  ;;  %v5106_v10 = vld [vmem:[#allocation2 + $0x64] sm:$0xff]  ;;  %v8823_v27 = vpack.c.bf16 %v5010_v39, %v5010_v39  ;;  %7090 = vmatprep.mubr.bf16.mxu1 %v10337_v37  ;;  %v8856_v21 = vpack.c.bf16 %v5203_v56, %v5203_v56  ;;  %5052 = vst [vmem:[#allocation3 + $0x260] sm:$0xf] %v8825_v7 }
 0x476   :  { %v8838_v12 = vpack.c.bf16 %v5105_v35, %v5105_v35  ;;  %v8839_v28 = vpack.c.bf16 %v5106_v10, %v5106_v10  ;;  %4954 = vst [vmem:[#allocation3 + $0x1f4] sm:$0xf] %v8807_v9  ;;  %v5201_v5 = vld [vmem:[#allocation2 + $0x5d] sm:$0xff]  ;;  %v5202_v19 = vld [vmem:[#allocation2 + $0x65] sm:$0xff]  ;;  %v5204_v6 = vld [vmem:[#allocation2 + $0x75] sm:$0xff] }
 0x477   :  { %5049 = vst [vmem:[#allocation3 + $0x1c4] sm:$0xf] %v8822_v51  ;;  %v10340_v15 = vld [vmem:[#allocation3 + $0x224] ss:$52 sps:$4 sm:$0xff]   ;;  %5050 = vst [vmem:[#allocation3 + $0x1f8] sm:$0xf] %v8823_v27  ;;  %v8854_v63 = vpack.c.bf16 %v5201_v5, %v5201_v5  ;;  %v8855_v31 = vpack.c.bf16 %v5202_v19, %v5202_v19  ;;  %v8857_v59 = vpack.c.bf16 %v5204_v6, %v5204_v6 }
 0x478   :  { %5145 = vst [vmem:[#allocation3 + $0x1c8] sm:$0xf] %v8838_v12  ;;  %5146 = vst [vmem:[#allocation3 + $0x1fc] sm:$0xf] %v8839_v28  ;;  %7187 = vmatprep.mubr.bf16.mxu0 %v10340_v15  ;;  %v4917_v13 = vld [vmem:[#allocation2 + $0x7a] sm:$0xff]  ;;  %v4918_v53 = vld [vmem:[#allocation2 + $0x82] sm:$0xff] }
 0x479   :  { %5241 = vst [vmem:[#allocation3 + $0x1cc] sm:$0xf] %v8854_v63  ;;  %5242 = vst [vmem:[#allocation3 + $0x200] sm:$0xf] %v8855_v31  ;;  %v8810_v0 = vpack.c.bf16 %v4917_v13, %v4917_v13  ;;  %v5013_v47 = vld [vmem:[#allocation2 + $0x7b] sm:$0xff]  ;;  %v5014_v8 = vld [vmem:[#allocation2 + $0x83] sm:$0xff]  ;;  %v8811_v32 = vpack.c.bf16 %v4918_v53, %v4918_v53 }
 0x47a   :  { %5051 = vst [vmem:[#allocation3 + $0x22c] sm:$0xf] %v8824_v52  ;;  %5148 = vst [vmem:[#allocation3 + $0x264] sm:$0xf] %v8841_v57  ;;  %v8826_v36 = vpack.c.bf16 %v5013_v47, %v5013_v47  ;;  %v8827_v2 = vpack.c.bf16 %v5014_v8, %v5014_v8  ;;  %v5109_v40 = vld [vmem:[#allocation2 + $0x7c] sm:$0xff]  ;;  %v5110_v44 = vld [vmem:[#allocation2 + $0x84] sm:$0xff] }
 0x47b   :  { %5243 = vst [vmem:[#allocation3 + $0x234] sm:$0xf] %v8856_v21  ;;  %5244 = vst [vmem:[#allocation3 + $0x268] sm:$0xf] %v8857_v59  ;;  %v10338_v14 = vld [vmem:[#allocation3 + $0x220] ss:$52 sps:$4 sm:$0xff]   ;;  %v8842_v34 = vpack.c.bf16 %v5109_v40, %v5109_v40  ;;  %v8843_v60 = vpack.c.bf16 %v5110_v44, %v5110_v44 }
 0x47c   :  { %4957 = vst [vmem:[#allocation3 + $0x290] sm:$0xf] %v8810_v0  ;;  %v10348_v20 = vld [vmem:[#allocation3 + $0x284] ss:$52 sps:$4 sm:$0xff]   ;;  %7091 = vmatmul.mubr.bf16.gmra.mxu1 %v10335_v24  ;;  %v10351_v11 = vld [vmem:[#allocation3 + $0x28c] ss:$52 sps:$4 sm:$0xff]   ;;  %7188 = vmatmul.mubr.bf16.gmra.mxu0 %v10338_v14 }
 0x47d   :  { %4958 = vst [vmem:[#allocation3 + $0x2c4] sm:$0xf] %v8811_v32  ;;  %5053 = vst [vmem:[#allocation3 + $0x294] sm:$0xf] %v8826_v36  ;;  %v5205_v46 = vld [vmem:[#allocation2 + $0x7d] sm:$0xff]  ;;  %v5206_v49 = vld [vmem:[#allocation2 + $0x85] sm:$0xff]  ;;  %7098 = vmatprep.mubr.bf16.mxu1 %v10348_v20  ;;  %7195 = vmatprep.mubr.bf16.mxu0 %v10351_v11 }
 0x47e   :  { %5054 = vst [vmem:[#allocation3 + $0x2c8] sm:$0xf] %v8827_v2  ;;  %5149 = vst [vmem:[#allocation3 + $0x298] sm:$0xf] %v8842_v34  ;;  %v8858_v33 = vpack.c.bf16 %v5205_v46, %v5205_v46  ;;  %v8859_v16 = vpack.c.bf16 %v5206_v49, %v5206_v49  ;;  %v4919_v18 = vld [vmem:[#allocation2 + $0x8a] sm:$0xff]  ;;  %v4920_v48 = vld [vmem:[#allocation2 + $0x92] sm:$0xff] }
 0x47f   :  { %5150 = vst [vmem:[#allocation3 + $0x2cc] sm:$0xf] %v8843_v60  ;;  %v8812_v22 = vpack.c.bf16 %v4919_v18, %v4919_v18  ;;  %v8813_v25 = vpack.c.bf16 %v4920_v48, %v4920_v48  ;;  %v5015_v1 = vld [vmem:[#allocation2 + $0x8b] sm:$0xff]  ;;  %v10346_v26 = vld [vmem:[#allocation3 + $0x280] ss:$52 sps:$4 sm:$0xff]  }
 0x480   :  { %5245 = vst [vmem:[#allocation3 + $0x29c] sm:$0xf] %v8858_v33  ;;  %5246 = vst [vmem:[#allocation3 + $0x2d0] sm:$0xf] %v8859_v16  ;;  %v10349_v45 = vld [vmem:[#allocation3 + $0x288] ss:$52 sps:$4 sm:$0xff]   ;;  %v8828_v41 = vpack.c.bf16 %v5015_v1, %v5015_v1 }
 0x481   :  { %4959 = vst [vmem:[#allocation3 + $0x2f8] sm:$0xf] %v8812_v22  ;;  %4960 = vst [vmem:[#allocation3 + $0x32c] sm:$0xf] %v8813_v25  ;;  %v5016_v43 = vld [vmem:[#allocation2 + $0x93] sm:$0xff]  ;;  %v5251_v15 = vld [vmem:[#allocation2 + $0x1e] sm:$0xff] }
 0x482   :  { %v5111_v4 = vld [vmem:[#allocation2 + $0x8c] sm:$0xff]  ;;  %v5112_v38 = vld [vmem:[#allocation2 + $0x94] sm:$0xff]  ;;  %v8829_v9 = vpack.c.bf16 %v5016_v43, %v5016_v43  ;;  %5055 = vst [vmem:[#allocation3 + $0x2fc] sm:$0xf] %v8828_v41  ;;  %v10358_v31 = vld [vmem:[#allocation3 + $0x2e8] ss:$52 sps:$4 sm:$0xff]   ;;  %v8864_v62 = vpack.c.bf16 %v5251_v15, %v5251_v15 }
 0x483   :  { %v10360_v30 = vld [vmem:[#allocation3 + $0x2ec] ss:$52 sps:$4 sm:$0xff]   ;;  %v8844_v39 = vpack.c.bf16 %v5111_v4, %v5111_v4  ;;  %v8845_v51 = vpack.c.bf16 %v5112_v38, %v5112_v38  ;;  %v10363_v35 = vld [vmem:[#allocation3 + $0x2f4] ss:$52 sps:$4 sm:$0xff]   ;;  %v10361_v54 = vld [vmem:[#allocation3 + $0x2f0] ss:$52 sps:$4 sm:$0xff]  }
 0x484   :  { %7099 = vmatmul.mubr.bf16.gmra.mxu1 %v10346_v26  ;;  %v5207_v10 = vld [vmem:[#allocation2 + $0x8d] sm:$0xff]  ;;  %v5208_v58 = vld [vmem:[#allocation2 + $0x95] sm:$0xff]  ;;  %7196 = vmatmul.mubr.bf16.gmra.mxu0 %v10349_v45  ;;  %5056 = vst [vmem:[#allocation3 + $0x330] sm:$0xf] %v8829_v9  ;;  %v5255_v7 = vld [vmem:[#allocation2 + $0x3e] sm:$0xff] }
 0x485   :  { %7106 = vmatprep.mubr.bf16.mxu1 %v10360_v30  ;;  %5151 = vst [vmem:[#allocation3 + $0x300] sm:$0xf] %v8844_v39  ;;  %5152 = vst [vmem:[#allocation3 + $0x334] sm:$0xf] %v8845_v51  ;;  %v8860_v27 = vpack.c.bf16 %v5207_v10, %v5207_v10  ;;  %v8861_v12 = vpack.c.bf16 %v5208_v58, %v5208_v58  ;;  %v5249_v28 = vld [vmem:[#allocation2 + $0xe] sm:$0xff]  ;;  %v5250_v37 = vld [vmem:[#allocation2 + $0x16] sm:$0xff]  ;;  %7203 = vmatprep.mubr.bf16.mxu0 %v10363_v35 }
 0x486   :  { %v8862_v5 = vpack.c.bf16 %v5249_v28, %v5249_v28  ;;  %v8863_v19 = vpack.c.bf16 %v5250_v37, %v5250_v37  ;;  %v5252_v63 = vld [vmem:[#allocation2 + $0x26] sm:$0xff]  ;;  %v5253_v55 = vld [vmem:[#allocation2 + $0x2e] sm:$0xff]  ;;  %v5254_v3 = vld [vmem:[#allocation2 + $0x36] sm:$0xff]  ;;  %5291 = vst [vmem:[#allocation3 + $0x98] sm:$0xf] %v8864_v62  ;;  %v8868_v56 = vpack.c.bf16 %v5255_v7, %v5255_v7 }
 0x487   :  { %5247 = vst [vmem:[#allocation3 + $0x304] sm:$0xf] %v8860_v27  ;;  %5248 = vst [vmem:[#allocation3 + $0x338] sm:$0xf] %v8861_v12  ;;  %v8865_v29 = vpack.c.bf16 %v5252_v63, %v5252_v63  ;;  %v10373_v61 = vld [vmem:[#allocation3 + $0x24] ss:$52 sps:$4 sm:$0xff]   ;;  %v8866_v42 = vpack.c.bf16 %v5253_v55, %v5253_v55  ;;  %v8867_v52 = vpack.c.bf16 %v5254_v3, %v5254_v3 }
 0x488   :  { %5289 = vst [vmem:[#allocation3 + $0x30] sm:$0xf] %v8862_v5  ;;  %5290 = vst [vmem:[#allocation3 + $0x64] sm:$0xf] %v8863_v19  ;;  %v5256_v50 = vld [vmem:[#allocation2 + $0x46] sm:$0xff]  ;;  %v5297_v17 = vld [vmem:[#allocation2 + $0x5e] sm:$0xff] }
 0x489   :  { %5292 = vst [vmem:[#allocation3 + $0xcc] sm:$0xf] %v8865_v29  ;;  %v8869_v57 = vpack.c.bf16 %v5256_v50, %v5256_v50  ;;  %v5298_v6 = vld [vmem:[#allocation2 + $0x66] sm:$0xff]  ;;  %v8870_v21 = vpack.c.bf16 %v5297_v17, %v5297_v17  ;;  %v5299_v13 = vld [vmem:[#allocation2 + $0x6e] sm:$0xff]  ;;  %5293 = vst [vmem:[#allocation3 + $0x100] sm:$0xf] %v8866_v42 }
 0x48a   :  { %5294 = vst [vmem:[#allocation3 + $0x134] sm:$0xf] %v8867_v52  ;;  %v8871_v24 = vpack.c.bf16 %v5298_v6, %v5298_v6  ;;  %v5300_v59 = vld [vmem:[#allocation2 + $0x76] sm:$0xff]  ;;  %v8872_v0 = vpack.c.bf16 %v5299_v13, %v5299_v13  ;;  %v5301_v53 = vld [vmem:[#allocation2 + $0x7e] sm:$0xff]  ;;  %5295 = vst [vmem:[#allocation3 + $0x168] sm:$0xf] %v8868_v56 }
 0x48b   :  { %v10377_v47 = vld [vmem:[#allocation3 + $0x2c] ss:$52 sps:$4 sm:$0xff]   ;;  %5296 = vst [vmem:[#allocation3 + $0x19c] sm:$0xf] %v8869_v57  ;;  %5337 = vst [vmem:[#allocation3 + $0x1d0] sm:$0xf] %v8870_v21  ;;  %v8873_v8 = vpack.c.bf16 %v5300_v59, %v5300_v59  ;;  %v8874_v32 = vpack.c.bf16 %v5301_v53, %v5301_v53 }
 0x48c   :  { %7107 = vmatmul.mubr.bf16.gmra.mxu1 %v10358_v31  ;;  %7204 = vmatmul.mubr.bf16.gmra.mxu0 %v10361_v54  ;;  %5338 = vst [vmem:[#allocation3 + $0x204] sm:$0xf] %v8871_v24  ;;  %5339 = vst [vmem:[#allocation3 + $0x238] sm:$0xf] %v8872_v0  ;;  %v5303_v36 = vld [vmem:[#allocation2 + $0x8e] sm:$0xff]  ;;  %v5304_v2 = vld [vmem:[#allocation2 + $0x96] sm:$0xff] }
 0x48d   :  { %7244 = vmatprep.mubr.bf16.mxu1 %v10373_v61  ;;  %7341 = vmatprep.mubr.bf16.mxu0 %v10377_v47  ;;  %5340 = vst [vmem:[#allocation3 + $0x26c] sm:$0xf] %v8873_v8  ;;  %5341 = vst [vmem:[#allocation3 + $0x2a0] sm:$0xf] %v8874_v32  ;;  %v8876_v40 = vpack.c.bf16 %v5303_v36, %v5303_v36  ;;  %v8877_v44 = vpack.c.bf16 %v5304_v2, %v5304_v2  ;;  %v10371_v14 = vld [vmem:[#allocation3 + $0x20] ss:$52 sps:$4 sm:$0xff]  }
 0x48e   :  { %v10387_v20 = vld [vmem:[#allocation8 + $0x330] sm:$0xff]   ;;  %v10375_v34 = vld [vmem:[#allocation3 + $0x28] ss:$52 sps:$4 sm:$0xff]   ;;  %v10383_v60 = vld [vmem:[#allocation3 + $0x8c] ss:$52 sps:$4 sm:$0xff]  }
 0x48f   :  { %5343 = vst [vmem:[#allocation3 + $0x308] sm:$0xf] %v8876_v40  ;;  %5344 = vst [vmem:[#allocation3 + $0x33c] sm:$0xf] %v8877_v44  ;;  %v10386_v11 = vld [vmem:[#allocation3 + $0x94] ss:$52 sps:$4 sm:$0xff]  }
 0x490   :  { %v10394_v46 = vld [vmem:[#allocation8 + $0x328] sm:$0xff]   ;;  %v10384_v33 = vld [vmem:[#allocation3 + $0x90] ss:$52 sps:$4 sm:$0xff]   ;;  %v10408_v22 = vld [vmem:[#allocation8 + $0x318] sm:$0xff]  }
 0x491   :  { %v10381_v49 = vld [vmem:[#allocation3 + $0x88] ss:$52 sps:$4 sm:$0xff]   ;;  %v10401_v18 = vld [vmem:[#allocation8 + $0x320] sm:$0xff]   ;;  %v10391_v1 = vld [vmem:[#allocation3 + $0xf8] ss:$52 sps:$4 sm:$0xff]  }
 0x492   :  { %v10390_v16 = vld [vmem:[#allocation3 + $0xf4] ss:$52 sps:$4 sm:$0xff]   ;;  %v10393_v48 = vld [vmem:[#allocation3 + $0xfc] ss:$52 sps:$4 sm:$0xff]   ;;  %v10400_v45 = vld [vmem:[#allocation3 + $0x164] ss:$52 sps:$4 sm:$0xff]  }
 0x493   :  { %v10388_v25 = vld [vmem:[#allocation3 + $0xf0] ss:$52 sps:$4 sm:$0xff]   ;;  %v10422_v41 = vld [vmem:[#allocation8 + $0x308] sm:$0xff]   ;;  %v10398_v4 = vld [vmem:[#allocation3 + $0x160] ss:$52 sps:$4 sm:$0xff]  }
 0x494   :  { %7245 = vmatmul.mubr.bf16.vlgmr.msra.gmra.mxu1 %v10371_v14  ;;  %7342 = vmatmul.mubr.bf16.vlgmr.msra.gmra.mxu0 %v10375_v34  ;;  %v10415_v26 = vld [vmem:[#allocation8 + $0x310] sm:$0xff]   ;;  %v10395_v43 = vld [vmem:[#allocation3 + $0x158] ss:$52 sps:$4 sm:$0xff]   ;;  %v10429_v30 = vld [vmem:[#allocation8 + $0x300] sm:$0xff]  }
 0x495   :  { %7252 = vmatprep.mubr.bf16.mxu1 %v10383_v60  ;;  %7349 = vmatprep.mubr.bf16.mxu0 %v10386_v11  ;;  %v10404_v38 = vld [vmem:[#allocation3 + $0x1c4] ss:$52 sps:$4 sm:$0xff]   ;;  %v10407_v9 = vld [vmem:[#allocation3 + $0x1cc] ss:$52 sps:$4 sm:$0xff]   ;;  %v10405_v51 = vld [vmem:[#allocation3 + $0x1c8] ss:$52 sps:$4 sm:$0xff]  }
 0x496   :  { %9855 = vmatpush3.bf16.msra.mxu1 %v11248_v23  ;;  %v10397_v23 = vld [vmem:[#allocation3 + $0x15c] ss:$52 sps:$4 sm:$0xff]   ;;  %v10402_v39 = vld [vmem:[#allocation3 + $0x1c0] ss:$52 sps:$4 sm:$0xff]   ;;  %v10419_v5 = vld [vmem:[#allocation3 + $0x298] ss:$52 sps:$4 sm:$0xff]  }
 0x497   :  { %9856 = vmatprep.subr.bf16.mxu1 %v10387_v20  ;;  %v10411_v35 = vld [vmem:[#allocation3 + $0x22c] ss:$52 sps:$4 sm:$0xff]   ;;  %v10414_v10 = vld [vmem:[#allocation3 + $0x234] ss:$52 sps:$4 sm:$0xff]   ;;  %v10412_v27 = vld [vmem:[#allocation3 + $0x230] ss:$52 sps:$4 sm:$0xff]  }
 0x498   :  { %v10409_v58 = vld [vmem:[#allocation3 + $0x228] ss:$52 sps:$4 sm:$0xff]   ;;  %v10416_v37 = vld [vmem:[#allocation3 + $0x290] ss:$52 sps:$4 sm:$0xff]   ;;  %v10423_v63 = vld [vmem:[#allocation3 + $0x2f8] ss:$52 sps:$4 sm:$0xff]  }
 0x499   :  { %v10418_v12 = vld [vmem:[#allocation3 + $0x294] ss:$52 sps:$4 sm:$0xff]   ;;  %v10421_v28 = vld [vmem:[#allocation3 + $0x29c] ss:$52 sps:$4 sm:$0xff]   ;;  %v10428_v15 = vld [vmem:[#allocation3 + $0x304] ss:$52 sps:$4 sm:$0xff]  }
 0x49a   :  { %9857 = vmatpush3.bf16.msra.mxu1 %v10387_v20  ;;  %v10425_v19 = vld [vmem:[#allocation3 + $0x2fc] ss:$52 sps:$4 sm:$0xff]   ;;  %v10426_v31 = vld [vmem:[#allocation3 + $0x300] ss:$52 sps:$4 sm:$0xff]   ;;  %v10431_v29 = vld [vmem:[#allocation3 + $0x98] ss:$52 sps:$4 sm:$0xff]  }
 0x49b   :  { %9858 = vmatprep.subr.bf16.mxu1 %v10394_v46  ;;  %v10430_v62 = vld [vmem:[#allocation3 + $0x30] ss:$52 sps:$4 sm:$0xff]   ;;  %v10432_v55 = vld [vmem:[#allocation3 + $0x100] ss:$52 sps:$4 sm:$0xff]   ;;  %v10433_v21 = vld [vmem:[#allocation3 + $0x168] ss:$52 sps:$4 sm:$0xff]  }
 0x49c   :  { %7253 = vmatmul.mubr.bf16.gmra.mxu1 %v10381_v49  ;;  %7350 = vmatmul.mubr.bf16.gmra.mxu0 %v10384_v33  ;;  %v11255_v61 = vld [vmem:[%s11551_s6] ss:$0 sm:$0xff]  ;;  %v10434_v0 = vld [vmem:[#allocation3 + $0x1d0] ss:$52 sps:$4 sm:$0xff]  }
 0x49d   :  { %7260 = vmatprep.mubr.bf16.mxu1 %v10390_v16  ;;  %7357 = vmatprep.mubr.bf16.mxu0 %v10393_v48 }
 0x49e   :  { %9859 = vmatpush3.bf16.msra.mxu1 %v10394_v46  ;;  %v10435_v46 = vld [vmem:[#allocation3 + $0x238] ss:$52 sps:$4 sm:$0xff]  }
 0x49f   :  { %9860 = vmatprep.subr.bf16.mxu1 %v10401_v18 }
 0x4a2   :  { %9861 = vmatpush3.bf16.msra.mxu1 %v10401_v18  ;;  %v10436_v18 = vld [vmem:[#allocation3 + $0x2a0] ss:$52 sps:$4 sm:$0xff]  }
 0x4a3   :  { %9862 = vmatprep.subr.bf16.mxu1 %v10408_v22 }
 0x4a4   :  { %7261 = vmatmul.mubr.bf16.gmra.mxu1 %v10388_v25  ;;  %7358 = vmatmul.mubr.bf16.gmra.mxu0 %v10391_v1 }
 0x4a5   :  { %7268 = vmatprep.mubr.bf16.mxu1 %v10397_v23  ;;  %7365 = vmatprep.mubr.bf16.mxu0 %v10400_v45 }
 0x4a6   :  { %9863 = vmatpush3.bf16.msra.mxu1 %v10408_v22 }
 0x4a7   :  { %9864 = vmatprep.subr.bf16.mxu1 %v10415_v26 }
 0x4aa   :  { %9865 = vmatpush3.bf16.msra.mxu1 %v10415_v26 }
 0x4ab   :  { %9866 = vmatprep.subr.bf16.mxu1 %v10422_v41 }
 0x4ac   :  { %7269 = vmatmul.mubr.bf16.gmra.mxu1 %v10395_v43  ;;  %7366 = vmatmul.mubr.bf16.gmra.mxu0 %v10398_v4 }
 0x4ad   :  { %7276 = vmatprep.mubr.bf16.mxu1 %v10404_v38  ;;  %7373 = vmatprep.mubr.bf16.mxu0 %v10407_v9 }
 0x4ae   :  { %9867 = vmatpush3.bf16.msra.mxu1 %v10422_v41 }
 0x4af   :  { %9868 = vmatprep.subr.bf16.mxu1 %v10429_v30 }
 0x4b2   :  { %9869 = vmatpush3.bf16.msra.mxu1 %v10429_v30 }
 0x4b4   :  { %7277 = vmatmul.mubr.bf16.gmra.mxu1 %v10402_v39  ;;  %7374 = vmatmul.mubr.bf16.gmra.mxu0 %v10405_v51  ;;  %v10437_v39 = vld [vmem:[#allocation3 + $0x308] ss:$52 sps:$4 sm:$0xff]  }
 0x4b5   :  { %7284 = vmatprep.mubr.bf16.mxu1 %v10411_v35  ;;  %7381 = vmatprep.mubr.bf16.mxu0 %v10414_v10 }
 0x4bc   :  { %7285 = vmatmul.mubr.bf16.gmra.mxu1 %v10409_v58  ;;  %7382 = vmatmul.mubr.bf16.gmra.mxu0 %v10412_v27 }
 0x4bd   :  { %7292 = vmatprep.mubr.bf16.mxu1 %v10418_v12  ;;  %7389 = vmatprep.mubr.bf16.mxu0 %v10421_v28 }
 0x4c4   :  { %7293 = vmatmul.mubr.bf16.gmra.mxu1 %v10416_v37  ;;  %7390 = vmatmul.mubr.bf16.gmra.mxu0 %v10419_v5 }
 0x4c5   :  { %7300 = vmatprep.mubr.bf16.mxu1 %v10425_v19  ;;  %7397 = vmatprep.mubr.bf16.mxu0 %v10428_v15 }
 0x4cc   :  { %7301 = vmatmul.mubr.bf16.gmra.mxu1 %v10423_v63  ;;  %7398 = vmatmul.mubr.bf16.gmra.mxu0 %v10426_v31 }
 0x4cd   :  { %9870 = vmatprep.mubr.bf16.mxu1 %v10430_v62  ;;  %v9342_v3 = vpop.f32.mrf.mxu1 }
 0x4cf   :  { %v9406_v54 = vpop.f32.mrf.mxu0  ;;  %v9343_v42 = vpop.f32.mrf.mxu1 }
 0x4d0   :  { %v9344_v52 = vadd.f32 %v9343_v42, %v9342_v3 }
 0x4d1   :  { %v9407_v7 = vpop.f32.mrf.mxu0  ;;  %v9345_v17 = vpop.f32.mrf.mxu1 }
 0x4d2   :  { %v9408_v50 = vadd.f32 %v9407_v7, %v9406_v54  ;;  %v6859_v56 = vadd.f32 %v9344_v52, %v11255_v61 }
 0x4d3   :  { %v9409_v57 = vpop.f32.mrf.mxu0  ;;  %v9346_v6 = vpop.f32.mrf.mxu1 }
 0x4d4   :  { %9871 = vmatmul.mubr.bf16.vlgmr.msra.gmra.mxu1 %v10431_v29  ;;  %v11258_v13 = vadd.f32 %v9408_v50, %v6859_v56  ;;  %v9347_v24 = vadd.f32 %v9346_v6, %v9345_v17 }
 0x4d5   :  { %9874 = vmatprep.mubr.bf16.mxu1 %v10432_v55  ;;  %v9410_v59 = vpop.f32.mrf.mxu0  ;;  %v9348_v47 = vpop.f32.mrf.mxu1 }
 0x4d6   :  { %v9411_v53 = vadd.f32 %v9410_v59, %v9409_v57  ;;  %v6862_v8 = vadd.f32 %v9347_v24, %v11255_v61 }
 0x4d7   :  { %v9412_v32 = vpop.f32.mrf.mxu0  ;;  %v9349_v36 = vpop.f32.mrf.mxu1 }
 0x4d8   :  { %v11261_v2 = vadd.f32 %v9411_v53, %v6862_v8  ;;  %v9350_v40 = vadd.f32 %v9349_v36, %v9348_v47 }
 0x4d9   :  { %v9413_v44 = vpop.f32.mrf.mxu0  ;;  %v9351_v20 = vpop.f32.mrf.mxu1 }
 0x4da   :  { %v9414_v14 = vadd.f32 %v9413_v44, %v9412_v32  ;;  %v6867_v34 = vadd.f32 %v9350_v40, %v11255_v61 }
 0x4db   :  { %v9415_v60 = vpop.f32.mrf.mxu0  ;;  %v9352_v11 = vpop.f32.mrf.mxu1 }
 0x4dc   :  { %9875 = vmatmul.mubr.bf16.gmra.mxu1 %v10433_v21  ;;  %v11264_v49 = vadd.f32 %v9414_v14, %v6867_v34  ;;  %v9353_v33 = vadd.f32 %v9352_v11, %v9351_v20 }
 0x4dd   :  { %9878 = vmatprep.mubr.bf16.mxu1 %v10434_v0  ;;  %v9416_v16 = vpop.f32.mrf.mxu0 }
 0x4de   :  { %v9417_v48 = vadd.f32 %v9416_v16, %v9415_v60  ;;  %v6870_v25 = vadd.f32 %v9353_v33, %v11255_v61 }
 0x4df   :  { %v9354_v22 = vpop.f32.mrf.mxu1 }
 0x4e0   :  { %v11267_v26 = vadd.f32 %v9417_v48, %v6870_v25 }
 0x4e1   :  { %v9418_v1 = vpop.f32.mrf.mxu0  ;;  %v9355_v23 = vpop.f32.mrf.mxu1 }
 0x4e2   :  { %v9356_v45 = vadd.f32 %v9355_v23, %v9354_v22 }
 0x4e3   :  { %v9419_v41 = vpop.f32.mrf.mxu0  ;;  %v9357_v4 = vpop.f32.mrf.mxu1 }
 0x4e4   :  { %9879 = vmatmul.mubr.bf16.gmra.mxu1 %v10435_v46  ;;  %v9420_v43 = vadd.f32 %v9419_v41, %v9418_v1  ;;  %v6875_v38 = vadd.f32 %v9356_v45, %v11255_v61 }
 0x4e5   :  { %9882 = vmatprep.mubr.bf16.mxu1 %v10436_v18  ;;  %v9421_v30 = vpop.f32.mrf.mxu0  ;;  %v9358_v9 = vpop.f32.mrf.mxu1 }
 0x4e6   :  { %v11270_v51 = vadd.f32 %v9420_v43, %v6875_v38  ;;  %v9359_v35 = vadd.f32 %v9358_v9, %v9357_v4 }
 0x4e7   :  { %v9422_v10 = vpop.f32.mrf.mxu0 }
 0x4e8   :  { %v9423_v58 = vadd.f32 %v9422_v10, %v9421_v30  ;;  %v6878_v12 = vadd.f32 %v9359_v35, %v11255_v61 }
 0x4ea   :  { %v9360_v27 = vpop.f32.mrf.mxu1  ;;  %v11273_v5 = vadd.f32 %v9423_v58, %v6878_v12 }
 0x4eb   :  { %v9424_v28 = vpop.f32.mrf.mxu0 }
 0x4ec   :  { %9883 = vmatmul.mubr.bf16.gmra.mxu1 %v10437_v39  ;;  %v9361_v37 = vpop.f32.mrf.mxu1 }
 0x4ed   :  { %v9362_v19 = vadd.f32 %v9361_v37, %v9360_v27  ;;  %v9425_v15 = vpop.f32.mrf.mxu0 }
 0x4ee   :  { %v9426_v63 = vadd.f32 %v9425_v15, %v9424_v28  ;;  %v9363_v31 = vpop.f32.mrf.mxu1 }
 0x4ef   :  { %v6883_v62 = vadd.f32 %v9362_v19, %v11255_v61  ;;  %v9427_v29 = vpop.f32.mrf.mxu0 }
 0x4f0   :  { %v9364_v55 = vpop.f32.mrf.mxu1 }
 0x4f1   :  { %v11276_v3 = vadd.f32 %v9426_v63, %v6883_v62  ;;  %v9365_v54 = vadd.f32 %v9364_v55, %v9363_v31  ;;  %v9428_v42 = vpop.f32.mrf.mxu0 }
 0x4f2   :  { %v9429_v52 = vadd.f32 %v9428_v42, %v9427_v29 }
 0x4f3   :  { %v9366_v7 = vpop.f32.mrf.mxu1  ;;  %v6886_v50 = vadd.f32 %v9365_v54, %v11255_v61 }
 0x4f4   :  { %v9430_v17 = vpop.f32.mrf.mxu0 }
 0x4f5   :  { %v9367_v56 = vpop.f32.mrf.mxu1  ;;  %v11279_v57 = vadd.f32 %v9429_v52, %v6886_v50 }
 0x4f6   :  { %v9368_v6 = vadd.f32 %v9367_v56, %v9366_v7  ;;  %v9431_v21 = vpop.f32.mrf.mxu0 }
 0x4f7   :  { %v9432_v24 = vadd.f32 %v9431_v21, %v9430_v17  ;;  %v9369_v59 = vpop.f32.mrf.mxu1 }
 0x4f8   :  { %v6891_v0 = vadd.f32 %v9368_v6, %v11255_v61  ;;  %v9433_v53 = vpop.f32.mrf.mxu0 }
 0x4f9   :  { %v9370_v47 = vpop.f32.mrf.mxu1 }
 0x4fa   :  { %v11282_v8 = vadd.f32 %v9432_v24, %v6891_v0  ;;  %v9371_v32 = vadd.f32 %v9370_v47, %v9369_v59  ;;  %v9434_v36 = vpop.f32.mrf.mxu0 }
 0x4fb   :  { %v9435_v40 = vadd.f32 %v9434_v36, %v9433_v53  ;;  %v9372_v44 = vpop.f32.mrf.mxu1 }
 0x4fc   :  { %v6894_v14 = vadd.f32 %v9371_v32, %v11255_v61  ;;  %v9436_v20 = vpop.f32.mrf.mxu0 }
 0x4fd   :  { %v9373_v34 = vpop.f32.mrf.mxu1 }
 0x4fe   :  { %v11285_v60 = vadd.f32 %v9435_v40, %v6894_v14  ;;  %v9374_v11 = vadd.f32 %v9373_v34, %v9372_v44  ;;  %v9437_v46 = vpop.f32.mrf.mxu0 }
 0x4ff   :  { %v9438_v33 = vadd.f32 %v9437_v46, %v9436_v20  ;;  %v9375_v16 = vpop.f32.mrf.mxu1 }
 0x500   :  { %v6899_v18 = vadd.f32 %v9374_v11, %v11255_v61  ;;  %v9439_v48 = vpop.f32.mrf.mxu0 }
 0x501   :  { %v9376_v22 = vpop.f32.mrf.mxu1 }
 0x502   :  { %v11288_v25 = vadd.f32 %v9438_v33, %v6899_v18  ;;  %v9377_v1 = vadd.f32 %v9376_v22, %v9375_v16  ;;  %v9440_v23 = vpop.f32.mrf.mxu0 }
 0x503   :  { %v9441_v45 = vadd.f32 %v9440_v23, %v9439_v48  ;;  %v9378_v41 = vpop.f32.mrf.mxu1 }
 0x504   :  { %v6902_v43 = vadd.f32 %v9377_v1, %v11255_v61  ;;  %v9442_v4 = vpop.f32.mrf.mxu0 }
 0x505   :  { %v9379_v38 = vpop.f32.mrf.mxu1 }
 0x506   :  { %v11291_v30 = vadd.f32 %v9441_v45, %v6902_v43  ;;  %v9380_v9 = vadd.f32 %v9379_v38, %v9378_v41  ;;  %v9443_v39 = vpop.f32.mrf.mxu0 }
 0x507   :  { %v9444_v35 = vadd.f32 %v9443_v39, %v9442_v4  ;;  %v9381_v10 = vpop.f32.mrf.mxu1 }
 0x508   :  { %v6907_v58 = vadd.f32 %v9380_v9, %v11255_v61  ;;  %v9445_v27 = vpop.f32.mrf.mxu0 }
 0x509   :  { %v9382_v12 = vpop.f32.mrf.mxu1 }
 0x50a   :  { %v11294_v28 = vadd.f32 %v9444_v35, %v6907_v58  ;;  %v9383_v37 = vadd.f32 %v9382_v12, %v9381_v10  ;;  %v9446_v19 = vpop.f32.mrf.mxu0 }
 0x50b   :  { %v9447_v15 = vadd.f32 %v9446_v19, %v9445_v27  ;;  %v9384_v63 = vpop.f32.mrf.mxu1 }
 0x50c   :  { %v6910_v31 = vadd.f32 %v9383_v37, %v11255_v61  ;;  %v9448_v62 = vpop.f32.mrf.mxu0 }
 0x50d   :  { %v9385_v29 = vpop.f32.mrf.mxu1 }
 0x50e   :  { %v11297_v55 = vadd.f32 %v9447_v15, %v6910_v31  ;;  %v9386_v54 = vadd.f32 %v9385_v29, %v9384_v63  ;;  %v9449_v42 = vpop.f32.mrf.mxu0 }
 0x50f   :  { %v9450_v52 = vadd.f32 %v9449_v42, %v9448_v62  ;;  %v9387_v7 = vpop.f32.mrf.mxu1 }
 0x510   :  { %v6915_v50 = vadd.f32 %v9386_v54, %v11255_v61  ;;  %v9451_v17 = vpop.f32.mrf.mxu0 }
 0x511   :  { %v9388_v56 = vpop.f32.mrf.mxu1 }
 0x512   :  { %v11300_v6 = vadd.f32 %v9450_v52, %v6915_v50  ;;  %v9389_v21 = vadd.f32 %v9388_v56, %v9387_v7  ;;  %v9452_v24 = vpop.f32.mrf.mxu0 }
 0x513   :  { %v9453_v59 = vadd.f32 %v9452_v24, %v9451_v17  ;;  %v9470_v0 = vpop.f32.mrf.mxu1 }
 0x514   :  { %v6918_v53 = vadd.f32 %v9389_v21, %v11255_v61  ;;  %v9534_v47 = vpop.f32.mrf.mxu0 }
 0x515   :  { %v9471_v32 = vpop.f32.mrf.mxu1 }
 0x516   :  { %v11303_v36 = vadd.f32 %v9453_v59, %v6918_v53  ;;  %v9472_v40 = vadd.f32 %v9471_v32, %v9470_v0  ;;  %v9535_v44 = vpop.f32.mrf.mxu0 }
 0x517   :  { %v9536_v14 = vadd.f32 %v9535_v44, %v9534_v47  ;;  %v9473_v20 = vpop.f32.mrf.mxu1 }
 0x518   :  { %v7053_v34 = vadd.f32 %v9472_v40, %v11258_v13  ;;  %v9537_v11 = vpop.f32.mrf.mxu0 }
 0x519   :  { %v9474_v46 = vpop.f32.mrf.mxu1 }
 0x51a   :  { %v11306_v33 = vadd.f32 %v9536_v14, %v7053_v34  ;;  %v9475_v16 = vadd.f32 %v9474_v46, %v9473_v20  ;;  %v9538_v18 = vpop.f32.mrf.mxu0 }
 0x51b   :  { %v9539_v48 = vadd.f32 %v9538_v18, %v9537_v11  ;;  %v9476_v22 = vpop.f32.mrf.mxu1 }
 0x51c   :  { %v7056_v61 = vadd.f32 %v9475_v16, %v11261_v2  ;;  %v9540_v1 = vpop.f32.mrf.mxu0 }
 0x51d   :  { %v9477_v23 = vpop.f32.mrf.mxu1 }
 0x51e   :  { %v11309_v45 = vadd.f32 %v9539_v48, %v7056_v61  ;;  %v9478_v41 = vadd.f32 %v9477_v23, %v9476_v22  ;;  %v9541_v43 = vpop.f32.mrf.mxu0 }
 0x51f   :  { %v9542_v4 = vadd.f32 %v9541_v43, %v9540_v1  ;;  %v9479_v38 = vpop.f32.mrf.mxu1 }
 0x520   :  { %v7061_v13 = vadd.f32 %v9478_v41, %v11264_v49  ;;  %v9543_v9 = vpop.f32.mrf.mxu0 }
 0x521   :  { %v9480_v39 = vpop.f32.mrf.mxu1 }
 0x522   :  { %v11312_v35 = vadd.f32 %v9542_v4, %v7061_v13  ;;  %v9481_v10 = vadd.f32 %v9480_v39, %v9479_v38  ;;  %v9544_v58 = vpop.f32.mrf.mxu0 }
 0x523   :  { %v9545_v27 = vadd.f32 %v9544_v58, %v9543_v9  ;;  %v9482_v12 = vpop.f32.mrf.mxu1 }
 0x524   :  { %v7064_v2 = vadd.f32 %v9481_v10, %v11267_v26  ;;  %v9546_v37 = vpop.f32.mrf.mxu0 }
 0x525   :  { %v9483_v19 = vpop.f32.mrf.mxu1 }
 0x526   :  { %v11315_v15 = vadd.f32 %v9545_v27, %v7064_v2  ;;  %v9484_v63 = vadd.f32 %v9483_v19, %v9482_v12  ;;  %v9547_v31 = vpop.f32.mrf.mxu0 }
 0x527   :  { %v9548_v62 = vadd.f32 %v9547_v31, %v9546_v37  ;;  %v9485_v29 = vpop.f32.mrf.mxu1 }
 0x528   :  { %v7069_v49 = vadd.f32 %v9484_v63, %v11270_v51  ;;  %v9549_v54 = vpop.f32.mrf.mxu0 }
 0x529   :  { %v9486_v42 = vpop.f32.mrf.mxu1 }
 0x52a   :  { %v11318_v52 = vadd.f32 %v9548_v62, %v7069_v49  ;;  %v9487_v7 = vadd.f32 %v9486_v42, %v9485_v29  ;;  %v9550_v50 = vpop.f32.mrf.mxu0 }
 0x52b   :  { %v9551_v17 = vadd.f32 %v9550_v50, %v9549_v54  ;;  %v9488_v56 = vpop.f32.mrf.mxu1 }
 0x52c   :  { %v7072_v26 = vadd.f32 %v9487_v7, %v11273_v5  ;;  %v9552_v21 = vpop.f32.mrf.mxu0 }
 0x52d   :  { %v9489_v24 = vpop.f32.mrf.mxu1 }
 0x52e   :  { %v11321_v59 = vadd.f32 %v9551_v17, %v7072_v26  ;;  %v9490_v0 = vadd.f32 %v9489_v24, %v9488_v56  ;;  %v9553_v53 = vpop.f32.mrf.mxu0 }
 0x52f   :  { %v9554_v47 = vadd.f32 %v9553_v53, %v9552_v21  ;;  %v9491_v32 = vpop.f32.mrf.mxu1 }
 0x530   :  { %v7077_v51 = vadd.f32 %v9490_v0, %v11276_v3  ;;  %v9555_v40 = vpop.f32.mrf.mxu0 }
 0x531   :  { %v9492_v44 = vpop.f32.mrf.mxu1 }
 0x532   :  { %v11324_v14 = vadd.f32 %v9554_v47, %v7077_v51  ;;  %v9493_v20 = vadd.f32 %v9492_v44, %v9491_v32  ;;  %v9556_v34 = vpop.f32.mrf.mxu0 }
 0x533   :  { %v9557_v11 = vadd.f32 %v9556_v34, %v9555_v40 }
 0x534   :  { %v9494_v46 = vpop.f32.mrf.mxu1  ;;  %v7080_v5 = vadd.f32 %v9493_v20, %v11279_v57  ;;  %v9558_v16 = vpop.f32.mrf.mxu0 }
 0x536   :  { %v9495_v18 = vpop.f32.mrf.mxu1  ;;  %v11327_v48 = vadd.f32 %v9557_v11, %v7080_v5  ;;  %v9559_v61 = vpop.f32.mrf.mxu0 }
 0x537   :  { %v9496_v22 = vadd.f32 %v9495_v18, %v9494_v46  ;;  %v9560_v1 = vadd.f32 %v9559_v61, %v9558_v16 }
 0x538   :  { %v9497_v23 = vpop.f32.mrf.mxu1  ;;  %v9561_v41 = vpop.f32.mrf.mxu0 }
 0x539   :  { %v7085_v3 = vadd.f32 %v9496_v22, %v11282_v8 }
 0x53a   :  { %v9498_v43 = vpop.f32.mrf.mxu1  ;;  %v9562_v13 = vpop.f32.mrf.mxu0 }
 0x53b   :  { %v11330_v4 = vadd.f32 %v9560_v1, %v7085_v3  ;;  %v9499_v38 = vadd.f32 %v9498_v43, %v9497_v23  ;;  %v9563_v9 = vadd.f32 %v9562_v13, %v9561_v41 }
 0x53c   :  { %v9500_v39 = vpop.f32.mrf.mxu1  ;;  %v9564_v10 = vpop.f32.mrf.mxu0 }
 0x53d   :  { %v7088_v57 = vadd.f32 %v9499_v38, %v11285_v60 }
 0x53e   :  { %v9501_v58 = vpop.f32.mrf.mxu1  ;;  %v9565_v2 = vpop.f32.mrf.mxu0 }
 0x53f   :  { %v11333_v27 = vadd.f32 %v9563_v9, %v7088_v57  ;;  %v9502_v12 = vadd.f32 %v9501_v58, %v9500_v39  ;;  %v9566_v37 = vadd.f32 %v9565_v2, %v9564_v10 }
 0x540   :  { %v9503_v19 = vpop.f32.mrf.mxu1  ;;  %v9567_v63 = vpop.f32.mrf.mxu0 }
 0x541   :  { %11615 = vst [vmem:[#allocation38_spill] sm:$0xff] %v11333_v27  ;;  %v7093_v8 = vadd.f32 %v9502_v12, %v11288_v25 }
 0x542   :  { %v9504_v31 = vpop.f32.mrf.mxu1  ;;  %v9568_v49 = vpop.f32.mrf.mxu0 }
 0x543   :  { %v11336_v62 = vadd.f32 %v9566_v37, %v7093_v8  ;;  %v9505_v29 = vadd.f32 %v9504_v31, %v9503_v19  ;;  %v9569_v54 = vadd.f32 %v9568_v49, %v9567_v63 }
 0x544   :  { %v9506_v42 = vpop.f32.mrf.mxu1  ;;  %v9570_v7 = vpop.f32.mrf.mxu0 }
 0x545   :  { %v7096_v60 = vadd.f32 %v9505_v29, %v11291_v30 }
 0x546   :  { %v9507_v50 = vpop.f32.mrf.mxu1  ;;  %v9571_v26 = vpop.f32.mrf.mxu0 }
 0x547   :  { %v11339_v17 = vadd.f32 %v9569_v54, %v7096_v60  ;;  %v9508_v56 = vadd.f32 %v9507_v50, %v9506_v42  ;;  %v9572_v21 = vadd.f32 %v9571_v26, %v9570_v7 }
 0x548   :  { %v9509_v24 = vpop.f32.mrf.mxu1  ;;  %v9573_v0 = vpop.f32.mrf.mxu0 }
 0x549   :  { %11616 = vst [vmem:[#allocation40_spill] sm:$0xff] %v11339_v17  ;;  %v7101_v25 = vadd.f32 %v9508_v56, %v11294_v28 }
 0x54a   :  { %v9510_v53 = vpop.f32.mrf.mxu1  ;;  %v9574_v51 = vpop.f32.mrf.mxu0 }
 0x54b   :  { %v11342_v47 = vadd.f32 %v9572_v21, %v7101_v25  ;;  %v9511_v32 = vadd.f32 %v9510_v53, %v9509_v24  ;;  %v9575_v40 = vadd.f32 %v9574_v51, %v9573_v0 }
 0x54c   :  { %v9512_v44 = vpop.f32.mrf.mxu1  ;;  %v11345_v20 = vpop.f32.mrf.mxu0 }
 0x54d   :  { %11617 = vst [vmem:[#allocation42_spill] sm:$0xff] %v11342_v47  ;;  %v7104_v30 = vadd.f32 %v9511_v32, %v11297_v55  ;;  %11618 = vst [vmem:[#allocation44_spill] sm:$0xff] %v11345_v20 }
 0x54e   :  { %v9513_v34 = vpop.f32.mrf.mxu1  ;;  %v11349_v5 = vpop.f32.mrf.mxu0 }
 0x54f   :  { %v11347_v11 = vadd.f32 %v9575_v40, %v7104_v30  ;;  %v9514_v46 = vadd.f32 %v9513_v34, %v9512_v44  ;;  %11620 = vst [vmem:[#allocation43_spill] sm:$0xff] %v11349_v5 }
 0x550   :  { %v9515_v16 = vpop.f32.mrf.mxu1  ;;  %v11354_v18 = vpop.f32.mrf.mxu0 }
 0x551   :  { %11619 = vst [vmem:[#allocation46_spill] sm:$0xff] %v11347_v11  ;;  %v11352_v28 = vadd.f32 %v9514_v46, %v11300_v6  ;;  %11622 = vst [vmem:[#allocation32_spill] sm:$0xff] %v11354_v18 }
 0x552   :  { %v9516_v22 = vpop.f32.mrf.mxu1  ;;  %v11356_v1 = vpop.f32.mrf.mxu0 }
 0x553   :  { %11621 = vst [vmem:[#allocation45_spill] sm:$0xff] %v11352_v28  ;;  %v9517_v61 = vadd.f32 %v9516_v22, %v9515_v16  ;;  %11623 = vst [vmem:[#allocation47_spill] sm:$0xff] %v11356_v1 }
 0x554   :  { %v9598_v23 = vpop.f32.mrf.mxu1  ;;  %v11361_v3 = vpop.f32.mrf.mxu0 }
 0x555   :  { %v11359_v55 = vadd.f32 %v9517_v61, %v11303_v36 }
 0x556   :  { %v9599_v41 = vpop.f32.mrf.mxu1  ;;  %v11363_v43 = vpop.f32.mrf.mxu0 }
 0x557   :  { %11624 = vst [vmem:[#allocation48_spill] sm:$0xff] %v11359_v55 }
 0x558   :  { %v9601_v38 = vpop.f32.mrf.mxu1  ;;  %v11365_v13 = vpop.f32.mrf.mxu0 }
 0x55a   :  { %v9602_v6 = vpop.f32.mrf.mxu1  ;;  %v11367_v9 = vpop.f32.mrf.mxu0 }
 0x55c   :  { %v9604_v39 = vpop.f32.mrf.mxu1  ;;  %v9668_v57 = vpop.f32.mrf.mxu0 }
 0x55e   :  { %v9605_v10 = vpop.f32.mrf.mxu1  ;;  %v9669_v58 = vpop.f32.mrf.mxu0 }
 0x55f   :  { %v9606_v28 = vadd.f32 %v9605_v10, %v9604_v39  ;;  %v9670_v39 = vadd.f32 %v9669_v58, %v9668_v57 }
 0x560   :  { %v9607_v12 = vpop.f32.mrf.mxu1  ;;  %v11369_v2 = vpop.f32.mrf.mxu0 }
 0x562   :  { %v9608_v36 = vpop.f32.mrf.mxu1  ;;  %v9672_v37 = vpop.f32.mrf.mxu0 }
 0x563   :  { %v9609_v20 = vadd.f32 %v9608_v36, %v9607_v12  ;;  %v11641_v36 = vld [vmem:[#allocation15_spill] sm:$0xff] }
 0x564   :  { %v9610_v19 = vpop.f32.mrf.mxu1  ;;  %v11371_v8 = vpop.f32.mrf.mxu0 }
 0x566   :  { %v9611_v63 = vpop.f32.mrf.mxu1  ;;  %v11373_v31 = vpop.f32.mrf.mxu0 }
 0x568   :  { %v11375_v29 = vpop.f32.mrf.mxu1  ;;  %v11377_v49 = vpop.f32.mrf.mxu0 }
 0x56a   :  { %v11379_v54 = vpop.f32.mrf.mxu1  ;;  %v11381_v42 = vpop.f32.mrf.mxu0 }
 0x56c   :  { %v9616_v60 = vpop.f32.mrf.mxu1  ;;  %v11383_v7 = vpop.f32.mrf.mxu0 }
 0x56e   :  { %v9617_v50 = vpop.f32.mrf.mxu1  ;;  %v11385_v56 = vpop.f32.mrf.mxu0 }
 0x56f   :  { %v9618_v10 = vadd.f32 %v9617_v50, %v9616_v60  ;;  %v9673_v60 = vadd.f32 %v9672_v37, %v11369_v2  ;;  %v9612_v50 = vadd.f32 %v9611_v63, %v9610_v19  ;;  %v11646_v2 = vld [vmem:[#allocation20_spill] sm:$0xff]  ;;  %v9682_v19 = vadd.f32 %v11385_v56, %v11383_v7 }
 0x570   :  { %v9619_v26 = vpop.f32.mrf.mxu1  ;;  %v11387_v21 = vpop.f32.mrf.mxu0 }
 0x571   :  { %v7263_v63 = vadd.f32 %v9612_v50, %v11318_v52  ;;  %v11649_v50 = vld [vmem:[#allocation23_spill] sm:$0xff] }
 0x572   :  { %v9620_v24 = vpop.f32.mrf.mxu1  ;;  %v11389_v25 = vpop.f32.mrf.mxu0 }
 0x574   :  { %v11391_v0 = vpop.f32.mrf.mxu1  ;;  %v11393_v53 = vpop.f32.mrf.mxu0 }
 0x575   :  { %11625 = vst [vmem:[#allocation49_spill] sm:$0xff] %v11393_v53 }
 0x576   :  { %v11395_v32 = vpop.f32.mrf.mxu1  ;;  %v11397_v51 = vpop.f32.mrf.mxu0 }
 0x577   :  { %11626 = vst [vmem:[#allocation30_spill] sm:$0xff] %v11397_v51  ;;  %v9600_v51 = vadd.f32 %v9599_v41, %v9598_v23  ;;  %v11640_v41 = vld [vmem:[#allocation14_spill] sm:$0xff] }
 0x578   :  { %v11399_v40 = vpop.f32.mrf.mxu1  ;;  %v11401_v44 = vpop.f32.mrf.mxu0 }
 0x579   :  { %11627 = vst [vmem:[#allocation50_spill] sm:$0xff] %v11401_v44 }
 0x57a   :  { %v11403_v30 = vpop.f32.mrf.mxu1  ;;  %v11405_v34 = vpop.f32.mrf.mxu0 }
 0x57b   :  { %11628 = vst [vmem:[#allocation33_spill] sm:$0xff] %v11405_v34 }
 0x57c   :  { %v11407_v46 = vpop.f32.mrf.mxu1  ;;  %v11409_v16 = vpop.f32.mrf.mxu0 }
 0x57e   :  { %v11411_v22 = vpop.f32.mrf.mxu1  ;;  %v11415_v11 = vpop.f32.mrf.mxu0 }
 0x580   :  { %v11413_v61 = vpop.f32.mrf.mxu1  ;;  %v11421_v1 = vpop.f32.mrf.mxu0 }
 0x581   :  { %11630 = vst [vmem:[#allocation34_spill] sm:$0xff] %v11421_v1 }
 0x582   :  { %v11417_v47 = vpop.f32.mrf.mxu1  ;;  %v11427_v34 = vpop.f32.mrf.mxu0 }
 0x583   :  { %11633 = vst [vmem:[#allocation37_spill] sm:$0xff] %v11427_v34 }
 0x584   :  { %v11419_v55 = vpop.f32.mrf.mxu1  ;;  %v11433_v53 = vpop.f32.mrf.mxu0 }
 0x585   :  { %11629 = vst [vmem:[#allocation31_spill] sm:$0xff] %v11419_v55  ;;  %11635 = vst [vmem:[#allocation52_spill] sm:$0xff] %v11433_v53  ;;  %v7255_v55 = vadd.f32 %v9606_v28, %v11312_v35  ;;  %v9664_v35 = vadd.f32 %v11363_v43, %v11361_v3  ;;  %v7258_v28 = vadd.f32 %v9609_v20, %v11315_v15 }
 0x586   :  { %v11423_v44 = vpop.f32.mrf.mxu1  ;;  %v11444_v34 = vpop.f32.mrf.mxu0  ;;  %v9667_v15 = vadd.f32 %v11367_v9, %v11365_v13  ;;  %v7271_v20 = vadd.f32 %v9618_v10, %v11324_v14  ;;  %v11472_v14 = vld [vmem:[%s11547_s2] ss:$0 sm:$0xff] }
 0x587   :  { %11631 = vst [vmem:[#allocation35_spill] sm:$0xff] %v11423_v44  ;;  %v7590_v44 = vld [vmem:[%s11547_s2] ss:$0 sm:$0xff]  ;;  %11638 = vst [vmem:[#allocation53_spill] sm:$0xff] %v11444_v34  ;;  %v7352_v12 = vadd.f32 %v9670_v39, %v7255_v55  ;;  %v9621_v55 = vadd.f32 %v9620_v24, %v9619_v26  ;;  %s10509_s2 = smov [#allocation10]  }
 0x588   :  { %v11425_v18 = vpop.f32.mrf.mxu1  ;;  %v359_v53 = vadd.f32 %v11640_v41, %v7590_v44  ;;  %v11644_v34 = vld [vmem:[#allocation18_spill] sm:$0xff]  ;;  %v11461_v3 = vpop.f32.mrf.mxu0  ;;  %v378_v37 = vadd.f32 %v11646_v2, %v7590_v44  ;;  %v11653_v2 = vld [vmem:[#allocation49_spill] sm:$0xff]  ;;  %s7573_s3 = sshll.u32 %s10509_s2, 4  ;;  %s7574_s3 = int_to_ptr.vmem [resolvable:$true] %s7573_s3 }
 0x589   :  { %11632 = vst [vmem:[#allocation36_spill] sm:$0xff] %v11425_v18  ;;  %v9603_v18 = vadd.f32 %v9602_v6, %v9601_v38  ;;  %v351_v38 = vadd.f32 %v7590_v44, %v11641_v36  ;;  %v11642_v6 = vld [vmem:[#allocation16_spill] sm:$0xff]  ;;  %v7355_v36 = vadd.f32 %v9673_v60, %v7258_v28  ;;  %v9630_v28 = vadd.f32 %v11411_v22, %v11407_v46  ;;  %s10478_s5 = scalar_lea.vmem %s7574_s3, 2048  ;;  %p10483_p11 = scmp.lt.s32.totalorder %s7574_s3, %s7574_s3 }
 0x58a   :  { %v11429_v27 = vpop.f32.mrf.mxu1  ;;  %v11479_v7 = vpop.f32.mrf.mxu0  ;;  %p10479_p10 = scmp.ne.s32.totalorder %s7574_s3, %s10478_s5  ;;  %p10484_p12 = scmp.lt.s32.totalorder %s10478_s5, %s10478_s5 }
 0x58b   :  { %11634 = vst [vmem:[#allocation39_spill] sm:$0xff] %v11429_v27  ;;  %v7247_v27 = vadd.f32 %v9600_v51, %v11306_v33  ;;  %v7250_v57 = vadd.f32 %v9603_v18, %v11309_v45 }
 0x58c   :  { %v11431_v17 = vpop.f32.mrf.mxu1  ;;  %p10485_p13 = por %p10484_p12, %p10483_p11 }
 0x58d   :  { %v7344_v41 = vadd.f32 %v9664_v35, %v7247_v27  ;;  %v9615_v27 = vadd.f32 %v11379_v54, %v11375_v29  ;;  %v7347_v9 = vadd.f32 %v9667_v15, %v7250_v57  ;;  %v9676_v29 = vadd.f32 %v11373_v31, %v11371_v8 }
 0x58e   :  { %v11435_v5 = vpop.f32.mrf.mxu1  ;;  %v7274_v54 = vadd.f32 %v9621_v55, %v11327_v48  ;;  %v7368_v35 = vadd.f32 %v9682_v19, %v7271_v20  ;;  %v9685_v8 = vadd.f32 %v11389_v25, %v11387_v21  ;;  %v9624_v48 = vadd.f32 %v11395_v32, %v11391_v0  ;;  %v11650_v20 = vld [vmem:[#allocation24_spill] sm:$0xff]  ;;  %p10486_p0 = pnand %p10485_p13, %p10479_p10 }
 0x58f   :  { %11636 = vst [vmem:[#allocation41_spill] sm:$0xff] %v11435_v5  ;;  %v11643_v5 = vld [vmem:[#allocation17_spill] sm:$0xff]  ;;  %v7360_v22 = vadd.f32 %v9676_v29, %v7263_v63  ;;  %v7287_v0 = vadd.f32 %v9630_v28, %v11336_v62  ;;  %v632_v55 = vadd.f32 %v11650_v20, %v11472_v14  ;;  %v11669_v20 = vld [vmem:[#allocation48_spill] sm:$0xff] }
 0x590   :  { %v11441_v1 = vpop.f32.mrf.mxu1  ;;  %v354_v33 = vadd.f32 %v7590_v44, %v11643_v5  ;;  %v11645_v5 = vld [vmem:[#allocation19_spill] sm:$0xff]  ;;  %v7371_v25 = vadd.f32 %v9685_v8, %v7274_v54  ;;  %v11659_v29 = vld [vmem:[#allocation37_spill] sm:$0xff] }
 0x591   :  { %11637 = vst [vmem:[#allocation51_spill] sm:$0xff] %v11441_v1  ;;  %v362_v1 = vadd.f32 %v11642_v6, %v7590_v44  ;;  %v367_v39 = vadd.f32 %v7590_v44, %v11645_v5 }
 0x592   :  { %v11446_v23 = vpop.f32.mrf.mxu1 }
 0x593   :  { %11639 = vst [vmem:[#allocation54_spill] sm:$0xff] %v11446_v23  ;;  %v375_v23 = vadd.f32 %v11644_v34, %v7590_v44  ;;  %v11647_v34 = vld [vmem:[#allocation21_spill] sm:$0xff] }
 0x594   :  { %v9872_v58 = vpop.f32.mrf.mxu1  ;;  %v370_v10 = vadd.f32 %v7590_v44, %v11647_v34  ;;  %v7266_v44 = vadd.f32 %v9615_v27, %v11321_v59  ;;  %v9633_v59 = vadd.f32 %v11417_v47, %v11413_v61  ;;  %v9694_v47 = vadd.f32 %v11415_v11, %v11409_v16  ;;  %v11654_v27 = vld [vmem:[#allocation30_spill] sm:$0xff] }
 0x595   :  { %v7449_v51 = vadd.f32 %v9872_v58, %v7352_v12  ;;  %v9688_v19 = vadd.f32 %v11654_v27, %v11653_v2  ;;  %v11658_v34 = vld [vmem:[#allocation34_spill] sm:$0xff]  ;;  %v11673_v2 = vld [vmem:[#allocation25_spill] sm:$0xff] }
 0x596   :  { %v7440_v43 = vpop.f32.mrf.mxu1  ;;  %v9697_v54 = vadd.f32 %v11659_v29, %v11658_v34  ;;  %v624_v27 = vadd.f32 %v11472_v14, %v11673_v2 }
 0x597   :  { %v7521_v45 = vadd.f32 %v7449_v51, %v359_v53  ;;  %v7441_v18 = vadd.f32 %v7440_v43, %v7344_v41  ;;  %v9679_v51 = vadd.f32 %v11381_v42, %v11377_v49  ;;  %v9704_v41 = vpop.f32.mrf.mxu0  ;;  %v7279_v43 = vadd.f32 %v9624_v48, %v11330_v4  ;;  %v11663_v48 = vld [vmem:[#allocation32_spill] sm:$0xff] }
 0x598   :  { %v9873_v13 = vpop.f32.mrf.mxu1  ;;  %v9627_v49 = vadd.f32 %v11403_v30, %v11399_v40 }
 0x599   :  { %v7537_v26 = vmax.f32 %v7521_v45, 0.0  ;;  %v7519_v24 = vadd.f32 %v7441_v18, %v351_v38  ;;  %v7452_v53 = vadd.f32 %v9873_v13, %v7355_v36  ;;  %v11648_v38 = vld [vmem:[#allocation22_spill] sm:$0xff]  ;;  %v7363_v5 = vadd.f32 %v9679_v51, %v7266_v44  ;;  %v11651_v18 = vld [vmem:[#allocation44_spill] sm:$0xff]  ;;  %v9705_v30 = vpop.f32.mrf.mxu0 }
 0x59a   :  { %v7443_v56 = vpop.f32.mrf.mxu1  ;;  %v629_v57 = vadd.f32 %v11648_v38, %v11472_v14  ;;  %v11655_v13 = vld [vmem:[#allocation40_spill] sm:$0xff] }
 0x59b   :  { %7553 = vst [vmem:[#allocation10 + $0x10] sm:$0xff] %v7537_v26  ;;  %v7535_v12 = vmax.f32 %v7519_v24, 0.0  ;;  %v7522_v52 = vadd.f32 %v7452_v53, %v362_v1  ;;  %v7444_v6 = vadd.f32 %v7443_v56, %v7347_v9  ;;  %v621_v1 = vadd.f32 %v11472_v14, %v11649_v50  ;;  %v11656_v9 = vld [vmem:[#allocation41_spill] sm:$0xff]  ;;  %v11660_v56 = vld [vmem:[#allocation31_spill] sm:$0xff]  ;;  %v9707_v50 = vpop.f32.mrf.mxu0 }
 0x59c   :  { %v9876_v31 = vpop.f32.mrf.mxu1  ;;  %v7290_v4 = vadd.f32 %v9633_v59, %v11655_v13  ;;  %v9642_v40 = vadd.f32 %v11656_v9, %v11431_v17  ;;  %v7384_v24 = vadd.f32 %v9694_v47, %v7287_v0 }
 0x59d   :  { %7551 = vst [vmem:[#allocation10] sm:$0xff] %v7535_v12  ;;  %v7538_v58 = vmax.f32 %v7522_v52, 0.0  ;;  %v7520_v60 = vadd.f32 %v7444_v6, %v354_v33  ;;  %v7465_v46 = vadd.f32 %v9876_v31, %v7368_v35  ;;  %v11661_v35 = vld [vmem:[#allocation35_spill] sm:$0xff]  ;;  %v7376_v52 = vadd.f32 %v9688_v19, %v7279_v43  ;;  %v11662_v6 = vld [vmem:[#allocation38_spill] sm:$0xff]  ;;  %v11674_v19 = vld [vmem:[#allocation52_spill] sm:$0xff] }
 0x59e   :  { %v7456_v21 = vpop.f32.mrf.mxu1  ;;  %v9636_v28 = vadd.f32 %v11661_v35, %v11660_v56  ;;  %v7282_v38 = vadd.f32 %v9627_v49, %v11662_v6  ;;  %v7387_v59 = vadd.f32 %v9697_v54, %v7290_v4  ;;  %v11670_v43 = vld [vmem:[#allocation42_spill] sm:$0xff]  ;;  %v9708_v4 = vpop.f32.mrf.mxu0  ;;  %v11678_v35 = vld [vmem:[#allocation27_spill] sm:$0xff] }
 0x59f   :  { %7554 = vst [vmem:[#allocation10 + $0x18] sm:$0xff] %v7538_v58  ;;  %v7536_v32 = vmax.f32 %v7520_v60, 0.0  ;;  %v7525_v15 = vadd.f32 %v7465_v46, %v375_v23  ;;  %v7457_v33 = vadd.f32 %v7456_v21, %v7360_v22  ;;  %v11652_v23 = vld [vmem:[#allocation43_spill] sm:$0xff]  ;;  %v11665_v58 = vld [vmem:[#allocation50_spill] sm:$0xff]  ;;  %v11666_v60 = vld [vmem:[#allocation33_spill] sm:$0xff]  ;;  %v9709_v34 = vadd.f32 %v9708_v4, %v9707_v50 }
 0x5a0   :  { %v9877_v42 = vpop.f32.mrf.mxu1  ;;  %v9578_v36 = vadd.f32 %v11652_v23, %v11651_v18  ;;  %v9691_v46 = vadd.f32 %v11666_v60, %v11665_v58  ;;  %v11667_v21 = vld [vmem:[#allocation51_spill] sm:$0xff]  ;;  %v7295_v49 = vadd.f32 %v9636_v28, %v11670_v43  ;;  %v637_v28 = vadd.f32 %v11472_v14, %v11678_v35 }
 0x5a1   :  { %7552 = vst [vmem:[#allocation10 + $0x8] sm:$0xff] %v7536_v32  ;;  %v7541_v61 = vmax.f32 %v7525_v15, 0.0  ;;  %v7523_v62 = vadd.f32 %v7457_v33, %v367_v39  ;;  %v7468_v45 = vadd.f32 %v9877_v42, %v7371_v25  ;;  %v11657_v39 = vld [vmem:[#allocation45_spill] sm:$0xff]  ;;  %v11668_v25 = vld [vmem:[#allocation54_spill] sm:$0xff]  ;;  %v11671_v42 = vld [vmem:[#allocation36_spill] sm:$0xff] }
 0x5a2   :  { %v7459_v63 = vpop.f32.mrf.mxu1  ;;  %v7206_v53 = vadd.f32 %v9578_v36, %v11657_v39  ;;  %v9645_v0 = vadd.f32 %v11668_v25, %v11667_v21  ;;  %v7379_v36 = vadd.f32 %v9691_v46, %v7282_v38 }
 0x5a3   :  { %7557 = vst [vmem:[#allocation10 + $0x30] sm:$0xff] %v7541_v61  ;;  %v7539_v26 = vmax.f32 %v7523_v62, 0.0  ;;  %v7526_v11 = vadd.f32 %v7468_v45, %v378_v37  ;;  %v7460_v16 = vadd.f32 %v7459_v63, %v7363_v5  ;;  %v11664_v37 = vld [vmem:[#allocation47_spill] sm:$0xff]  ;;  %v9706_v61 = vadd.f32 %v9705_v30, %v9704_v41  ;;  %v11676_v30 = vld [vmem:[#allocation26_spill] sm:$0xff] }
 0x5a4   :  { %v9880_v12 = vpop.f32.mrf.mxu1  ;;  %v9581_v31 = vadd.f32 %v11664_v37, %v11663_v48  ;;  %v7303_v22 = vadd.f32 %v9642_v40, %v7206_v53  ;;  %v11672_v5 = vld [vmem:[#allocation39_spill] sm:$0xff] }
 0x5a5   :  { %7555 = vst [vmem:[#allocation10 + $0x20] sm:$0xff] %v7539_v26  ;;  %v7542_v17 = vmax.f32 %v7526_v11, 0.0  ;;  %v7524_v44 = vadd.f32 %v7460_v16, %v370_v10  ;;  %v7481_v8 = vadd.f32 %v9880_v12, %v7384_v24  ;;  %v9639_v47 = vadd.f32 %v11672_v5, %v11671_v42 }
 0x5a6   :  { %v7472_v51 = vpop.f32.mrf.mxu1  ;;  %v7209_v10 = vadd.f32 %v9581_v31, %v11669_v20  ;;  %v7400_v40 = vadd.f32 %v9706_v61, %v7303_v22  ;;  %v645_v16 = vadd.f32 %v11676_v30, %v11472_v14  ;;  %v9703_v12 = vadd.f32 %v11479_v7, %v11461_v3  ;;  %v11680_v22 = vld [vmem:[#allocation29_spill] sm:$0xff] }
 0x5a7   :  { %7558 = vst [vmem:[#allocation10 + $0x38] sm:$0xff] %v7542_v17  ;;  %v7540_v32 = vmax.f32 %v7524_v44, 0.0  ;;  %v7529_v15 = vadd.f32 %v7481_v8, %v629_v57  ;;  %v7473_v33 = vadd.f32 %v7472_v51, %v7376_v52  ;;  %v11675_v57 = vld [vmem:[#allocation53_spill] sm:$0xff]  ;;  %v11679_v44 = vld [vmem:[#allocation28_spill] sm:$0xff]  ;;  %v640_v50 = vadd.f32 %v11472_v14, %v11680_v22 }
 0x5a8   :  { %v9881_v62 = vpop.f32.mrf.mxu1  ;;  %v9700_v13 = vadd.f32 %v11675_v57, %v11674_v19  ;;  %v7306_v63 = vadd.f32 %v9645_v0, %v7209_v10  ;;  %v648_v8 = vadd.f32 %v11679_v44, %v11472_v14 }
 0x5a9   :  { %7556 = vst [vmem:[#allocation10 + $0x28] sm:$0xff] %v7540_v32  ;;  %v7545_v45 = vmax.f32 %v7529_v15, 0.0  ;;  %v7527_v18 = vadd.f32 %v7473_v33, %v621_v1  ;;  %v7484_v23 = vadd.f32 %v9881_v62, %v7387_v59  ;;  %v11677_v1 = vld [vmem:[#allocation46_spill] sm:$0xff] }
 0x5aa   :  { %v7475_v9 = vpop.f32.mrf.mxu1  ;;  %v7298_v24 = vadd.f32 %v9639_v47, %v11677_v1  ;;  %v7392_v53 = vadd.f32 %v9700_v13, %v7295_v49  ;;  %v7403_v17 = vadd.f32 %v9709_v34, %v7306_v63 }
 0x5ab   :  { %7562 = vst [vmem:[#allocation10 + $0x50] sm:$0xff] %v7545_v45  ;;  %v7543_v26 = vmax.f32 %v7527_v18, 0.0  ;;  %v7530_v11 = vadd.f32 %v7484_v23, %v632_v55  ;;  %v7476_v41 = vadd.f32 %v7475_v9, %v7379_v36 }
 0x5ac   :  { %v9884_v39 = vpop.f32.mrf.mxu1  ;;  %v7395_v60 = vadd.f32 %v9703_v12, %v7298_v24 }
 0x5ad   :  { %7560 = vst [vmem:[#allocation10 + $0x40] sm:$0xff] %v7543_v26  ;;  %v7546_v29 = vmax.f32 %v7530_v11, 0.0  ;;  %v7528_v54 = vadd.f32 %v7476_v41, %v624_v27  ;;  %v7497_v56 = vadd.f32 %v9884_v39, %v7400_v40 }
 0x5ae   :  { %v7488_v55 = vpop.f32.mrf.mxu1 }
 0x5af   :  { %7563 = vst [vmem:[#allocation10 + $0x58] sm:$0xff] %v7546_v29  ;;  %v7544_v52 = vmax.f32 %v7528_v54, 0.0  ;;  %v7533_v6 = vadd.f32 %v7497_v56, %v645_v16  ;;  %v7489_v38 = vadd.f32 %v7488_v55, %v7392_v53 }
 0x5b0   :  { %v9885_v48 = vpop.f32.mrf.mxu1 }
 0x5b1   :  { %7561 = vst [vmem:[#allocation10 + $0x48] sm:$0xff] %v7544_v52  ;;  %v7549_v37 = vmax.f32 %v7533_v6, 0.0  ;;  %v7531_v31 = vadd.f32 %v7489_v38, %v637_v28  ;;  %v7500_v58 = vadd.f32 %v9885_v48, %v7403_v17 }
 0x5b2   :  { %v7491_v46 = vpop.f32.mrf.mxu1 }
 0x5b3   :  { %7566 = vst [vmem:[#allocation10 + $0x70] sm:$0xff] %v7549_v37  ;;  %v7547_v3 = vmax.f32 %v7531_v31, 0.0  ;;  %v7534_v7 = vadd.f32 %v7500_v58, %v648_v8  ;;  %v7492_v51 = vadd.f32 %v7491_v46, %v7395_v60 }
 0x5b5   :  { %7564 = vst [vmem:[#allocation10 + $0x60] sm:$0xff] %v7547_v3  ;;  %v7550_v59 = vmax.f32 %v7534_v7, 0.0  ;;  %v7532_v21 = vadd.f32 %v7492_v51, %v640_v50 }
 0x5b7   :  { %7567 = vst [vmem:[#allocation10 + $0x78] sm:$0xff] %v7550_v59  ;;  %v7548_v25 = vmax.f32 %v7532_v21, 0.0 }
 0x5b9   :  { %7565 = vst [vmem:[#allocation10 + $0x68] sm:$0xff] %v7548_v25 }
 0x5ba   :  { %10489 = shalt.err (!%p10486_p0)
}
 0x5bb   :  { %s10510_s13 = smov 128   ;;  %s10511_s14 = smov 8  }
 0x5bc   :  { %7579 = dma.vmem_to_hbm [thread:$0]  %s7574_s3, 2048, %s11552_s7, [#allocation7], %s10510_s13, %s10510_s13, %s10511_s14  }
 0x5bd   :  { %10502 = dma.done.wait [#allocation7], 2048  }
 0x5be   :  { %10503 = vsyncadd [#allocation7], 4294965248 }
 0x5bf   :  { %7583 = vsyncpa [#allocation6], 1 }
 0x5c0   :  { %7584 = vsyncpa [#allocation9], 1 }
 0x5c1   :  { %7585 = vsyncpa [#allocation7], 1 }

</bundles_post_ra>
